<compile_context>
chip_gen: v7x
topology: tpu7x:2x2x1
jax: 0.10.0
libtpu: 0.0.40
codegen_flags: <defaults>
</compile_context>

<pallas_src>
import functools

import jax
import jax.numpy as jnp
import numpy as np
from jax import lax
from jax.experimental import pallas as pl
from jax.experimental.pallas import tpu as pltpu


def _round_up(x, m):
    return (x + m - 1) // m * m


def _buf_bytes(shape, dtype):
    """Rough lane/sublane-padded VMEM footprint of a 2D (or flattened) buffer."""
    rows = int(np.prod(shape[:-1])) if len(shape) > 1 else 1
    cols = int(shape[-1])
    return _round_up(max(rows, 1), 8) * _round_up(max(cols, 1), 128) * \
        jnp.dtype(dtype).itemsize


def _pick_chunk(T_proc, Bp, E, Hp, budget_bytes=8 << 20):
    """Largest time-chunk Tc whose chunk-sized buffers fit the VMEM budget."""
    per_t = Bp * (2 * 2 * _round_up(E, 128)      # x chunk, bf16, 2 pipeline bufs
                  + 2 * 4 * _round_up(Hp, 128)   # out chunk, f32, 2 pipeline bufs
                  + 4 * _round_up(3 * Hp, 128)   # gi scratch, f32
                  + 4 * _round_up(Hp, 128))      # act scratch, f32
    tc = max(int(budget_bytes // max(per_t, 1)), 1)
    return min(tc, T_proc)


# ----------------------------------------------------------------------------
# Fused encoder kernel: one time-chunk of (LayerNorm + n_layers GRU layers).
# Gate order (r, z, n) matches torch.nn.GRU.  Packed-sequence semantics:
#   - hidden state stops updating once t >= length[b]
#   - outputs at padded positions are zero
# ----------------------------------------------------------------------------
def _encoder_kernel(*refs, n_layers, Tc, Bp, Hp, use_ln):
    x_ref, len_ref, g_ref, beta_ref = refs[0:4]
    layer_refs = refs[4:4 + 4 * n_layers]
    out_ref, hT_ref = refs[4 + 4 * n_layers:6 + 4 * n_layers]
    h_ref, act_ref, gi_ref = refs[6 + 4 * n_layers:9 + 4 * n_layers]

    c = pl.program_id(0)
    t0 = c * Tc

    @pl.when(c == 0)
    def _init():                                          # zero hidden carry
        h_ref[...] = jnp.zeros_like(h_ref)

    lens = len_ref[...]                                   # (Bp, 1) int32
    unroll = True if Tc <= 16 else 8

    # ---- layer-0 input: LayerNorm in f32, matmul operand in bf16 ----
    if use_ln:
        xf = x_ref[...].astype(jnp.float32)               # chunk-sized only
        mu = jnp.mean(xf, axis=-1, keepdims=True)
        var = jnp.mean((xf - mu) ** 2, axis=-1, keepdims=True)
        xn = ((xf - mu) * lax.rsqrt(var + 1e-5) * g_ref[...] + beta_ref[...]
              ).astype(jnp.bfloat16)
    else:
        xn = x_ref[...]                                    # already bf16

    for l in range(n_layers):
        w_ih_ref, w_hh_ref, bih_ref, bhhn_ref = layer_refs[4 * l:4 * l + 4]
        if l == 0:
            layer_in = xn
        else:
            layer_in = act_ref[...].astype(jnp.bfloat16)   # chunk-sized cast

        # Input->hidden projection for the whole chunk (one MXU matmul).
        # b_hh[r], b_hh[z] were pre-folded into bih; only b_hh[n] remains.
        gi_ref[...] = (jnp.dot(layer_in, w_ih_ref[...],
                               preferred_element_type=jnp.float32)
                       + bih_ref[...])

        w_hh = w_hh_ref[...]                               # (Hp, 3Hp) bf16
        b_hh_n = jnp.broadcast_to(bhhn_ref[...], (Bp, Hp))  # hoisted broadcast
        last = (l == n_layers - 1)
        dst = out_ref if last else act_ref

        def step(tau, h, dst=dst, w_hh=w_hh, b_hh_n=b_hh_n):
            row = pl.multiple_of(tau * Bp, Bp)
            gi = gi_ref[pl.ds(row, Bp), :]                 # (Bp, 3Hp) f32
            gh = jnp.dot(h.astype(jnp.bfloat16), w_hh,
                         preferred_element_type=jnp.float32)
            # fused r/z sigmoid over the [0:2Hp] slab (one EUP pass)
            rz = jax.nn.sigmoid(gi[:, 0:2 * Hp] + gh[:, 0:2 * Hp])
            r = rz[:, 0:Hp]
            z = rz[:, Hp:2 * Hp]
            n = jnp.tanh(gi[:, 2 * Hp:3 * Hp] + r * (gh[:, 2 * Hp:3 * Hp] + b_hh_n))
            h_cand = (1.0 - z) * n + z * h
            valid = (t0 + tau) < lens                      # (Bp, 1) bool
            dst[pl.ds(row, Bp), :] = jnp.where(valid, h_cand, 0.0)
            return jnp.where(valid, h_cand, h)             # hold state past end

        h_ref[l] = lax.fori_loop(0, Tc, step, h_ref[l], unroll=unroll)

    # resident output block (constant index map) -> written back once at the end
    hT_ref[...] = h_ref[n_layers - 1]


# ----------------------------------------------------------------------------
# Encoder wrapper (parameter container + forward glue)
# ----------------------------------------------------------------------------
class PallasEncoder:
    def __init__(self, vocab_size, embed_size, hidden_size, n_layers,
                 layernorm=False, bidirec=False, key=None):
        assert not bidirec, "TODO(synk): bidirec=True not supported"
        assert n_layers >= 1
        self.hidden_size = hidden_size
        self.n_layers = n_layers
        self.n_direction = 1
        self.layernorm = layernorm
        self.Hp = _round_up(hidden_size, 128)              # lane-aligned hidden

        key = jax.random.PRNGKey(42) if key is None else key
        keys = jax.random.split(key, 2 + 4 * n_layers)
        k = 1.0 / np.sqrt(hidden_size)

        self.embedding = jax.random.normal(
            keys[0], (vocab_size, embed_size), jnp.float32)
        self.ln_gamma = jnp.ones((embed_size,), jnp.float32)
        self.ln_beta = jnp.zeros((embed_size,), jnp.float32)

        H, Hp = hidden_size, self.Hp

        def pad_gate_cols(w):                              # (in, 3H) -> (in, 3Hp)
            parts = [jnp.pad(w[:, g * H:(g + 1) * H], ((0, 0), (0, Hp - H)))
                     for g in range(3)]
            return jnp.concatenate(parts, axis=1)

        def pad_gate_vec(b):                               # (3H,) -> (1, 3Hp)
            parts = [jnp.pad(b[g * H:(g + 1) * H], (0, Hp - H)) for g in range(3)]
            return jnp.concatenate(parts).reshape(1, 3 * Hp)

        self.gru_params = []          # unpadded f32 (used by the reference)
        self.gru_params_padded = []   # padded, weights in bf16 (kernel inputs)
        for l in range(n_layers):
            in_size = embed_size if l == 0 else hidden_size
            kw = keys[2 + 4 * l: 2 + 4 * (l + 1)]
            # stored transposed: (in, 3H) / (H, 3H); gate order r, z, n
            w_ih = jax.random.uniform(kw[0], (in_size, 3 * H), jnp.float32, -k, k)
            w_hh = jax.random.uniform(kw[1], (H, 3 * H), jnp.float32, -k, k)
            b_ih = jax.random.uniform(kw[2], (3 * H,), jnp.float32, -k, k)
            b_hh = jax.random.uniform(kw[3], (3 * H,), jnp.float32, -k, k)
            self.gru_params.append((w_ih, w_hh, b_ih, b_hh))

            w_ih_p = pad_gate_cols(w_ih)
            if l > 0:  # layer input is the Hp-padded activation
                w_ih_p = jnp.pad(w_ih_p, ((0, Hp - H), (0, 0)))
            w_hh_p = jnp.pad(pad_gate_cols(w_hh), ((0, Hp - H), (0, 0)))
            # fold b_hh[r], b_hh[z] into b_ih (only the n-gate b_hh must stay
            # inside r*(...)); keeps 2 of 3 per-step bias adds off the loop.
            b_fold = b_ih.at[:2 * H].add(b_hh[:2 * H])
            b_hh_n = jnp.pad(b_hh[2 * H:], (0, Hp - H)).reshape(1, Hp)
            self.gru_params_padded.append(
                (w_ih_p.astype(jnp.bfloat16), w_hh_p.astype(jnp.bfloat16),
                 pad_gate_vec(b_fold), b_hh_n))

    def __call__(self, inputs, lengths):
        assert isinstance(lengths, list), 'lengths must be a list type'
        B, T = inputs.shape
        E = self.embedding.shape[1]
        H, Hp = self.hidden_size, self.Hp
        Bp = _round_up(B, 8)                               # sublane-aligned batch

        T_out = int(max(lengths))
        assert T_out <= T, "lengths must not exceed the input sequence length"
        T_proc = T_out                                     # skip padded tail steps

        # --- glue: embedding lookup, bf16 rounding, layout, padding ---
        emb = jnp.take(self.embedding, inputs[:, :T_proc], axis=0)  # (B,Tp,E)
        x = jnp.transpose(emb, (1, 0, 2)).astype(jnp.bfloat16)      # (Tp,B,E)

        Tc = _pick_chunk(T_proc, Bp, E, Hp)
        nt = pl.cdiv(T_proc, Tc)
        T_pad = nt * Tc

        x = jnp.pad(x, ((0, T_pad - T_proc), (0, Bp - B), (0, 0)))
        x2d = x.reshape(T_pad * Bp, E)                     # bf16

        lengths_arr = jnp.asarray(lengths, jnp.int32)
        len_col = jnp.zeros((Bp, 1), jnp.int32).at[:B, 0].set(lengths_arr)

        args = [x2d, len_col,
                self.ln_gamma.reshape(1, E), self.ln_beta.reshape(1, E)]
        for p in self.gru_params_padded:
            args.extend(p)

        kernel = functools.partial(_encoder_kernel, n_layers=self.n_layers,
                                   Tc=Tc, Bp=Bp, Hp=Hp, use_ln=self.layernorm)

        def const2d(shape):
            return pl.BlockSpec(shape, lambda c: (0, 0))

        in_specs = [pl.BlockSpec((Tc * Bp, E), lambda c: (c, 0)),   # x chunk
                    const2d((Bp, 1)),                                # lengths
                    const2d((1, E)), const2d((1, E))]                # gamma, beta
        for p in self.gru_params_padded:
            in_specs.extend(const2d(tuple(a.shape)) for a in p)

        out_specs = (pl.BlockSpec((Tc * Bp, Hp), lambda c: (c, 0)),  # out chunk
                     const2d((Bp, Hp)))                              # hT (resident)

        act_rows = Tc * Bp if self.n_layers > 1 else 8
        scratch = [pltpu.VMEM((self.n_layers, Bp, Hp), jnp.float32),  # h carry
                   pltpu.VMEM((act_rows, Hp), jnp.float32),           # layer acts
                   pltpu.VMEM((Tc * Bp, 3 * Hp), jnp.float32)]        # hoisted gi

        # --- VMEM budget: buffer sizes (pipeline double-buffers) + margin ---
        vmem_bytes = 0
        for i, a in enumerate(args):
            blk = (Tc * Bp, E) if i == 0 else tuple(a.shape)
            vmem_bytes += 2 * _buf_bytes(blk, a.dtype)
        vmem_bytes += 2 * _buf_bytes((Tc * Bp, Hp), jnp.float32)      # out chunk
        vmem_bytes += 2 * _buf_bytes((Bp, Hp), jnp.float32)           # hT
        vmem_bytes += _buf_bytes((self.n_layers * Bp, Hp), jnp.float32)
        vmem_bytes += _buf_bytes((act_rows, Hp), jnp.float32)
        vmem_bytes += _buf_bytes((Tc * Bp, 3 * Hp), jnp.float32)
        vmem_limit = min(max(int(vmem_bytes * 2) + (4 << 20), 32 << 20), 64 << 20)

        out2d, hT = pl.pallas_call(
            kernel,
            grid=(nt,),
            out_shape=(jax.ShapeDtypeStruct((T_pad * Bp, Hp), jnp.float32),
                       jax.ShapeDtypeStruct((Bp, Hp), jnp.float32)),
            in_specs=in_specs,
            out_specs=out_specs,
            scratch_shapes=scratch,
            compiler_params=pltpu.CompilerParams(
                dimension_semantics=("arbitrary",),
                vmem_limit_bytes=vmem_limit),
        )(*args)

        out = out2d.reshape(T_pad, Bp, Hp)[:T_out, :B, :H]  # (T_out, B, H)
        outputs = jnp.transpose(out, (1, 0, 2))             # (B, T_out, H)
        hiddens = hT[:B, :H][None, :, :]                     # (1, B, n_dir*H)
        return outputs, hiddens


# ----------------------------------------------------------------------------
# Pure-JAX reference (same math, same bf16 rounding/casting) for correctness
# ----------------------------------------------------------------------------
def _reference_forward(enc, inputs, lengths):
    B, T = inputs.shape
    H = enc.hidden_size
    emb = jnp.take(enc.embedding, inputs, axis=0)
    emb = emb.astype(jnp.bfloat16).astype(jnp.float32)     # kernel sees bf16 x
    if enc.layernorm:
        mu = jnp.mean(emb, -1, keepdims=True)
        var = jnp.mean((emb - mu) ** 2, -1, keepdims=True)
        emb = (emb - mu) * jax.lax.rsqrt(var + 1e-5) * enc.ln_gamma + enc.ln_beta
    x = jnp.transpose(emb, (1, 0, 2))
    lengths_arr = jnp.asarray(lengths, jnp.int32)
    mask = (jnp.arange(T)[:, None] < lengths_arr[None, :]
            ).astype(jnp.float32)[..., None]

    h_T = None
    for (w_ih, w_hh, b_ih, b_hh) in enc.gru_params:
        w_ih_b = w_ih.astype(jnp.bfloat16)
        w_hh_b = w_hh.astype(jnp.bfloat16)
        h = jnp.zeros((B, H), jnp.float32)
        outs = []
        for t in range(T):
            gi = jnp.dot(x[t].astype(jnp.bfloat16), w_ih_b,
                         preferred_element_type=jnp.float32) + b_ih
            gh = jnp.dot(h.astype(jnp.bfloat16), w_hh_b,
                         preferred_element_type=jnp.float32) + b_hh
            r = jax.nn.sigmoid(gi[:, :H] + gh[:, :H])
            z = jax.nn.sigmoid(gi[:, H:2 * H] + gh[:, H:2 * H])
            n = jnp.tanh(gi[:, 2 * H:] + r * gh[:, 2 * H:])
            hc = (1 - z) * n + z * h
            h = mask[t] * hc + (1 - mask[t]) * h
            outs.append(mask[t] * hc)
        x = jnp.stack(outs, 0)
        h_T = h
    T_out = int(max(lengths))
    return jnp.transpose(x, (1, 0, 2))[:, :T_out, :], h_T[None]


if __name__ == "__main__":
    vocab_size, embed_size, hidden_size, n_layers = 50, 32, 32, 2
    B, T = 4, 8
    lengths = [8, 7, 5, 3]           # as pack_padded_sequence would receive

    key = jax.random.PRNGKey(0)
    k_in, k_param = jax.random.split(key)
    inputs = jax.random.randint(k_in, (B, T), 0, vocab_size, dtype=jnp.int32)

    enc = PallasEncoder(vocab_size, embed_size, hidden_size, n_layers,
                        layernorm=True, bidirec=False, key=k_param)

    outputs, hiddens = enc(inputs, lengths)
    outputs, hiddens = jax.block_until_ready((outputs, hiddens))

    ref_out, ref_hid = _reference_forward(enc, inputs, lengths)
    assert outputs.shape == (B, max(lengths), hidden_size), outputs.shape
    assert hiddens.shape == (1, B, hidden_size), hiddens.shape
    np.testing.assert_allclose(np.asarray(outputs), np.asarray(ref_out),
                               rtol=1e-2, atol=1e-2)
    np.testing.assert_allclose(np.asarray(hiddens), np.asarray(ref_hid),
                               rtol=1e-2, atol=1e-2)

    print("KERNEL_OK")
</pallas_src>

<mosaic_0001>
module attributes {stable_mosaic.version = 11 : i64} {
  func.func @_encoder_kernel(%arg0: i32, %arg1: memref<64x32xbf16, #tpu.memory_space<vmem>>, %arg2: memref<8x1xi32, #tpu.memory_space<vmem>>, %arg3: memref<1x32xf32, #tpu.memory_space<vmem>>, %arg4: memref<1x32xf32, #tpu.memory_space<vmem>>, %arg5: memref<32x384xbf16, #tpu.memory_space<vmem>>, %arg6: memref<128x384xbf16, #tpu.memory_space<vmem>>, %arg7: memref<1x384xf32, #tpu.memory_space<vmem>>, %arg8: memref<1x128xf32, #tpu.memory_space<vmem>>, %arg9: memref<128x384xbf16, #tpu.memory_space<vmem>>, %arg10: memref<128x384xbf16, #tpu.memory_space<vmem>>, %arg11: memref<1x384xf32, #tpu.memory_space<vmem>>, %arg12: memref<1x128xf32, #tpu.memory_space<vmem>>, %arg13: memref<64x128xf32, #tpu.memory_space<vmem>>, %arg14: memref<8x128xf32, #tpu.memory_space<vmem>>, %arg15: memref<2x8x128xf32, #tpu.memory_space<vmem>>, %arg16: memref<64x128xf32, #tpu.memory_space<vmem>>, %arg17: memref<64x384xf32, #tpu.memory_space<vmem>>) attributes {dimension_semantics = [#tpu.dimension_semantics<arbitrary>], iteration_bounds = array<i64: 1>, scalar_prefetch = 0 : i64, scratch_operands = 3 : i64, tpu.core_type = #tpu.core_type<tc>, window_params = [{transform_indices = @transform_0, window_bounds = array<i64: 64, 32>}, {pipeline_mode = #tpu.pipeline_mode<synchronous>, transform_indices = @transform_1, window_bounds = array<i64: 8, 1>}, {pipeline_mode = #tpu.pipeline_mode<synchronous>, transform_indices = @transform_2, window_bounds = array<i64: 1, 32>}, {pipeline_mode = #tpu.pipeline_mode<synchronous>, transform_indices = @transform_3, window_bounds = array<i64: 1, 32>}, {pipeline_mode = #tpu.pipeline_mode<synchronous>, transform_indices = @transform_4, window_bounds = array<i64: 32, 384>}, {pipeline_mode = #tpu.pipeline_mode<synchronous>, transform_indices = @transform_5, window_bounds = array<i64: 128, 384>}, {pipeline_mode = #tpu.pipeline_mode<synchronous>, transform_indices = @transform_6, window_bounds = array<i64: 1, 384>}, {pipeline_mode = #tpu.pipeline_mode<synchronous>, transform_indices = @transform_7, window_bounds = array<i64: 1, 128>}, {pipeline_mode = #tpu.pipeline_mode<synchronous>, transform_indices = @transform_8, window_bounds = array<i64: 128, 384>}, {pipeline_mode = #tpu.pipeline_mode<synchronous>, transform_indices = @transform_9, window_bounds = array<i64: 128, 384>}, {pipeline_mode = #tpu.pipeline_mode<synchronous>, transform_indices = @transform_10, window_bounds = array<i64: 1, 384>}, {pipeline_mode = #tpu.pipeline_mode<synchronous>, transform_indices = @transform_11, window_bounds = array<i64: 1, 128>}, {transform_indices = @transform_12, window_bounds = array<i64: 64, 128>}, {pipeline_mode = #tpu.pipeline_mode<synchronous>, transform_indices = @transform_13, window_bounds = array<i64: 8, 128>}]} {
    %c8_i32 = arith.constant 8 : i32
    %0 = arith.muli %arg0, %c8_i32 : i32
    %c0_i32 = arith.constant 0 : i32
    %1 = arith.cmpi eq, %arg0, %c0_i32 : i32
    %2 = arith.extui %1 : i1 to i32
    %c0_i32_0 = arith.constant 0 : i32
    %3 = arith.cmpi ne, %2, %c0_i32_0 : i32
    scf.if %3 {
      %cst_175 = arith.constant 0.000000e+00 : f32
      %691 = vector.broadcast %cst_175 : f32 to vector<2x8x128xf32>
      %c0_176 = arith.constant 0 : index
      %c0_177 = arith.constant 0 : index
      %c0_178 = arith.constant 0 : index
      %692 = vector.load %arg15[%c0_176, %c0_177, %c0_178] : memref<2x8x128xf32, #tpu.memory_space<vmem>>, vector<2x8x128xf32>
      tpu.vector_store %arg15[%c0_176, %c0_177, %c0_178], %691 {strides = array<i32>} : memref<2x8x128xf32, #tpu.memory_space<vmem>>, vector<2x8x128xf32>,
    } else {
    }
    %c0 = arith.constant 0 : index
    %c0_1 = arith.constant 0 : index
    %4 = vector.load %arg2[%c0, %c0_1] : memref<8x1xi32, #tpu.memory_space<vmem>>, vector<8x1xi32>
    %c0_2 = arith.constant 0 : index
    %c0_3 = arith.constant 0 : index
    %5 = vector.load %arg1[%c0_2, %c0_3] : memref<64x32xbf16, #tpu.memory_space<vmem>>, vector<64x32xbf16>
    %6 = arith.extf %5 : vector<64x32xbf16> to vector<64x32xf32>
    %cst = arith.constant dense<0.000000e+00> : vector<64xf32>
    %7 = vector.multi_reduction <add>, %6, %cst [1] : vector<64x32xf32> to vector<64xf32>
    %8 = vector.shape_cast %7 : vector<64xf32> to vector<64x1xf32>
    %cst_4 = arith.constant 3.200000e+01 : f32
    %9 = vector.broadcast %cst_4 : f32 to vector<64x1xf32>
    %10 = arith.divf %8, %9 : vector<64x1xf32>
    %11 = vector.broadcast %10 : vector<64x1xf32> to vector<64x32xf32>
    %12 = arith.subf %6, %11 : vector<64x32xf32>
    %13 = arith.mulf %12, %12 : vector<64x32xf32>
    %cst_5 = arith.constant dense<0.000000e+00> : vector<64xf32>
    %14 = vector.multi_reduction <add>, %13, %cst_5 [1] : vector<64x32xf32> to vector<64xf32>
    %15 = vector.shape_cast %14 : vector<64xf32> to vector<64x1xf32>
    %cst_6 = arith.constant 3.200000e+01 : f32
    %16 = vector.broadcast %cst_6 : f32 to vector<64x1xf32>
    %17 = arith.divf %15, %16 : vector<64x1xf32>
    %18 = vector.broadcast %10 : vector<64x1xf32> to vector<64x32xf32>
    %19 = arith.subf %6, %18 : vector<64x32xf32>
    %cst_7 = arith.constant 9.99999974E-6 : f32
    %20 = vector.broadcast %cst_7 : f32 to vector<64x1xf32>
    %21 = arith.addf %17, %20 : vector<64x1xf32>
    %22 = math.rsqrt %21 : vector<64x1xf32>
    %23 = vector.broadcast %22 : vector<64x1xf32> to vector<64x32xf32>
    %24 = arith.mulf %19, %23 : vector<64x32xf32>
    %c0_8 = arith.constant 0 : index
    %c0_9 = arith.constant 0 : index
    %25 = vector.load %arg3[%c0_8, %c0_9] : memref<1x32xf32, #tpu.memory_space<vmem>>, vector<1x32xf32>
    %26 = vector.broadcast %25 : vector<1x32xf32> to vector<64x32xf32>
    %27 = arith.mulf %24, %26 : vector<64x32xf32>
    %c0_10 = arith.constant 0 : index
    %c0_11 = arith.constant 0 : index
    %28 = vector.load %arg4[%c0_10, %c0_11] : memref<1x32xf32, #tpu.memory_space<vmem>>, vector<1x32xf32>
    %29 = vector.broadcast %28 : vector<1x32xf32> to vector<64x32xf32>
    %30 = arith.addf %27, %29 : vector<64x32xf32>
    %31 = arith.truncf %30 : vector<64x32xf32> to vector<64x32xbf16>
    %c0_12 = arith.constant 0 : index
    %c0_13 = arith.constant 0 : index
    %32 = vector.load %arg5[%c0_12, %c0_13] : memref<32x384xbf16, #tpu.memory_space<vmem>>, vector<32x384xbf16>
    %cst_14 = arith.constant dense<0.000000e+00> : vector<64x384xf32>
    %33 = tpu.matmul %31, %32, %cst_14 {dimension_numbers = #tpu.dot_dimension_numbers<[1], [0], [0], [1], [0, 0, 1, 1], [], []>} : vector<64x32xbf16>, vector<32x384xbf16>, vector<64x384xf32> -> vector<64x384xf32>
    %c0_15 = arith.constant 0 : index
    %c0_16 = arith.constant 0 : index
    %34 = vector.load %arg7[%c0_15, %c0_16] : memref<1x384xf32, #tpu.memory_space<vmem>>, vector<1x384xf32>
    %35 = vector.broadcast %34 : vector<1x384xf32> to vector<64x384xf32>
    %36 = arith.addf %33, %35 : vector<64x384xf32>
    %c0_17 = arith.constant 0 : index
    %c0_18 = arith.constant 0 : index
    %37 = vector.load %arg17[%c0_17, %c0_18] : memref<64x384xf32, #tpu.memory_space<vmem>>, vector<64x384xf32>
    tpu.vector_store %arg17[%c0_17, %c0_18], %36 {strides = array<i32>} : memref<64x384xf32, #tpu.memory_space<vmem>>, vector<64x384xf32>,
    %c0_19 = arith.constant 0 : index
    %c0_20 = arith.constant 0 : index
    %38 = vector.load %arg6[%c0_19, %c0_20] : memref<128x384xbf16, #tpu.memory_space<vmem>>, vector<128x384xbf16>
    %c0_21 = arith.constant 0 : index
    %c0_22 = arith.constant 0 : index
    %39 = vector.load %arg8[%c0_21, %c0_22] : memref<1x128xf32, #tpu.memory_space<vmem>>, vector<1x128xf32>
    %40 = vector.shape_cast %39 : vector<1x128xf32> to vector<1x128xf32>
    %41 = vector.broadcast %40 : vector<1x128xf32> to vector<8x128xf32>
    %c0_23 = arith.constant 0 : index
    %c0_24 = arith.constant 0 : index
    %c0_25 = arith.constant 0 : index
    %42 = vector.load %arg15[%c0_23, %c0_24, %c0_25] : memref<2x8x128xf32, #tpu.memory_space<vmem>>, vector<1x8x128xf32>
    %43 = vector.shape_cast %42 : vector<1x8x128xf32> to vector<8x128xf32>
    %c0_i32_26 = arith.constant 0 : i32
    %c8_i32_27 = arith.constant 8 : i32
    %44 = arith.muli %c0_i32_26, %c8_i32_27 : i32
    %45 = tpu.assume_multiple %44, 8 : i32
    %46 = arith.index_cast %45 : i32 to index
    %c0_28 = arith.constant 0 : index
    %47 = vector.load %arg17[%46, %c0_28] : memref<64x384xf32, #tpu.memory_space<vmem>>, vector<8x384xf32>
    %48 = arith.truncf %43 : vector<8x128xf32> to vector<8x128xbf16>
    %cst_29 = arith.constant dense<0.000000e+00> : vector<8x384xf32>
    %49 = tpu.matmul %48, %38, %cst_29 {dimension_numbers = #tpu.dot_dimension_numbers<[1], [0], [0], [1], [0, 0, 1, 1], [], []>} : vector<8x128xbf16>, vector<128x384xbf16>, vector<8x384xf32> -> vector<8x384xf32>
    %50 = vector.extract_strided_slice %47 {offsets = [0, 0], sizes = [8, 256], strides = [1, 1]} : vector<8x384xf32> to vector<8x256xf32>
    %51 = vector.extract_strided_slice %49 {offsets = [0, 0], sizes = [8, 256], strides = [1, 1]} : vector<8x384xf32> to vector<8x256xf32>
    %52 = arith.addf %50, %51 : vector<8x256xf32>
    %53 = arith.negf %52 : vector<8x256xf32>
    %54 = math.exp %53 : vector<8x256xf32>
    %cst_30 = arith.constant 1.000000e+00 : f32
    %55 = vector.broadcast %cst_30 : f32 to vector<8x256xf32>
    %56 = arith.addf %55, %54 : vector<8x256xf32>
    %57 = arith.divf %55, %56 : vector<8x256xf32>
    %58 = vector.extract_strided_slice %57 {offsets = [0, 0], sizes = [8, 128], strides = [1, 1]} : vector<8x256xf32> to vector<8x128xf32>
    %59 = vector.extract_strided_slice %57 {offsets = [0, 128], sizes = [8, 128], strides = [1, 1]} : vector<8x256xf32> to vector<8x128xf32>
    %60 = vector.extract_strided_slice %47 {offsets = [0, 256], sizes = [8, 128], strides = [1, 1]} : vector<8x384xf32> to vector<8x128xf32>
    %61 = vector.extract_strided_slice %49 {offsets = [0, 256], sizes = [8, 128], strides = [1, 1]} : vector<8x384xf32> to vector<8x128xf32>
    %62 = arith.addf %61, %41 : vector<8x128xf32>
    %63 = arith.mulf %58, %62 : vector<8x128xf32>
    %64 = arith.addf %60, %63 : vector<8x128xf32>
    %65 = math.tanh %64 : vector<8x128xf32>
    %cst_31 = arith.constant 1.000000e+00 : f32
    %66 = vector.broadcast %cst_31 : f32 to vector<8x128xf32>
    %67 = arith.subf %66, %59 : vector<8x128xf32>
    %68 = arith.mulf %67, %65 : vector<8x128xf32>
    %69 = arith.mulf %59, %43 : vector<8x128xf32>
    %70 = arith.addf %68, %69 : vector<8x128xf32>
    %71 = arith.addi %0, %c0_i32_26 : i32
    %72 = vector.broadcast %71 : i32 to vector<8x1xi32>
    %73 = arith.cmpi slt, %72, %4 : vector<8x1xi32>
    %cst_32 = arith.constant 0.000000e+00 : f32
    %74 = vector.shape_cast %73 : vector<8x1xi1> to vector<8x1xi1>
    %75 = vector.broadcast %74 : vector<8x1xi1> to vector<8x128xi1>
    %76 = vector.broadcast %cst_32 : f32 to vector<8x128xf32>
    %77 = arith.select %75, %70, %76 : vector<8x128xi1>, vector<8x128xf32>
    %78 = arith.index_cast %45 : i32 to index
    %c0_33 = arith.constant 0 : index
    %79 = vector.load %arg16[%78, %c0_33] : memref<64x128xf32, #tpu.memory_space<vmem>>, vector<8x128xf32>
    tpu.vector_store %arg16[%78, %c0_33], %77 {strides = array<i32>} : memref<64x128xf32, #tpu.memory_space<vmem>>, vector<8x128xf32>,
    %80 = vector.shape_cast %73 : vector<8x1xi1> to vector<8x1xi1>
    %81 = vector.broadcast %80 : vector<8x1xi1> to vector<8x128xi1>
    %82 = arith.select %81, %70, %43 : vector<8x128xi1>, vector<8x128xf32>
    %c1_i32 = arith.constant 1 : i32
    %c8_i32_34 = arith.constant 8 : i32
    %83 = arith.muli %c1_i32, %c8_i32_34 : i32
    %84 = tpu.assume_multiple %83, 8 : i32
    %85 = arith.index_cast %84 : i32 to index
    %c0_35 = arith.constant 0 : index
    %86 = vector.load %arg17[%85, %c0_35] : memref<64x384xf32, #tpu.memory_space<vmem>>, vector<8x384xf32>
    %87 = arith.truncf %82 : vector<8x128xf32> to vector<8x128xbf16>
    %cst_36 = arith.constant dense<0.000000e+00> : vector<8x384xf32>
    %88 = tpu.matmul %87, %38, %cst_36 {dimension_numbers = #tpu.dot_dimension_numbers<[1], [0], [0], [1], [0, 0, 1, 1], [], []>} : vector<8x128xbf16>, vector<128x384xbf16>, vector<8x384xf32> -> vector<8x384xf32>
    %89 = vector.extract_strided_slice %86 {offsets = [0, 0], sizes = [8, 256], strides = [1, 1]} : vector<8x384xf32> to vector<8x256xf32>
    %90 = vector.extract_strided_slice %88 {offsets = [0, 0], sizes = [8, 256], strides = [1, 1]} : vector<8x384xf32> to vector<8x256xf32>
    %91 = arith.addf %89, %90 : vector<8x256xf32>
    %92 = arith.negf %91 : vector<8x256xf32>
    %93 = math.exp %92 : vector<8x256xf32>
    %cst_37 = arith.constant 1.000000e+00 : f32
    %94 = vector.broadcast %cst_37 : f32 to vector<8x256xf32>
    %95 = arith.addf %94, %93 : vector<8x256xf32>
    %96 = arith.divf %94, %95 : vector<8x256xf32>
    %97 = vector.extract_strided_slice %96 {offsets = [0, 0], sizes = [8, 128], strides = [1, 1]} : vector<8x256xf32> to vector<8x128xf32>
    %98 = vector.extract_strided_slice %96 {offsets = [0, 128], sizes = [8, 128], strides = [1, 1]} : vector<8x256xf32> to vector<8x128xf32>
    %99 = vector.extract_strided_slice %86 {offsets = [0, 256], sizes = [8, 128], strides = [1, 1]} : vector<8x384xf32> to vector<8x128xf32>
    %100 = vector.extract_strided_slice %88 {offsets = [0, 256], sizes = [8, 128], strides = [1, 1]} : vector<8x384xf32> to vector<8x128xf32>
    %101 = arith.addf %100, %41 : vector<8x128xf32>
    %102 = arith.mulf %97, %101 : vector<8x128xf32>
    %103 = arith.addf %99, %102 : vector<8x128xf32>
    %104 = math.tanh %103 : vector<8x128xf32>
    %cst_38 = arith.constant 1.000000e+00 : f32
    %105 = vector.broadcast %cst_38 : f32 to vector<8x128xf32>
    %106 = arith.subf %105, %98 : vector<8x128xf32>
    %107 = arith.mulf %106, %104 : vector<8x128xf32>
    %108 = arith.mulf %98, %82 : vector<8x128xf32>
    %109 = arith.addf %107, %108 : vector<8x128xf32>
    %110 = arith.addi %0, %c1_i32 : i32
    %111 = vector.broadcast %110 : i32 to vector<8x1xi32>
    %112 = arith.cmpi slt, %111, %4 : vector<8x1xi32>
    %cst_39 = arith.constant 0.000000e+00 : f32
    %113 = vector.shape_cast %112 : vector<8x1xi1> to vector<8x1xi1>
    %114 = vector.broadcast %113 : vector<8x1xi1> to vector<8x128xi1>
    %115 = vector.broadcast %cst_39 : f32 to vector<8x128xf32>
    %116 = arith.select %114, %109, %115 : vector<8x128xi1>, vector<8x128xf32>
    %117 = arith.index_cast %84 : i32 to index
    %c0_40 = arith.constant 0 : index
    %118 = vector.load %arg16[%117, %c0_40] : memref<64x128xf32, #tpu.memory_space<vmem>>, vector<8x128xf32>
    tpu.vector_store %arg16[%117, %c0_40], %116 {strides = array<i32>} : memref<64x128xf32, #tpu.memory_space<vmem>>, vector<8x128xf32>,
    %119 = vector.shape_cast %112 : vector<8x1xi1> to vector<8x1xi1>
    %120 = vector.broadcast %119 : vector<8x1xi1> to vector<8x128xi1>
    %121 = arith.select %120, %109, %82 : vector<8x128xi1>, vector<8x128xf32>
    %c2_i32 = arith.constant 2 : i32
    %c8_i32_41 = arith.constant 8 : i32
    %122 = arith.muli %c2_i32, %c8_i32_41 : i32
    %123 = tpu.assume_multiple %122, 8 : i32
    %124 = arith.index_cast %123 : i32 to index
    %c0_42 = arith.constant 0 : index
    %125 = vector.load %arg17[%124, %c0_42] : memref<64x384xf32, #tpu.memory_space<vmem>>, vector<8x384xf32>
    %126 = arith.truncf %121 : vector<8x128xf32> to vector<8x128xbf16>
    %cst_43 = arith.constant dense<0.000000e+00> : vector<8x384xf32>
    %127 = tpu.matmul %126, %38, %cst_43 {dimension_numbers = #tpu.dot_dimension_numbers<[1], [0], [0], [1], [0, 0, 1, 1], [], []>} : vector<8x128xbf16>, vector<128x384xbf16>, vector<8x384xf32> -> vector<8x384xf32>
    %128 = vector.extract_strided_slice %125 {offsets = [0, 0], sizes = [8, 256], strides = [1, 1]} : vector<8x384xf32> to vector<8x256xf32>
    %129 = vector.extract_strided_slice %127 {offsets = [0, 0], sizes = [8, 256], strides = [1, 1]} : vector<8x384xf32> to vector<8x256xf32>
    %130 = arith.addf %128, %129 : vector<8x256xf32>
    %131 = arith.negf %130 : vector<8x256xf32>
    %132 = math.exp %131 : vector<8x256xf32>
    %cst_44 = arith.constant 1.000000e+00 : f32
    %133 = vector.broadcast %cst_44 : f32 to vector<8x256xf32>
    %134 = arith.addf %133, %132 : vector<8x256xf32>
    %135 = arith.divf %133, %134 : vector<8x256xf32>
    %136 = vector.extract_strided_slice %135 {offsets = [0, 0], sizes = [8, 128], strides = [1, 1]} : vector<8x256xf32> to vector<8x128xf32>
    %137 = vector.extract_strided_slice %135 {offsets = [0, 128], sizes = [8, 128], strides = [1, 1]} : vector<8x256xf32> to vector<8x128xf32>
    %138 = vector.extract_strided_slice %125 {offsets = [0, 256], sizes = [8, 128], strides = [1, 1]} : vector<8x384xf32> to vector<8x128xf32>
    %139 = vector.extract_strided_slice %127 {offsets = [0, 256], sizes = [8, 128], strides = [1, 1]} : vector<8x384xf32> to vector<8x128xf32>
    %140 = arith.addf %139, %41 : vector<8x128xf32>
    %141 = arith.mulf %136, %140 : vector<8x128xf32>
    %142 = arith.addf %138, %141 : vector<8x128xf32>
    %143 = math.tanh %142 : vector<8x128xf32>
    %cst_45 = arith.constant 1.000000e+00 : f32
    %144 = vector.broadcast %cst_45 : f32 to vector<8x128xf32>
    %145 = arith.subf %144, %137 : vector<8x128xf32>
    %146 = arith.mulf %145, %143 : vector<8x128xf32>
    %147 = arith.mulf %137, %121 : vector<8x128xf32>
    %148 = arith.addf %146, %147 : vector<8x128xf32>
    %149 = arith.addi %0, %c2_i32 : i32
    %150 = vector.broadcast %149 : i32 to vector<8x1xi32>
    %151 = arith.cmpi slt, %150, %4 : vector<8x1xi32>
    %cst_46 = arith.constant 0.000000e+00 : f32
    %152 = vector.shape_cast %151 : vector<8x1xi1> to vector<8x1xi1>
    %153 = vector.broadcast %152 : vector<8x1xi1> to vector<8x128xi1>
    %154 = vector.broadcast %cst_46 : f32 to vector<8x128xf32>
    %155 = arith.select %153, %148, %154 : vector<8x128xi1>, vector<8x128xf32>
    %156 = arith.index_cast %123 : i32 to index
    %c0_47 = arith.constant 0 : index
    %157 = vector.load %arg16[%156, %c0_47] : memref<64x128xf32, #tpu.memory_space<vmem>>, vector<8x128xf32>
    tpu.vector_store %arg16[%156, %c0_47], %155 {strides = array<i32>} : memref<64x128xf32, #tpu.memory_space<vmem>>, vector<8x128xf32>,
    %158 = vector.shape_cast %151 : vector<8x1xi1> to vector<8x1xi1>
    %159 = vector.broadcast %158 : vector<8x1xi1> to vector<8x128xi1>
    %160 = arith.select %159, %148, %121 : vector<8x128xi1>, vector<8x128xf32>
    %c3_i32 = arith.constant 3 : i32
    %c8_i32_48 = arith.constant 8 : i32
    %161 = arith.muli %c3_i32, %c8_i32_48 : i32
    %162 = tpu.assume_multiple %161, 8 : i32
    %163 = arith.index_cast %162 : i32 to index
    %c0_49 = arith.constant 0 : index
    %164 = vector.load %arg17[%163, %c0_49] : memref<64x384xf32, #tpu.memory_space<vmem>>, vector<8x384xf32>
    %165 = arith.truncf %160 : vector<8x128xf32> to vector<8x128xbf16>
    %cst_50 = arith.constant dense<0.000000e+00> : vector<8x384xf32>
    %166 = tpu.matmul %165, %38, %cst_50 {dimension_numbers = #tpu.dot_dimension_numbers<[1], [0], [0], [1], [0, 0, 1, 1], [], []>} : vector<8x128xbf16>, vector<128x384xbf16>, vector<8x384xf32> -> vector<8x384xf32>
    %167 = vector.extract_strided_slice %164 {offsets = [0, 0], sizes = [8, 256], strides = [1, 1]} : vector<8x384xf32> to vector<8x256xf32>
    %168 = vector.extract_strided_slice %166 {offsets = [0, 0], sizes = [8, 256], strides = [1, 1]} : vector<8x384xf32> to vector<8x256xf32>
    %169 = arith.addf %167, %168 : vector<8x256xf32>
    %170 = arith.negf %169 : vector<8x256xf32>
    %171 = math.exp %170 : vector<8x256xf32>
    %cst_51 = arith.constant 1.000000e+00 : f32
    %172 = vector.broadcast %cst_51 : f32 to vector<8x256xf32>
    %173 = arith.addf %172, %171 : vector<8x256xf32>
    %174 = arith.divf %172, %173 : vector<8x256xf32>
    %175 = vector.extract_strided_slice %174 {offsets = [0, 0], sizes = [8, 128], strides = [1, 1]} : vector<8x256xf32> to vector<8x128xf32>
    %176 = vector.extract_strided_slice %174 {offsets = [0, 128], sizes = [8, 128], strides = [1, 1]} : vector<8x256xf32> to vector<8x128xf32>
    %177 = vector.extract_strided_slice %164 {offsets = [0, 256], sizes = [8, 128], strides = [1, 1]} : vector<8x384xf32> to vector<8x128xf32>
    %178 = vector.extract_strided_slice %166 {offsets = [0, 256], sizes = [8, 128], strides = [1, 1]} : vector<8x384xf32> to vector<8x128xf32>
    %179 = arith.addf %178, %41 : vector<8x128xf32>
    %180 = arith.mulf %175, %179 : vector<8x128xf32>
    %181 = arith.addf %177, %180 : vector<8x128xf32>
    %182 = math.tanh %181 : vector<8x128xf32>
    %cst_52 = arith.constant 1.000000e+00 : f32
    %183 = vector.broadcast %cst_52 : f32 to vector<8x128xf32>
    %184 = arith.subf %183, %176 : vector<8x128xf32>
    %185 = arith.mulf %184, %182 : vector<8x128xf32>
    %186 = arith.mulf %176, %160 : vector<8x128xf32>
    %187 = arith.addf %185, %186 : vector<8x128xf32>
    %188 = arith.addi %0, %c3_i32 : i32
    %189 = vector.broadcast %188 : i32 to vector<8x1xi32>
    %190 = arith.cmpi slt, %189, %4 : vector<8x1xi32>
    %cst_53 = arith.constant 0.000000e+00 : f32
    %191 = vector.shape_cast %190 : vector<8x1xi1> to vector<8x1xi1>
    %192 = vector.broadcast %191 : vector<8x1xi1> to vector<8x128xi1>
    %193 = vector.broadcast %cst_53 : f32 to vector<8x128xf32>
    %194 = arith.select %192, %187, %193 : vector<8x128xi1>, vector<8x128xf32>
    %195 = arith.index_cast %162 : i32 to index
    %c0_54 = arith.constant 0 : index
    %196 = vector.load %arg16[%195, %c0_54] : memref<64x128xf32, #tpu.memory_space<vmem>>, vector<8x128xf32>
    tpu.vector_store %arg16[%195, %c0_54], %194 {strides = array<i32>} : memref<64x128xf32, #tpu.memory_space<vmem>>, vector<8x128xf32>,
    %197 = vector.shape_cast %190 : vector<8x1xi1> to vector<8x1xi1>
    %198 = vector.broadcast %197 : vector<8x1xi1> to vector<8x128xi1>
    %199 = arith.select %198, %187, %160 : vector<8x128xi1>, vector<8x128xf32>
    %c4_i32 = arith.constant 4 : i32
    %c8_i32_55 = arith.constant 8 : i32
    %200 = arith.muli %c4_i32, %c8_i32_55 : i32
    %201 = tpu.assume_multiple %200, 8 : i32
    %202 = arith.index_cast %201 : i32 to index
    %c0_56 = arith.constant 0 : index
    %203 = vector.load %arg17[%202, %c0_56] : memref<64x384xf32, #tpu.memory_space<vmem>>, vector<8x384xf32>
    %204 = arith.truncf %199 : vector<8x128xf32> to vector<8x128xbf16>
    %cst_57 = arith.constant dense<0.000000e+00> : vector<8x384xf32>
    %205 = tpu.matmul %204, %38, %cst_57 {dimension_numbers = #tpu.dot_dimension_numbers<[1], [0], [0], [1], [0, 0, 1, 1], [], []>} : vector<8x128xbf16>, vector<128x384xbf16>, vector<8x384xf32> -> vector<8x384xf32>
    %206 = vector.extract_strided_slice %203 {offsets = [0, 0], sizes = [8, 256], strides = [1, 1]} : vector<8x384xf32> to vector<8x256xf32>
    %207 = vector.extract_strided_slice %205 {offsets = [0, 0], sizes = [8, 256], strides = [1, 1]} : vector<8x384xf32> to vector<8x256xf32>
    %208 = arith.addf %206, %207 : vector<8x256xf32>
    %209 = arith.negf %208 : vector<8x256xf32>
    %210 = math.exp %209 : vector<8x256xf32>
    %cst_58 = arith.constant 1.000000e+00 : f32
    %211 = vector.broadcast %cst_58 : f32 to vector<8x256xf32>
    %212 = arith.addf %211, %210 : vector<8x256xf32>
    %213 = arith.divf %211, %212 : vector<8x256xf32>
    %214 = vector.extract_strided_slice %213 {offsets = [0, 0], sizes = [8, 128], strides = [1, 1]} : vector<8x256xf32> to vector<8x128xf32>
    %215 = vector.extract_strided_slice %213 {offsets = [0, 128], sizes = [8, 128], strides = [1, 1]} : vector<8x256xf32> to vector<8x128xf32>
    %216 = vector.extract_strided_slice %203 {offsets = [0, 256], sizes = [8, 128], strides = [1, 1]} : vector<8x384xf32> to vector<8x128xf32>
    %217 = vector.extract_strided_slice %205 {offsets = [0, 256], sizes = [8, 128], strides = [1, 1]} : vector<8x384xf32> to vector<8x128xf32>
    %218 = arith.addf %217, %41 : vector<8x128xf32>
    %219 = arith.mulf %214, %218 : vector<8x128xf32>
    %220 = arith.addf %216, %219 : vector<8x128xf32>
    %221 = math.tanh %220 : vector<8x128xf32>
    %cst_59 = arith.constant 1.000000e+00 : f32
    %222 = vector.broadcast %cst_59 : f32 to vector<8x128xf32>
    %223 = arith.subf %222, %215 : vector<8x128xf32>
    %224 = arith.mulf %223, %221 : vector<8x128xf32>
    %225 = arith.mulf %215, %199 : vector<8x128xf32>
    %226 = arith.addf %224, %225 : vector<8x128xf32>
    %227 = arith.addi %0, %c4_i32 : i32
    %228 = vector.broadcast %227 : i32 to vector<8x1xi32>
    %229 = arith.cmpi slt, %228, %4 : vector<8x1xi32>
    %cst_60 = arith.constant 0.000000e+00 : f32
    %230 = vector.shape_cast %229 : vector<8x1xi1> to vector<8x1xi1>
    %231 = vector.broadcast %230 : vector<8x1xi1> to vector<8x128xi1>
    %232 = vector.broadcast %cst_60 : f32 to vector<8x128xf32>
    %233 = arith.select %231, %226, %232 : vector<8x128xi1>, vector<8x128xf32>
    %234 = arith.index_cast %201 : i32 to index
    %c0_61 = arith.constant 0 : index
    %235 = vector.load %arg16[%234, %c0_61] : memref<64x128xf32, #tpu.memory_space<vmem>>, vector<8x128xf32>
    tpu.vector_store %arg16[%234, %c0_61], %233 {strides = array<i32>} : memref<64x128xf32, #tpu.memory_space<vmem>>, vector<8x128xf32>,
    %236 = vector.shape_cast %229 : vector<8x1xi1> to vector<8x1xi1>
    %237 = vector.broadcast %236 : vector<8x1xi1> to vector<8x128xi1>
    %238 = arith.select %237, %226, %199 : vector<8x128xi1>, vector<8x128xf32>
    %c5_i32 = arith.constant 5 : i32
    %c8_i32_62 = arith.constant 8 : i32
    %239 = arith.muli %c5_i32, %c8_i32_62 : i32
    %240 = tpu.assume_multiple %239, 8 : i32
    %241 = arith.index_cast %240 : i32 to index
    %c0_63 = arith.constant 0 : index
    %242 = vector.load %arg17[%241, %c0_63] : memref<64x384xf32, #tpu.memory_space<vmem>>, vector<8x384xf32>
    %243 = arith.truncf %238 : vector<8x128xf32> to vector<8x128xbf16>
    %cst_64 = arith.constant dense<0.000000e+00> : vector<8x384xf32>
    %244 = tpu.matmul %243, %38, %cst_64 {dimension_numbers = #tpu.dot_dimension_numbers<[1], [0], [0], [1], [0, 0, 1, 1], [], []>} : vector<8x128xbf16>, vector<128x384xbf16>, vector<8x384xf32> -> vector<8x384xf32>
    %245 = vector.extract_strided_slice %242 {offsets = [0, 0], sizes = [8, 256], strides = [1, 1]} : vector<8x384xf32> to vector<8x256xf32>
    %246 = vector.extract_strided_slice %244 {offsets = [0, 0], sizes = [8, 256], strides = [1, 1]} : vector<8x384xf32> to vector<8x256xf32>
    %247 = arith.addf %245, %246 : vector<8x256xf32>
    %248 = arith.negf %247 : vector<8x256xf32>
    %249 = math.exp %248 : vector<8x256xf32>
    %cst_65 = arith.constant 1.000000e+00 : f32
    %250 = vector.broadcast %cst_65 : f32 to vector<8x256xf32>
    %251 = arith.addf %250, %249 : vector<8x256xf32>
    %252 = arith.divf %250, %251 : vector<8x256xf32>
    %253 = vector.extract_strided_slice %252 {offsets = [0, 0], sizes = [8, 128], strides = [1, 1]} : vector<8x256xf32> to vector<8x128xf32>
    %254 = vector.extract_strided_slice %252 {offsets = [0, 128], sizes = [8, 128], strides = [1, 1]} : vector<8x256xf32> to vector<8x128xf32>
    %255 = vector.extract_strided_slice %242 {offsets = [0, 256], sizes = [8, 128], strides = [1, 1]} : vector<8x384xf32> to vector<8x128xf32>
    %256 = vector.extract_strided_slice %244 {offsets = [0, 256], sizes = [8, 128], strides = [1, 1]} : vector<8x384xf32> to vector<8x128xf32>
    %257 = arith.addf %256, %41 : vector<8x128xf32>
    %258 = arith.mulf %253, %257 : vector<8x128xf32>
    %259 = arith.addf %255, %258 : vector<8x128xf32>
    %260 = math.tanh %259 : vector<8x128xf32>
    %cst_66 = arith.constant 1.000000e+00 : f32
    %261 = vector.broadcast %cst_66 : f32 to vector<8x128xf32>
    %262 = arith.subf %261, %254 : vector<8x128xf32>
    %263 = arith.mulf %262, %260 : vector<8x128xf32>
    %264 = arith.mulf %254, %238 : vector<8x128xf32>
    %265 = arith.addf %263, %264 : vector<8x128xf32>
    %266 = arith.addi %0, %c5_i32 : i32
    %267 = vector.broadcast %266 : i32 to vector<8x1xi32>
    %268 = arith.cmpi slt, %267, %4 : vector<8x1xi32>
    %cst_67 = arith.constant 0.000000e+00 : f32
    %269 = vector.shape_cast %268 : vector<8x1xi1> to vector<8x1xi1>
    %270 = vector.broadcast %269 : vector<8x1xi1> to vector<8x128xi1>
    %271 = vector.broadcast %cst_67 : f32 to vector<8x128xf32>
    %272 = arith.select %270, %265, %271 : vector<8x128xi1>, vector<8x128xf32>
    %273 = arith.index_cast %240 : i32 to index
    %c0_68 = arith.constant 0 : index
    %274 = vector.load %arg16[%273, %c0_68] : memref<64x128xf32, #tpu.memory_space<vmem>>, vector<8x128xf32>
    tpu.vector_store %arg16[%273, %c0_68], %272 {strides = array<i32>} : memref<64x128xf32, #tpu.memory_space<vmem>>, vector<8x128xf32>,
    %275 = vector.shape_cast %268 : vector<8x1xi1> to vector<8x1xi1>
    %276 = vector.broadcast %275 : vector<8x1xi1> to vector<8x128xi1>
    %277 = arith.select %276, %265, %238 : vector<8x128xi1>, vector<8x128xf32>
    %c6_i32 = arith.constant 6 : i32
    %c8_i32_69 = arith.constant 8 : i32
    %278 = arith.muli %c6_i32, %c8_i32_69 : i32
    %279 = tpu.assume_multiple %278, 8 : i32
    %280 = arith.index_cast %279 : i32 to index
    %c0_70 = arith.constant 0 : index
    %281 = vector.load %arg17[%280, %c0_70] : memref<64x384xf32, #tpu.memory_space<vmem>>, vector<8x384xf32>
    %282 = arith.truncf %277 : vector<8x128xf32> to vector<8x128xbf16>
    %cst_71 = arith.constant dense<0.000000e+00> : vector<8x384xf32>
    %283 = tpu.matmul %282, %38, %cst_71 {dimension_numbers = #tpu.dot_dimension_numbers<[1], [0], [0], [1], [0, 0, 1, 1], [], []>} : vector<8x128xbf16>, vector<128x384xbf16>, vector<8x384xf32> -> vector<8x384xf32>
    %284 = vector.extract_strided_slice %281 {offsets = [0, 0], sizes = [8, 256], strides = [1, 1]} : vector<8x384xf32> to vector<8x256xf32>
    %285 = vector.extract_strided_slice %283 {offsets = [0, 0], sizes = [8, 256], strides = [1, 1]} : vector<8x384xf32> to vector<8x256xf32>
    %286 = arith.addf %284, %285 : vector<8x256xf32>
    %287 = arith.negf %286 : vector<8x256xf32>
    %288 = math.exp %287 : vector<8x256xf32>
    %cst_72 = arith.constant 1.000000e+00 : f32
    %289 = vector.broadcast %cst_72 : f32 to vector<8x256xf32>
    %290 = arith.addf %289, %288 : vector<8x256xf32>
    %291 = arith.divf %289, %290 : vector<8x256xf32>
    %292 = vector.extract_strided_slice %291 {offsets = [0, 0], sizes = [8, 128], strides = [1, 1]} : vector<8x256xf32> to vector<8x128xf32>
    %293 = vector.extract_strided_slice %291 {offsets = [0, 128], sizes = [8, 128], strides = [1, 1]} : vector<8x256xf32> to vector<8x128xf32>
    %294 = vector.extract_strided_slice %281 {offsets = [0, 256], sizes = [8, 128], strides = [1, 1]} : vector<8x384xf32> to vector<8x128xf32>
    %295 = vector.extract_strided_slice %283 {offsets = [0, 256], sizes = [8, 128], strides = [1, 1]} : vector<8x384xf32> to vector<8x128xf32>
    %296 = arith.addf %295, %41 : vector<8x128xf32>
    %297 = arith.mulf %292, %296 : vector<8x128xf32>
    %298 = arith.addf %294, %297 : vector<8x128xf32>
    %299 = math.tanh %298 : vector<8x128xf32>
    %cst_73 = arith.constant 1.000000e+00 : f32
    %300 = vector.broadcast %cst_73 : f32 to vector<8x128xf32>
    %301 = arith.subf %300, %293 : vector<8x128xf32>
    %302 = arith.mulf %301, %299 : vector<8x128xf32>
    %303 = arith.mulf %293, %277 : vector<8x128xf32>
    %304 = arith.addf %302, %303 : vector<8x128xf32>
    %305 = arith.addi %0, %c6_i32 : i32
    %306 = vector.broadcast %305 : i32 to vector<8x1xi32>
    %307 = arith.cmpi slt, %306, %4 : vector<8x1xi32>
    %cst_74 = arith.constant 0.000000e+00 : f32
    %308 = vector.shape_cast %307 : vector<8x1xi1> to vector<8x1xi1>
    %309 = vector.broadcast %308 : vector<8x1xi1> to vector<8x128xi1>
    %310 = vector.broadcast %cst_74 : f32 to vector<8x128xf32>
    %311 = arith.select %309, %304, %310 : vector<8x128xi1>, vector<8x128xf32>
    %312 = arith.index_cast %279 : i32 to index
    %c0_75 = arith.constant 0 : index
    %313 = vector.load %arg16[%312, %c0_75] : memref<64x128xf32, #tpu.memory_space<vmem>>, vector<8x128xf32>
    tpu.vector_store %arg16[%312, %c0_75], %311 {strides = array<i32>} : memref<64x128xf32, #tpu.memory_space<vmem>>, vector<8x128xf32>,
    %314 = vector.shape_cast %307 : vector<8x1xi1> to vector<8x1xi1>
    %315 = vector.broadcast %314 : vector<8x1xi1> to vector<8x128xi1>
    %316 = arith.select %315, %304, %277 : vector<8x128xi1>, vector<8x128xf32>
    %c7_i32 = arith.constant 7 : i32
    %c8_i32_76 = arith.constant 8 : i32
    %317 = arith.muli %c7_i32, %c8_i32_76 : i32
    %318 = tpu.assume_multiple %317, 8 : i32
    %319 = arith.index_cast %318 : i32 to index
    %c0_77 = arith.constant 0 : index
    %320 = vector.load %arg17[%319, %c0_77] : memref<64x384xf32, #tpu.memory_space<vmem>>, vector<8x384xf32>
    %321 = arith.truncf %316 : vector<8x128xf32> to vector<8x128xbf16>
    %cst_78 = arith.constant dense<0.000000e+00> : vector<8x384xf32>
    %322 = tpu.matmul %321, %38, %cst_78 {dimension_numbers = #tpu.dot_dimension_numbers<[1], [0], [0], [1], [0, 0, 1, 1], [], []>} : vector<8x128xbf16>, vector<128x384xbf16>, vector<8x384xf32> -> vector<8x384xf32>
    %323 = vector.extract_strided_slice %320 {offsets = [0, 0], sizes = [8, 256], strides = [1, 1]} : vector<8x384xf32> to vector<8x256xf32>
    %324 = vector.extract_strided_slice %322 {offsets = [0, 0], sizes = [8, 256], strides = [1, 1]} : vector<8x384xf32> to vector<8x256xf32>
    %325 = arith.addf %323, %324 : vector<8x256xf32>
    %326 = arith.negf %325 : vector<8x256xf32>
    %327 = math.exp %326 : vector<8x256xf32>
    %cst_79 = arith.constant 1.000000e+00 : f32
    %328 = vector.broadcast %cst_79 : f32 to vector<8x256xf32>
    %329 = arith.addf %328, %327 : vector<8x256xf32>
    %330 = arith.divf %328, %329 : vector<8x256xf32>
    %331 = vector.extract_strided_slice %330 {offsets = [0, 0], sizes = [8, 128], strides = [1, 1]} : vector<8x256xf32> to vector<8x128xf32>
    %332 = vector.extract_strided_slice %330 {offsets = [0, 128], sizes = [8, 128], strides = [1, 1]} : vector<8x256xf32> to vector<8x128xf32>
    %333 = vector.extract_strided_slice %320 {offsets = [0, 256], sizes = [8, 128], strides = [1, 1]} : vector<8x384xf32> to vector<8x128xf32>
    %334 = vector.extract_strided_slice %322 {offsets = [0, 256], sizes = [8, 128], strides = [1, 1]} : vector<8x384xf32> to vector<8x128xf32>
    %335 = arith.addf %334, %41 : vector<8x128xf32>
    %336 = arith.mulf %331, %335 : vector<8x128xf32>
    %337 = arith.addf %333, %336 : vector<8x128xf32>
    %338 = math.tanh %337 : vector<8x128xf32>
    %cst_80 = arith.constant 1.000000e+00 : f32
    %339 = vector.broadcast %cst_80 : f32 to vector<8x128xf32>
    %340 = arith.subf %339, %332 : vector<8x128xf32>
    %341 = arith.mulf %340, %338 : vector<8x128xf32>
    %342 = arith.mulf %332, %316 : vector<8x128xf32>
    %343 = arith.addf %341, %342 : vector<8x128xf32>
    %344 = arith.addi %0, %c7_i32 : i32
    %345 = vector.broadcast %344 : i32 to vector<8x1xi32>
    %346 = arith.cmpi slt, %345, %4 : vector<8x1xi32>
    %cst_81 = arith.constant 0.000000e+00 : f32
    %347 = vector.shape_cast %346 : vector<8x1xi1> to vector<8x1xi1>
    %348 = vector.broadcast %347 : vector<8x1xi1> to vector<8x128xi1>
    %349 = vector.broadcast %cst_81 : f32 to vector<8x128xf32>
    %350 = arith.select %348, %343, %349 : vector<8x128xi1>, vector<8x128xf32>
    %351 = arith.index_cast %318 : i32 to index
    %c0_82 = arith.constant 0 : index
    %352 = vector.load %arg16[%351, %c0_82] : memref<64x128xf32, #tpu.memory_space<vmem>>, vector<8x128xf32>
    tpu.vector_store %arg16[%351, %c0_82], %350 {strides = array<i32>} : memref<64x128xf32, #tpu.memory_space<vmem>>, vector<8x128xf32>,
    %353 = vector.shape_cast %346 : vector<8x1xi1> to vector<8x1xi1>
    %354 = vector.broadcast %353 : vector<8x1xi1> to vector<8x128xi1>
    %355 = arith.select %354, %343, %316 : vector<8x128xi1>, vector<8x128xf32>
    %c8_i32_83 = arith.constant 8 : i32
    %c0_84 = arith.constant 0 : index
    %c0_85 = arith.constant 0 : index
    %c0_86 = arith.constant 0 : index
    %356 = vector.load %arg15[%c0_84, %c0_85, %c0_86] : memref<2x8x128xf32, #tpu.memory_space<vmem>>, vector<1x8x128xf32>
    %357 = vector.shape_cast %356 : vector<1x8x128xf32> to vector<8x128xf32>
    %358 = vector.shape_cast %355 : vector<8x128xf32> to vector<1x8x128xf32>
    tpu.vector_store %arg15[%c0_84, %c0_85, %c0_86], %358 {strides = array<i32>} : memref<2x8x128xf32, #tpu.memory_space<vmem>>, vector<1x8x128xf32>,
    %c0_87 = arith.constant 0 : index
    %c0_88 = arith.constant 0 : index
    %359 = vector.load %arg16[%c0_87, %c0_88] : memref<64x128xf32, #tpu.memory_space<vmem>>, vector<64x128xf32>
    %360 = arith.truncf %359 : vector<64x128xf32> to vector<64x128xbf16>
    %c0_89 = arith.constant 0 : index
    %c0_90 = arith.constant 0 : index
    %361 = vector.load %arg9[%c0_89, %c0_90] : memref<128x384xbf16, #tpu.memory_space<vmem>>, vector<128x384xbf16>
    %cst_91 = arith.constant dense<0.000000e+00> : vector<64x384xf32>
    %362 = tpu.matmul %360, %361, %cst_91 {dimension_numbers = #tpu.dot_dimension_numbers<[1], [0], [0], [1], [0, 0, 1, 1], [], []>} : vector<64x128xbf16>, vector<128x384xbf16>, vector<64x384xf32> -> vector<64x384xf32>
    %c0_92 = arith.constant 0 : index
    %c0_93 = arith.constant 0 : index
    %363 = vector.load %arg11[%c0_92, %c0_93] : memref<1x384xf32, #tpu.memory_space<vmem>>, vector<1x384xf32>
    %364 = vector.broadcast %363 : vector<1x384xf32> to vector<64x384xf32>
    %365 = arith.addf %362, %364 : vector<64x384xf32>
    %c0_94 = arith.constant 0 : index
    %c0_95 = arith.constant 0 : index
    %366 = vector.load %arg17[%c0_94, %c0_95] : memref<64x384xf32, #tpu.memory_space<vmem>>, vector<64x384xf32>
    tpu.vector_store %arg17[%c0_94, %c0_95], %365 {strides = array<i32>} : memref<64x384xf32, #tpu.memory_space<vmem>>, vector<64x384xf32>,
    %c0_96 = arith.constant 0 : index
    %c0_97 = arith.constant 0 : index
    %367 = vector.load %arg10[%c0_96, %c0_97] : memref<128x384xbf16, #tpu.memory_space<vmem>>, vector<128x384xbf16>
    %c0_98 = arith.constant 0 : index
    %c0_99 = arith.constant 0 : index
    %368 = vector.load %arg12[%c0_98, %c0_99] : memref<1x128xf32, #tpu.memory_space<vmem>>, vector<1x128xf32>
    %369 = vector.shape_cast %368 : vector<1x128xf32> to vector<1x128xf32>
    %370 = vector.broadcast %369 : vector<1x128xf32> to vector<8x128xf32>
    %c1 = arith.constant 1 : index
    %c0_100 = arith.constant 0 : index
    %c0_101 = arith.constant 0 : index
    %371 = vector.load %arg15[%c1, %c0_100, %c0_101] : memref<2x8x128xf32, #tpu.memory_space<vmem>>, vector<1x8x128xf32>
    %372 = vector.shape_cast %371 : vector<1x8x128xf32> to vector<8x128xf32>
    %c0_i32_102 = arith.constant 0 : i32
    %c8_i32_103 = arith.constant 8 : i32
    %373 = arith.muli %c0_i32_102, %c8_i32_103 : i32
    %374 = tpu.assume_multiple %373, 8 : i32
    %375 = arith.index_cast %374 : i32 to index
    %c0_104 = arith.constant 0 : index
    %376 = vector.load %arg17[%375, %c0_104] : memref<64x384xf32, #tpu.memory_space<vmem>>, vector<8x384xf32>
    %377 = arith.truncf %372 : vector<8x128xf32> to vector<8x128xbf16>
    %cst_105 = arith.constant dense<0.000000e+00> : vector<8x384xf32>
    %378 = tpu.matmul %377, %367, %cst_105 {dimension_numbers = #tpu.dot_dimension_numbers<[1], [0], [0], [1], [0, 0, 1, 1], [], []>} : vector<8x128xbf16>, vector<128x384xbf16>, vector<8x384xf32> -> vector<8x384xf32>
    %379 = vector.extract_strided_slice %376 {offsets = [0, 0], sizes = [8, 256], strides = [1, 1]} : vector<8x384xf32> to vector<8x256xf32>
    %380 = vector.extract_strided_slice %378 {offsets = [0, 0], sizes = [8, 256], strides = [1, 1]} : vector<8x384xf32> to vector<8x256xf32>
    %381 = arith.addf %379, %380 : vector<8x256xf32>
    %382 = arith.negf %381 : vector<8x256xf32>
    %383 = math.exp %382 : vector<8x256xf32>
    %cst_106 = arith.constant 1.000000e+00 : f32
    %384 = vector.broadcast %cst_106 : f32 to vector<8x256xf32>
    %385 = arith.addf %384, %383 : vector<8x256xf32>
    %386 = arith.divf %384, %385 : vector<8x256xf32>
    %387 = vector.extract_strided_slice %386 {offsets = [0, 0], sizes = [8, 128], strides = [1, 1]} : vector<8x256xf32> to vector<8x128xf32>
    %388 = vector.extract_strided_slice %386 {offsets = [0, 128], sizes = [8, 128], strides = [1, 1]} : vector<8x256xf32> to vector<8x128xf32>
    %389 = vector.extract_strided_slice %376 {offsets = [0, 256], sizes = [8, 128], strides = [1, 1]} : vector<8x384xf32> to vector<8x128xf32>
    %390 = vector.extract_strided_slice %378 {offsets = [0, 256], sizes = [8, 128], strides = [1, 1]} : vector<8x384xf32> to vector<8x128xf32>
    %391 = arith.addf %390, %370 : vector<8x128xf32>
    %392 = arith.mulf %387, %391 : vector<8x128xf32>
    %393 = arith.addf %389, %392 : vector<8x128xf32>
    %394 = math.tanh %393 : vector<8x128xf32>
    %cst_107 = arith.constant 1.000000e+00 : f32
    %395 = vector.broadcast %cst_107 : f32 to vector<8x128xf32>
    %396 = arith.subf %395, %388 : vector<8x128xf32>
    %397 = arith.mulf %396, %394 : vector<8x128xf32>
    %398 = arith.mulf %388, %372 : vector<8x128xf32>
    %399 = arith.addf %397, %398 : vector<8x128xf32>
    %400 = arith.addi %0, %c0_i32_102 : i32
    %401 = vector.broadcast %400 : i32 to vector<8x1xi32>
    %402 = arith.cmpi slt, %401, %4 : vector<8x1xi32>
    %cst_108 = arith.constant 0.000000e+00 : f32
    %403 = vector.shape_cast %402 : vector<8x1xi1> to vector<8x1xi1>
    %404 = vector.broadcast %403 : vector<8x1xi1> to vector<8x128xi1>
    %405 = vector.broadcast %cst_108 : f32 to vector<8x128xf32>
    %406 = arith.select %404, %399, %405 : vector<8x128xi1>, vector<8x128xf32>
    %407 = arith.index_cast %374 : i32 to index
    %c0_109 = arith.constant 0 : index
    %408 = vector.load %arg13[%407, %c0_109] : memref<64x128xf32, #tpu.memory_space<vmem>>, vector<8x128xf32>
    tpu.vector_store %arg13[%407, %c0_109], %406 {strides = array<i32>} : memref<64x128xf32, #tpu.memory_space<vmem>>, vector<8x128xf32>,
    %409 = vector.shape_cast %402 : vector<8x1xi1> to vector<8x1xi1>
    %410 = vector.broadcast %409 : vector<8x1xi1> to vector<8x128xi1>
    %411 = arith.select %410, %399, %372 : vector<8x128xi1>, vector<8x128xf32>
    %c1_i32_110 = arith.constant 1 : i32
    %c8_i32_111 = arith.constant 8 : i32
    %412 = arith.muli %c1_i32_110, %c8_i32_111 : i32
    %413 = tpu.assume_multiple %412, 8 : i32
    %414 = arith.index_cast %413 : i32 to index
    %c0_112 = arith.constant 0 : index
    %415 = vector.load %arg17[%414, %c0_112] : memref<64x384xf32, #tpu.memory_space<vmem>>, vector<8x384xf32>
    %416 = arith.truncf %411 : vector<8x128xf32> to vector<8x128xbf16>
    %cst_113 = arith.constant dense<0.000000e+00> : vector<8x384xf32>
    %417 = tpu.matmul %416, %367, %cst_113 {dimension_numbers = #tpu.dot_dimension_numbers<[1], [0], [0], [1], [0, 0, 1, 1], [], []>} : vector<8x128xbf16>, vector<128x384xbf16>, vector<8x384xf32> -> vector<8x384xf32>
    %418 = vector.extract_strided_slice %415 {offsets = [0, 0], sizes = [8, 256], strides = [1, 1]} : vector<8x384xf32> to vector<8x256xf32>
    %419 = vector.extract_strided_slice %417 {offsets = [0, 0], sizes = [8, 256], strides = [1, 1]} : vector<8x384xf32> to vector<8x256xf32>
    %420 = arith.addf %418, %419 : vector<8x256xf32>
    %421 = arith.negf %420 : vector<8x256xf32>
    %422 = math.exp %421 : vector<8x256xf32>
    %cst_114 = arith.constant 1.000000e+00 : f32
    %423 = vector.broadcast %cst_114 : f32 to vector<8x256xf32>
    %424 = arith.addf %423, %422 : vector<8x256xf32>
    %425 = arith.divf %423, %424 : vector<8x256xf32>
    %426 = vector.extract_strided_slice %425 {offsets = [0, 0], sizes = [8, 128], strides = [1, 1]} : vector<8x256xf32> to vector<8x128xf32>
    %427 = vector.extract_strided_slice %425 {offsets = [0, 128], sizes = [8, 128], strides = [1, 1]} : vector<8x256xf32> to vector<8x128xf32>
    %428 = vector.extract_strided_slice %415 {offsets = [0, 256], sizes = [8, 128], strides = [1, 1]} : vector<8x384xf32> to vector<8x128xf32>
    %429 = vector.extract_strided_slice %417 {offsets = [0, 256], sizes = [8, 128], strides = [1, 1]} : vector<8x384xf32> to vector<8x128xf32>
    %430 = arith.addf %429, %370 : vector<8x128xf32>
    %431 = arith.mulf %426, %430 : vector<8x128xf32>
    %432 = arith.addf %428, %431 : vector<8x128xf32>
    %433 = math.tanh %432 : vector<8x128xf32>
    %cst_115 = arith.constant 1.000000e+00 : f32
    %434 = vector.broadcast %cst_115 : f32 to vector<8x128xf32>
    %435 = arith.subf %434, %427 : vector<8x128xf32>
    %436 = arith.mulf %435, %433 : vector<8x128xf32>
    %437 = arith.mulf %427, %411 : vector<8x128xf32>
    %438 = arith.addf %436, %437 : vector<8x128xf32>
    %439 = arith.addi %0, %c1_i32_110 : i32
    %440 = vector.broadcast %439 : i32 to vector<8x1xi32>
    %441 = arith.cmpi slt, %440, %4 : vector<8x1xi32>
    %cst_116 = arith.constant 0.000000e+00 : f32
    %442 = vector.shape_cast %441 : vector<8x1xi1> to vector<8x1xi1>
    %443 = vector.broadcast %442 : vector<8x1xi1> to vector<8x128xi1>
    %444 = vector.broadcast %cst_116 : f32 to vector<8x128xf32>
    %445 = arith.select %443, %438, %444 : vector<8x128xi1>, vector<8x128xf32>
    %446 = arith.index_cast %413 : i32 to index
    %c0_117 = arith.constant 0 : index
    %447 = vector.load %arg13[%446, %c0_117] : memref<64x128xf32, #tpu.memory_space<vmem>>, vector<8x128xf32>
    tpu.vector_store %arg13[%446, %c0_117], %445 {strides = array<i32>} : memref<64x128xf32, #tpu.memory_space<vmem>>, vector<8x128xf32>,
    %448 = vector.shape_cast %441 : vector<8x1xi1> to vector<8x1xi1>
    %449 = vector.broadcast %448 : vector<8x1xi1> to vector<8x128xi1>
    %450 = arith.select %449, %438, %411 : vector<8x128xi1>, vector<8x128xf32>
    %c2_i32_118 = arith.constant 2 : i32
    %c8_i32_119 = arith.constant 8 : i32
    %451 = arith.muli %c2_i32_118, %c8_i32_119 : i32
    %452 = tpu.assume_multiple %451, 8 : i32
    %453 = arith.index_cast %452 : i32 to index
    %c0_120 = arith.constant 0 : index
    %454 = vector.load %arg17[%453, %c0_120] : memref<64x384xf32, #tpu.memory_space<vmem>>, vector<8x384xf32>
    %455 = arith.truncf %450 : vector<8x128xf32> to vector<8x128xbf16>
    %cst_121 = arith.constant dense<0.000000e+00> : vector<8x384xf32>
    %456 = tpu.matmul %455, %367, %cst_121 {dimension_numbers = #tpu.dot_dimension_numbers<[1], [0], [0], [1], [0, 0, 1, 1], [], []>} : vector<8x128xbf16>, vector<128x384xbf16>, vector<8x384xf32> -> vector<8x384xf32>
    %457 = vector.extract_strided_slice %454 {offsets = [0, 0], sizes = [8, 256], strides = [1, 1]} : vector<8x384xf32> to vector<8x256xf32>
    %458 = vector.extract_strided_slice %456 {offsets = [0, 0], sizes = [8, 256], strides = [1, 1]} : vector<8x384xf32> to vector<8x256xf32>
    %459 = arith.addf %457, %458 : vector<8x256xf32>
    %460 = arith.negf %459 : vector<8x256xf32>
    %461 = math.exp %460 : vector<8x256xf32>
    %cst_122 = arith.constant 1.000000e+00 : f32
    %462 = vector.broadcast %cst_122 : f32 to vector<8x256xf32>
    %463 = arith.addf %462, %461 : vector<8x256xf32>
    %464 = arith.divf %462, %463 : vector<8x256xf32>
    %465 = vector.extract_strided_slice %464 {offsets = [0, 0], sizes = [8, 128], strides = [1, 1]} : vector<8x256xf32> to vector<8x128xf32>
    %466 = vector.extract_strided_slice %464 {offsets = [0, 128], sizes = [8, 128], strides = [1, 1]} : vector<8x256xf32> to vector<8x128xf32>
    %467 = vector.extract_strided_slice %454 {offsets = [0, 256], sizes = [8, 128], strides = [1, 1]} : vector<8x384xf32> to vector<8x128xf32>
    %468 = vector.extract_strided_slice %456 {offsets = [0, 256], sizes = [8, 128], strides = [1, 1]} : vector<8x384xf32> to vector<8x128xf32>
    %469 = arith.addf %468, %370 : vector<8x128xf32>
    %470 = arith.mulf %465, %469 : vector<8x128xf32>
    %471 = arith.addf %467, %470 : vector<8x128xf32>
    %472 = math.tanh %471 : vector<8x128xf32>
    %cst_123 = arith.constant 1.000000e+00 : f32
    %473 = vector.broadcast %cst_123 : f32 to vector<8x128xf32>
    %474 = arith.subf %473, %466 : vector<8x128xf32>
    %475 = arith.mulf %474, %472 : vector<8x128xf32>
    %476 = arith.mulf %466, %450 : vector<8x128xf32>
    %477 = arith.addf %475, %476 : vector<8x128xf32>
    %478 = arith.addi %0, %c2_i32_118 : i32
    %479 = vector.broadcast %478 : i32 to vector<8x1xi32>
    %480 = arith.cmpi slt, %479, %4 : vector<8x1xi32>
    %cst_124 = arith.constant 0.000000e+00 : f32
    %481 = vector.shape_cast %480 : vector<8x1xi1> to vector<8x1xi1>
    %482 = vector.broadcast %481 : vector<8x1xi1> to vector<8x128xi1>
    %483 = vector.broadcast %cst_124 : f32 to vector<8x128xf32>
    %484 = arith.select %482, %477, %483 : vector<8x128xi1>, vector<8x128xf32>
    %485 = arith.index_cast %452 : i32 to index
    %c0_125 = arith.constant 0 : index
    %486 = vector.load %arg13[%485, %c0_125] : memref<64x128xf32, #tpu.memory_space<vmem>>, vector<8x128xf32>
    tpu.vector_store %arg13[%485, %c0_125], %484 {strides = array<i32>} : memref<64x128xf32, #tpu.memory_space<vmem>>, vector<8x128xf32>,
    %487 = vector.shape_cast %480 : vector<8x1xi1> to vector<8x1xi1>
    %488 = vector.broadcast %487 : vector<8x1xi1> to vector<8x128xi1>
    %489 = arith.select %488, %477, %450 : vector<8x128xi1>, vector<8x128xf32>
    %c3_i32_126 = arith.constant 3 : i32
    %c8_i32_127 = arith.constant 8 : i32
    %490 = arith.muli %c3_i32_126, %c8_i32_127 : i32
    %491 = tpu.assume_multiple %490, 8 : i32
    %492 = arith.index_cast %491 : i32 to index
    %c0_128 = arith.constant 0 : index
    %493 = vector.load %arg17[%492, %c0_128] : memref<64x384xf32, #tpu.memory_space<vmem>>, vector<8x384xf32>
    %494 = arith.truncf %489 : vector<8x128xf32> to vector<8x128xbf16>
    %cst_129 = arith.constant dense<0.000000e+00> : vector<8x384xf32>
    %495 = tpu.matmul %494, %367, %cst_129 {dimension_numbers = #tpu.dot_dimension_numbers<[1], [0], [0], [1], [0, 0, 1, 1], [], []>} : vector<8x128xbf16>, vector<128x384xbf16>, vector<8x384xf32> -> vector<8x384xf32>
    %496 = vector.extract_strided_slice %493 {offsets = [0, 0], sizes = [8, 256], strides = [1, 1]} : vector<8x384xf32> to vector<8x256xf32>
    %497 = vector.extract_strided_slice %495 {offsets = [0, 0], sizes = [8, 256], strides = [1, 1]} : vector<8x384xf32> to vector<8x256xf32>
    %498 = arith.addf %496, %497 : vector<8x256xf32>
    %499 = arith.negf %498 : vector<8x256xf32>
    %500 = math.exp %499 : vector<8x256xf32>
    %cst_130 = arith.constant 1.000000e+00 : f32
    %501 = vector.broadcast %cst_130 : f32 to vector<8x256xf32>
    %502 = arith.addf %501, %500 : vector<8x256xf32>
    %503 = arith.divf %501, %502 : vector<8x256xf32>
    %504 = vector.extract_strided_slice %503 {offsets = [0, 0], sizes = [8, 128], strides = [1, 1]} : vector<8x256xf32> to vector<8x128xf32>
    %505 = vector.extract_strided_slice %503 {offsets = [0, 128], sizes = [8, 128], strides = [1, 1]} : vector<8x256xf32> to vector<8x128xf32>
    %506 = vector.extract_strided_slice %493 {offsets = [0, 256], sizes = [8, 128], strides = [1, 1]} : vector<8x384xf32> to vector<8x128xf32>
    %507 = vector.extract_strided_slice %495 {offsets = [0, 256], sizes = [8, 128], strides = [1, 1]} : vector<8x384xf32> to vector<8x128xf32>
    %508 = arith.addf %507, %370 : vector<8x128xf32>
    %509 = arith.mulf %504, %508 : vector<8x128xf32>
    %510 = arith.addf %506, %509 : vector<8x128xf32>
    %511 = math.tanh %510 : vector<8x128xf32>
    %cst_131 = arith.constant 1.000000e+00 : f32
    %512 = vector.broadcast %cst_131 : f32 to vector<8x128xf32>
    %513 = arith.subf %512, %505 : vector<8x128xf32>
    %514 = arith.mulf %513, %511 : vector<8x128xf32>
    %515 = arith.mulf %505, %489 : vector<8x128xf32>
    %516 = arith.addf %514, %515 : vector<8x128xf32>
    %517 = arith.addi %0, %c3_i32_126 : i32
    %518 = vector.broadcast %517 : i32 to vector<8x1xi32>
    %519 = arith.cmpi slt, %518, %4 : vector<8x1xi32>
    %cst_132 = arith.constant 0.000000e+00 : f32
    %520 = vector.shape_cast %519 : vector<8x1xi1> to vector<8x1xi1>
    %521 = vector.broadcast %520 : vector<8x1xi1> to vector<8x128xi1>
    %522 = vector.broadcast %cst_132 : f32 to vector<8x128xf32>
    %523 = arith.select %521, %516, %522 : vector<8x128xi1>, vector<8x128xf32>
    %524 = arith.index_cast %491 : i32 to index
    %c0_133 = arith.constant 0 : index
    %525 = vector.load %arg13[%524, %c0_133] : memref<64x128xf32, #tpu.memory_space<vmem>>, vector<8x128xf32>
    tpu.vector_store %arg13[%524, %c0_133], %523 {strides = array<i32>} : memref<64x128xf32, #tpu.memory_space<vmem>>, vector<8x128xf32>,
    %526 = vector.shape_cast %519 : vector<8x1xi1> to vector<8x1xi1>
    %527 = vector.broadcast %526 : vector<8x1xi1> to vector<8x128xi1>
    %528 = arith.select %527, %516, %489 : vector<8x128xi1>, vector<8x128xf32>
    %c4_i32_134 = arith.constant 4 : i32
    %c8_i32_135 = arith.constant 8 : i32
    %529 = arith.muli %c4_i32_134, %c8_i32_135 : i32
    %530 = tpu.assume_multiple %529, 8 : i32
    %531 = arith.index_cast %530 : i32 to index
    %c0_136 = arith.constant 0 : index
    %532 = vector.load %arg17[%531, %c0_136] : memref<64x384xf32, #tpu.memory_space<vmem>>, vector<8x384xf32>
    %533 = arith.truncf %528 : vector<8x128xf32> to vector<8x128xbf16>
    %cst_137 = arith.constant dense<0.000000e+00> : vector<8x384xf32>
    %534 = tpu.matmul %533, %367, %cst_137 {dimension_numbers = #tpu.dot_dimension_numbers<[1], [0], [0], [1], [0, 0, 1, 1], [], []>} : vector<8x128xbf16>, vector<128x384xbf16>, vector<8x384xf32> -> vector<8x384xf32>
    %535 = vector.extract_strided_slice %532 {offsets = [0, 0], sizes = [8, 256], strides = [1, 1]} : vector<8x384xf32> to vector<8x256xf32>
    %536 = vector.extract_strided_slice %534 {offsets = [0, 0], sizes = [8, 256], strides = [1, 1]} : vector<8x384xf32> to vector<8x256xf32>
    %537 = arith.addf %535, %536 : vector<8x256xf32>
    %538 = arith.negf %537 : vector<8x256xf32>
    %539 = math.exp %538 : vector<8x256xf32>
    %cst_138 = arith.constant 1.000000e+00 : f32
    %540 = vector.broadcast %cst_138 : f32 to vector<8x256xf32>
    %541 = arith.addf %540, %539 : vector<8x256xf32>
    %542 = arith.divf %540, %541 : vector<8x256xf32>
    %543 = vector.extract_strided_slice %542 {offsets = [0, 0], sizes = [8, 128], strides = [1, 1]} : vector<8x256xf32> to vector<8x128xf32>
    %544 = vector.extract_strided_slice %542 {offsets = [0, 128], sizes = [8, 128], strides = [1, 1]} : vector<8x256xf32> to vector<8x128xf32>
    %545 = vector.extract_strided_slice %532 {offsets = [0, 256], sizes = [8, 128], strides = [1, 1]} : vector<8x384xf32> to vector<8x128xf32>
    %546 = vector.extract_strided_slice %534 {offsets = [0, 256], sizes = [8, 128], strides = [1, 1]} : vector<8x384xf32> to vector<8x128xf32>
    %547 = arith.addf %546, %370 : vector<8x128xf32>
    %548 = arith.mulf %543, %547 : vector<8x128xf32>
    %549 = arith.addf %545, %548 : vector<8x128xf32>
    %550 = math.tanh %549 : vector<8x128xf32>
    %cst_139 = arith.constant 1.000000e+00 : f32
    %551 = vector.broadcast %cst_139 : f32 to vector<8x128xf32>
    %552 = arith.subf %551, %544 : vector<8x128xf32>
    %553 = arith.mulf %552, %550 : vector<8x128xf32>
    %554 = arith.mulf %544, %528 : vector<8x128xf32>
    %555 = arith.addf %553, %554 : vector<8x128xf32>
    %556 = arith.addi %0, %c4_i32_134 : i32
    %557 = vector.broadcast %556 : i32 to vector<8x1xi32>
    %558 = arith.cmpi slt, %557, %4 : vector<8x1xi32>
    %cst_140 = arith.constant 0.000000e+00 : f32
    %559 = vector.shape_cast %558 : vector<8x1xi1> to vector<8x1xi1>
    %560 = vector.broadcast %559 : vector<8x1xi1> to vector<8x128xi1>
    %561 = vector.broadcast %cst_140 : f32 to vector<8x128xf32>
    %562 = arith.select %560, %555, %561 : vector<8x128xi1>, vector<8x128xf32>
    %563 = arith.index_cast %530 : i32 to index
    %c0_141 = arith.constant 0 : index
    %564 = vector.load %arg13[%563, %c0_141] : memref<64x128xf32, #tpu.memory_space<vmem>>, vector<8x128xf32>
    tpu.vector_store %arg13[%563, %c0_141], %562 {strides = array<i32>} : memref<64x128xf32, #tpu.memory_space<vmem>>, vector<8x128xf32>,
    %565 = vector.shape_cast %558 : vector<8x1xi1> to vector<8x1xi1>
    %566 = vector.broadcast %565 : vector<8x1xi1> to vector<8x128xi1>
    %567 = arith.select %566, %555, %528 : vector<8x128xi1>, vector<8x128xf32>
    %c5_i32_142 = arith.constant 5 : i32
    %c8_i32_143 = arith.constant 8 : i32
    %568 = arith.muli %c5_i32_142, %c8_i32_143 : i32
    %569 = tpu.assume_multiple %568, 8 : i32
    %570 = arith.index_cast %569 : i32 to index
    %c0_144 = arith.constant 0 : index
    %571 = vector.load %arg17[%570, %c0_144] : memref<64x384xf32, #tpu.memory_space<vmem>>, vector<8x384xf32>
    %572 = arith.truncf %567 : vector<8x128xf32> to vector<8x128xbf16>
    %cst_145 = arith.constant dense<0.000000e+00> : vector<8x384xf32>
    %573 = tpu.matmul %572, %367, %cst_145 {dimension_numbers = #tpu.dot_dimension_numbers<[1], [0], [0], [1], [0, 0, 1, 1], [], []>} : vector<8x128xbf16>, vector<128x384xbf16>, vector<8x384xf32> -> vector<8x384xf32>
    %574 = vector.extract_strided_slice %571 {offsets = [0, 0], sizes = [8, 256], strides = [1, 1]} : vector<8x384xf32> to vector<8x256xf32>
    %575 = vector.extract_strided_slice %573 {offsets = [0, 0], sizes = [8, 256], strides = [1, 1]} : vector<8x384xf32> to vector<8x256xf32>
    %576 = arith.addf %574, %575 : vector<8x256xf32>
    %577 = arith.negf %576 : vector<8x256xf32>
    %578 = math.exp %577 : vector<8x256xf32>
    %cst_146 = arith.constant 1.000000e+00 : f32
    %579 = vector.broadcast %cst_146 : f32 to vector<8x256xf32>
    %580 = arith.addf %579, %578 : vector<8x256xf32>
    %581 = arith.divf %579, %580 : vector<8x256xf32>
    %582 = vector.extract_strided_slice %581 {offsets = [0, 0], sizes = [8, 128], strides = [1, 1]} : vector<8x256xf32> to vector<8x128xf32>
    %583 = vector.extract_strided_slice %581 {offsets = [0, 128], sizes = [8, 128], strides = [1, 1]} : vector<8x256xf32> to vector<8x128xf32>
    %584 = vector.extract_strided_slice %571 {offsets = [0, 256], sizes = [8, 128], strides = [1, 1]} : vector<8x384xf32> to vector<8x128xf32>
    %585 = vector.extract_strided_slice %573 {offsets = [0, 256], sizes = [8, 128], strides = [1, 1]} : vector<8x384xf32> to vector<8x128xf32>
    %586 = arith.addf %585, %370 : vector<8x128xf32>
    %587 = arith.mulf %582, %586 : vector<8x128xf32>
    %588 = arith.addf %584, %587 : vector<8x128xf32>
    %589 = math.tanh %588 : vector<8x128xf32>
    %cst_147 = arith.constant 1.000000e+00 : f32
    %590 = vector.broadcast %cst_147 : f32 to vector<8x128xf32>
    %591 = arith.subf %590, %583 : vector<8x128xf32>
    %592 = arith.mulf %591, %589 : vector<8x128xf32>
    %593 = arith.mulf %583, %567 : vector<8x128xf32>
    %594 = arith.addf %592, %593 : vector<8x128xf32>
    %595 = arith.addi %0, %c5_i32_142 : i32
    %596 = vector.broadcast %595 : i32 to vector<8x1xi32>
    %597 = arith.cmpi slt, %596, %4 : vector<8x1xi32>
    %cst_148 = arith.constant 0.000000e+00 : f32
    %598 = vector.shape_cast %597 : vector<8x1xi1> to vector<8x1xi1>
    %599 = vector.broadcast %598 : vector<8x1xi1> to vector<8x128xi1>
    %600 = vector.broadcast %cst_148 : f32 to vector<8x128xf32>
    %601 = arith.select %599, %594, %600 : vector<8x128xi1>, vector<8x128xf32>
    %602 = arith.index_cast %569 : i32 to index
    %c0_149 = arith.constant 0 : index
    %603 = vector.load %arg13[%602, %c0_149] : memref<64x128xf32, #tpu.memory_space<vmem>>, vector<8x128xf32>
    tpu.vector_store %arg13[%602, %c0_149], %601 {strides = array<i32>} : memref<64x128xf32, #tpu.memory_space<vmem>>, vector<8x128xf32>,
    %604 = vector.shape_cast %597 : vector<8x1xi1> to vector<8x1xi1>
    %605 = vector.broadcast %604 : vector<8x1xi1> to vector<8x128xi1>
    %606 = arith.select %605, %594, %567 : vector<8x128xi1>, vector<8x128xf32>
    %c6_i32_150 = arith.constant 6 : i32
    %c8_i32_151 = arith.constant 8 : i32
    %607 = arith.muli %c6_i32_150, %c8_i32_151 : i32
    %608 = tpu.assume_multiple %607, 8 : i32
    %609 = arith.index_cast %608 : i32 to index
    %c0_152 = arith.constant 0 : index
    %610 = vector.load %arg17[%609, %c0_152] : memref<64x384xf32, #tpu.memory_space<vmem>>, vector<8x384xf32>
    %611 = arith.truncf %606 : vector<8x128xf32> to vector<8x128xbf16>
    %cst_153 = arith.constant dense<0.000000e+00> : vector<8x384xf32>
    %612 = tpu.matmul %611, %367, %cst_153 {dimension_numbers = #tpu.dot_dimension_numbers<[1], [0], [0], [1], [0, 0, 1, 1], [], []>} : vector<8x128xbf16>, vector<128x384xbf16>, vector<8x384xf32> -> vector<8x384xf32>
    %613 = vector.extract_strided_slice %610 {offsets = [0, 0], sizes = [8, 256], strides = [1, 1]} : vector<8x384xf32> to vector<8x256xf32>
    %614 = vector.extract_strided_slice %612 {offsets = [0, 0], sizes = [8, 256], strides = [1, 1]} : vector<8x384xf32> to vector<8x256xf32>
    %615 = arith.addf %613, %614 : vector<8x256xf32>
    %616 = arith.negf %615 : vector<8x256xf32>
    %617 = math.exp %616 : vector<8x256xf32>
    %cst_154 = arith.constant 1.000000e+00 : f32
    %618 = vector.broadcast %cst_154 : f32 to vector<8x256xf32>
    %619 = arith.addf %618, %617 : vector<8x256xf32>
    %620 = arith.divf %618, %619 : vector<8x256xf32>
    %621 = vector.extract_strided_slice %620 {offsets = [0, 0], sizes = [8, 128], strides = [1, 1]} : vector<8x256xf32> to vector<8x128xf32>
    %622 = vector.extract_strided_slice %620 {offsets = [0, 128], sizes = [8, 128], strides = [1, 1]} : vector<8x256xf32> to vector<8x128xf32>
    %623 = vector.extract_strided_slice %610 {offsets = [0, 256], sizes = [8, 128], strides = [1, 1]} : vector<8x384xf32> to vector<8x128xf32>
    %624 = vector.extract_strided_slice %612 {offsets = [0, 256], sizes = [8, 128], strides = [1, 1]} : vector<8x384xf32> to vector<8x128xf32>
    %625 = arith.addf %624, %370 : vector<8x128xf32>
    %626 = arith.mulf %621, %625 : vector<8x128xf32>
    %627 = arith.addf %623, %626 : vector<8x128xf32>
    %628 = math.tanh %627 : vector<8x128xf32>
    %cst_155 = arith.constant 1.000000e+00 : f32
    %629 = vector.broadcast %cst_155 : f32 to vector<8x128xf32>
    %630 = arith.subf %629, %622 : vector<8x128xf32>
    %631 = arith.mulf %630, %628 : vector<8x128xf32>
    %632 = arith.mulf %622, %606 : vector<8x128xf32>
    %633 = arith.addf %631, %632 : vector<8x128xf32>
    %634 = arith.addi %0, %c6_i32_150 : i32
    %635 = vector.broadcast %634 : i32 to vector<8x1xi32>
    %636 = arith.cmpi slt, %635, %4 : vector<8x1xi32>
    %cst_156 = arith.constant 0.000000e+00 : f32
    %637 = vector.shape_cast %636 : vector<8x1xi1> to vector<8x1xi1>
    %638 = vector.broadcast %637 : vector<8x1xi1> to vector<8x128xi1>
    %639 = vector.broadcast %cst_156 : f32 to vector<8x128xf32>
    %640 = arith.select %638, %633, %639 : vector<8x128xi1>, vector<8x128xf32>
    %641 = arith.index_cast %608 : i32 to index
    %c0_157 = arith.constant 0 : index
    %642 = vector.load %arg13[%641, %c0_157] : memref<64x128xf32, #tpu.memory_space<vmem>>, vector<8x128xf32>
    tpu.vector_store %arg13[%641, %c0_157], %640 {strides = array<i32>} : memref<64x128xf32, #tpu.memory_space<vmem>>, vector<8x128xf32>,
    %643 = vector.shape_cast %636 : vector<8x1xi1> to vector<8x1xi1>
    %644 = vector.broadcast %643 : vector<8x1xi1> to vector<8x128xi1>
    %645 = arith.select %644, %633, %606 : vector<8x128xi1>, vector<8x128xf32>
    %c7_i32_158 = arith.constant 7 : i32
    %c8_i32_159 = arith.constant 8 : i32
    %646 = arith.muli %c7_i32_158, %c8_i32_159 : i32
    %647 = tpu.assume_multiple %646, 8 : i32
    %648 = arith.index_cast %647 : i32 to index
    %c0_160 = arith.constant 0 : index
    %649 = vector.load %arg17[%648, %c0_160] : memref<64x384xf32, #tpu.memory_space<vmem>>, vector<8x384xf32>
    %650 = arith.truncf %645 : vector<8x128xf32> to vector<8x128xbf16>
    %cst_161 = arith.constant dense<0.000000e+00> : vector<8x384xf32>
    %651 = tpu.matmul %650, %367, %cst_161 {dimension_numbers = #tpu.dot_dimension_numbers<[1], [0], [0], [1], [0, 0, 1, 1], [], []>} : vector<8x128xbf16>, vector<128x384xbf16>, vector<8x384xf32> -> vector<8x384xf32>
    %652 = vector.extract_strided_slice %649 {offsets = [0, 0], sizes = [8, 256], strides = [1, 1]} : vector<8x384xf32> to vector<8x256xf32>
    %653 = vector.extract_strided_slice %651 {offsets = [0, 0], sizes = [8, 256], strides = [1, 1]} : vector<8x384xf32> to vector<8x256xf32>
    %654 = arith.addf %652, %653 : vector<8x256xf32>
    %655 = arith.negf %654 : vector<8x256xf32>
    %656 = math.exp %655 : vector<8x256xf32>
    %cst_162 = arith.constant 1.000000e+00 : f32
    %657 = vector.broadcast %cst_162 : f32 to vector<8x256xf32>
    %658 = arith.addf %657, %656 : vector<8x256xf32>
    %659 = arith.divf %657, %658 : vector<8x256xf32>
    %660 = vector.extract_strided_slice %659 {offsets = [0, 0], sizes = [8, 128], strides = [1, 1]} : vector<8x256xf32> to vector<8x128xf32>
    %661 = vector.extract_strided_slice %659 {offsets = [0, 128], sizes = [8, 128], strides = [1, 1]} : vector<8x256xf32> to vector<8x128xf32>
    %662 = vector.extract_strided_slice %649 {offsets = [0, 256], sizes = [8, 128], strides = [1, 1]} : vector<8x384xf32> to vector<8x128xf32>
    %663 = vector.extract_strided_slice %651 {offsets = [0, 256], sizes = [8, 128], strides = [1, 1]} : vector<8x384xf32> to vector<8x128xf32>
    %664 = arith.addf %663, %370 : vector<8x128xf32>
    %665 = arith.mulf %660, %664 : vector<8x128xf32>
    %666 = arith.addf %662, %665 : vector<8x128xf32>
    %667 = math.tanh %666 : vector<8x128xf32>
    %cst_163 = arith.constant 1.000000e+00 : f32
    %668 = vector.broadcast %cst_163 : f32 to vector<8x128xf32>
    %669 = arith.subf %668, %661 : vector<8x128xf32>
    %670 = arith.mulf %669, %667 : vector<8x128xf32>
    %671 = arith.mulf %661, %645 : vector<8x128xf32>
    %672 = arith.addf %670, %671 : vector<8x128xf32>
    %673 = arith.addi %0, %c7_i32_158 : i32
    %674 = vector.broadcast %673 : i32 to vector<8x1xi32>
    %675 = arith.cmpi slt, %674, %4 : vector<8x1xi32>
    %cst_164 = arith.constant 0.000000e+00 : f32
    %676 = vector.shape_cast %675 : vector<8x1xi1> to vector<8x1xi1>
    %677 = vector.broadcast %676 : vector<8x1xi1> to vector<8x128xi1>
    %678 = vector.broadcast %cst_164 : f32 to vector<8x128xf32>
    %679 = arith.select %677, %672, %678 : vector<8x128xi1>, vector<8x128xf32>
    %680 = arith.index_cast %647 : i32 to index
    %c0_165 = arith.constant 0 : index
    %681 = vector.load %arg13[%680, %c0_165] : memref<64x128xf32, #tpu.memory_space<vmem>>, vector<8x128xf32>
    tpu.vector_store %arg13[%680, %c0_165], %679 {strides = array<i32>} : memref<64x128xf32, #tpu.memory_space<vmem>>, vector<8x128xf32>,
    %682 = vector.shape_cast %675 : vector<8x1xi1> to vector<8x1xi1>
    %683 = vector.broadcast %682 : vector<8x1xi1> to vector<8x128xi1>
    %684 = arith.select %683, %672, %645 : vector<8x128xi1>, vector<8x128xf32>
    %c8_i32_166 = arith.constant 8 : i32
    %c1_167 = arith.constant 1 : index
    %c0_168 = arith.constant 0 : index
    %c0_169 = arith.constant 0 : index
    %685 = vector.load %arg15[%c1_167, %c0_168, %c0_169] : memref<2x8x128xf32, #tpu.memory_space<vmem>>, vector<1x8x128xf32>
    %686 = vector.shape_cast %685 : vector<1x8x128xf32> to vector<8x128xf32>
    %687 = vector.shape_cast %684 : vector<8x128xf32> to vector<1x8x128xf32>
    tpu.vector_store %arg15[%c1_167, %c0_168, %c0_169], %687 {strides = array<i32>} : memref<2x8x128xf32, #tpu.memory_space<vmem>>, vector<1x8x128xf32>,
    %c1_170 = arith.constant 1 : index
    %c0_171 = arith.constant 0 : index
    %c0_172 = arith.constant 0 : index
    %688 = vector.load %arg15[%c1_170, %c0_171, %c0_172] : memref<2x8x128xf32, #tpu.memory_space<vmem>>, vector<1x8x128xf32>
    %689 = vector.shape_cast %688 : vector<1x8x128xf32> to vector<8x128xf32>
    %c0_173 = arith.constant 0 : index
    %c0_174 = arith.constant 0 : index
    %690 = vector.load %arg14[%c0_173, %c0_174] : memref<8x128xf32, #tpu.memory_space<vmem>>, vector<8x128xf32>
    tpu.vector_store %arg14[%c0_173, %c0_174], %689 {strides = array<i32>} : memref<8x128xf32, #tpu.memory_space<vmem>>, vector<8x128xf32>,
    return
  }
  func.func @transform_0(%arg0: i32) -> (i32, i32) {
    %c0_i32 = arith.constant 0 : i32
    %c0_i32_0 = arith.constant 0 : i32
    return %arg0, %c0_i32 : i32, i32
  }
  func.func @transform_1(%arg0: i32) -> (i32, i32) {
    %c0_i32 = arith.constant 0 : i32
    %c0_i32_0 = arith.constant 0 : i32
    %c0_i32_1 = arith.constant 0 : i32
    return %c0_i32, %c0_i32_0 : i32, i32
  }
  func.func @transform_2(%arg0: i32) -> (i32, i32) {
    %c0_i32 = arith.constant 0 : i32
    %c0_i32_0 = arith.constant 0 : i32
    %c0_i32_1 = arith.constant 0 : i32
    return %c0_i32, %c0_i32_0 : i32, i32
  }
  func.func @transform_3(%arg0: i32) -> (i32, i32) {
    %c0_i32 = arith.constant 0 : i32
    %c0_i32_0 = arith.constant 0 : i32
    %c0_i32_1 = arith.constant 0 : i32
    return %c0_i32, %c0_i32_0 : i32, i32
  }
  func.func @transform_4(%arg0: i32) -> (i32, i32) {
    %c0_i32 = arith.constant 0 : i32
    %c0_i32_0 = arith.constant 0 : i32
    %c0_i32_1 = arith.constant 0 : i32
    return %c0_i32, %c0_i32_0 : i32, i32
  }
  func.func @transform_5(%arg0: i32) -> (i32, i32) {
    %c0_i32 = arith.constant 0 : i32
    %c0_i32_0 = arith.constant 0 : i32
    %c0_i32_1 = arith.constant 0 : i32
    return %c0_i32, %c0_i32_0 : i32, i32
  }
  func.func @transform_6(%arg0: i32) -> (i32, i32) {
    %c0_i32 = arith.constant 0 : i32
    %c0_i32_0 = arith.constant 0 : i32
    %c0_i32_1 = arith.constant 0 : i32
    return %c0_i32, %c0_i32_0 : i32, i32
  }
  func.func @transform_7(%arg0: i32) -> (i32, i32) {
    %c0_i32 = arith.constant 0 : i32
    %c0_i32_0 = arith.constant 0 : i32
    %c0_i32_1 = arith.constant 0 : i32
    return %c0_i32, %c0_i32_0 : i32, i32
  }
  func.func @transform_8(%arg0: i32) -> (i32, i32) {
    %c0_i32 = arith.constant 0 : i32
    %c0_i32_0 = arith.constant 0 : i32
    %c0_i32_1 = arith.constant 0 : i32
    return %c0_i32, %c0_i32_0 : i32, i32
  }
  func.func @transform_9(%arg0: i32) -> (i32, i32) {
    %c0_i32 = arith.constant 0 : i32
    %c0_i32_0 = arith.constant 0 : i32
    %c0_i32_1 = arith.constant 0 : i32
    return %c0_i32, %c0_i32_0 : i32, i32
  }
  func.func @transform_10(%arg0: i32) -> (i32, i32) {
    %c0_i32 = arith.constant 0 : i32
    %c0_i32_0 = arith.constant 0 : i32
    %c0_i32_1 = arith.constant 0 : i32
    return %c0_i32, %c0_i32_0 : i32, i32
  }
  func.func @transform_11(%arg0: i32) -> (i32, i32) {
    %c0_i32 = arith.constant 0 : i32
    %c0_i32_0 = arith.constant 0 : i32
    %c0_i32_1 = arith.constant 0 : i32
    return %c0_i32, %c0_i32_0 : i32, i32
  }
  func.func @transform_12(%arg0: i32) -> (i32, i32) {
    %c0_i32 = arith.constant 0 : i32
    %c0_i32_0 = arith.constant 0 : i32
    return %arg0, %c0_i32 : i32, i32
  }
  func.func @transform_13(%arg0: i32) -> (i32, i32) {
    %c0_i32 = arith.constant 0 : i32
    %c0_i32_0 = arith.constant 0 : i32
    %c0_i32_1 = arith.constant 0 : i32
    return %c0_i32, %c0_i32_0 : i32, i32
  }
}

</mosaic_0001>

<bundles_post_ra>
// kernel: tpu_custom_call.1
= control target key start
LH: loop header
LB: loop body
LE: loop exit
PB: predicated region body
PF: predicated region fallthrough
CT: control target
= control target key end

     0   :  { %19 = vsyncpa [#allocation6], 0  ;;  %s5596_s0 = inlined_call_operand.vmem [shape: bf16[64,32], index: 0, kind: input, shape index: {}]   ;;  %s5597_s1 = inlined_call_operand.vmem [shape: s32[8,1], index: 1, kind: input, shape index: {}]   ;;  %s5598_s2 = inlined_call_operand.vmem [shape: f32[1,32], index: 2, kind: input, shape index: {}]   ;;  %s5599_s3 = inlined_call_operand.vmem [shape: f32[1,32], index: 3, kind: input, shape index: {}]   ;;  %s5600_s4 = inlined_call_operand.vmem [shape: bf16[32,384], index: 4, kind: input, shape index: {}]   ;;  %s5601_s5 = inlined_call_operand.hbm [shape: bf16[128,384], index: 5, kind: input, shape index: {}]   ;;  %s5602_s6 = inlined_call_operand.vmem [shape: f32[1,384], index: 6, kind: input, shape index: {}]   ;;  %s5603_s7 = inlined_call_operand.vmem [shape: f32[1,128], index: 7, kind: input, shape index: {}]   ;;  %s5604_s8 = inlined_call_operand.hbm [shape: bf16[128,384], index: 8, kind: input, shape index: {}]   ;;  %s5605_s9 = inlined_call_operand.hbm [shape: bf16[128,384], index: 9, kind: input, shape index: {}]   ;;  %s5606_s10 = inlined_call_operand.vmem [shape: f32[1,384], index: 10, kind: input, shape index: {}]   ;;  %s5607_s11 = inlined_call_operand.vmem [shape: f32[1,128], index: 11, kind: input, shape index: {}]   ;;  %s5608_s12 = inlined_call_operand.hbm [shape: f32[64,128], index: 12, kind: output, shape index: {0}]   ;;  %s5609_s13 = inlined_call_operand.hbm [shape: f32[8,128], index: 13, kind: output, shape index: {1}]  }
   0x1   :  { %20 = vsyncpa [#allocation9], 0 }
   0x2   :  { %21 = vsyncpa [#allocation7], 0 }
   0x3   :  { %22 = vsyncpa [#allocation13], 0  ;;  %s4239_s25 = smov [#allocation8]   ;;  %s4240_s27 = smov [#allocation5]  }
   0x4   :  { %s54_s26 = sshll.u32 %s4239_s25, 4  ;;  %s38_s28 = sshll.u32 %s4240_s27, 4  ;;  %s55_s26 = int_to_ptr.vmem [resolvable:$true] %s54_s26  ;;  %s4322_s28 = int_to_ptr.vmem [resolvable:$true] %s38_s28 }
   0x5   :  { %s4121_s14 = scalar_lea.hbm %s5604_s8, 3072 }
   0x6   :  { %p4122_p0 = scmp.ne.s32.totalorder %s5604_s8, %s4121_s14  ;;  %p4125_p1 = scmp.lt.u32.totalorder %s4121_s14, %s5604_s8 }
   0x8   :  { %p4127_p2 = pnand %p4125_p1, %p4122_p0 }
   0xa   :  { %4130 = shalt.err (!%p4127_p2)
}
   0xb   :  { %s4131_s19 = scalar_lea.vmem %s55_s26, 3072  ;;  %p4136_p4 = scmp.lt.s32.totalorder %s55_s26, %s55_s26 }
   0xc   :  { %p4132_p3 = scmp.ne.s32.totalorder %s55_s26, %s4131_s19  ;;  %p4137_p5 = scmp.lt.s32.totalorder %s4131_s19, %s4131_s19 }
   0xe   :  { %p4138_p6 = por %p4137_p5, %p4136_p4 }
  0x10   :  { %p4139_p7 = pnand %p4138_p6, %p4132_p3 }
  0x12   :  { %4142 = shalt.err (!%p4139_p7)
}
  0x13   :  { %s4241_s20 = smov 192   ;;  %s4242_s21 = smov 12  }
  0x14   :  { %60 = dma.hbm_to_vmem [thread:$0]  %s5604_s8, 3072, %s55_s26, [#allocation9], %s4241_s20, %s4241_s20, %s4242_s21  }
  0x15   :  { %s4143_s27 = scalar_lea.hbm %s5601_s5, 3072 }
  0x16   :  { %p4144_p8 = scmp.ne.s32.totalorder %s5601_s5, %s4143_s27  ;;  %p4147_p9 = scmp.lt.u32.totalorder %s4143_s27, %s5601_s5 }
  0x18   :  { %p4149_p10 = pnand %p4147_p9, %p4144_p8 }
  0x1a   :  { %4152 = shalt.err (!%p4149_p10)
}
  0x1b   :  { %s4153_s16 = scalar_lea.vmem %s4322_s28, 3072  ;;  %p4158_p12 = scmp.lt.s32.totalorder %s4322_s28, %s4322_s28 }
  0x1c   :  { %p4154_p11 = scmp.ne.s32.totalorder %s4322_s28, %s4153_s16  ;;  %p4159_p13 = scmp.lt.s32.totalorder %s4153_s16, %s4153_s16 }
  0x1e   :  { %p4160_p0 = por %p4159_p13, %p4158_p12 }
  0x20   :  { %p4161_p1 = pnand %p4160_p0, %p4154_p11 }
  0x22   :  { %4164 = shalt.err (!%p4161_p1)
}
  0x23   :  { %44 = dma.hbm_to_vmem [thread:$0]  %s5601_s5, 3072, %s4322_s28, [#allocation6], %s4241_s20, %s4241_s20, %s4242_s21  }
  0x24   :  { %s4243_s17 = smov [#allocation10]   ;;  %s4165_s23 = scalar_lea.hbm %s5605_s9, 3072 }
  0x25   :  { %s66_s18 = sshll.u32 %s4243_s17, 4  ;;  %p4166_p2 = scmp.ne.s32.totalorder %s5605_s9, %s4165_s23  ;;  %s67_s18 = int_to_ptr.vmem [resolvable:$true] %s66_s18 }
  0x26   :  { %p4169_p3 = scmp.lt.u32.totalorder %s4165_s23, %s5605_s9 }
  0x28   :  { %p4171_p4 = pnand %p4169_p3, %p4166_p2 }
  0x2a   :  { %4174 = shalt.err (!%p4171_p4)
}
  0x2b   :  { %s4175_s30 = scalar_lea.vmem %s67_s18, 3072  ;;  %p4180_p6 = scmp.lt.s32.totalorder %s67_s18, %s67_s18 }
  0x2c   :  { %p4176_p5 = scmp.ne.s32.totalorder %s67_s18, %s4175_s30  ;;  %p4181_p7 = scmp.lt.s32.totalorder %s4175_s30, %s4175_s30 }
  0x2e   :  { %p4182_p8 = por %p4181_p7, %p4180_p6 }
  0x30   :  { %p4183_p9 = pnand %p4182_p8, %p4176_p5 }
  0x32   :  { %4186 = shalt.err (!%p4183_p9)
}
  0x33   :  { %72 = dma.hbm_to_vmem [thread:$0]  %s5605_s9, 3072, %s67_s18, [#allocation9], %s4241_s20, %s4241_s20, %s4242_s21  }
  0x34   :  { %4231 = dma.done.wait [#allocation6], 3072  }
  0x35   :  { %4232 = vsyncadd [#allocation6], 4294964224 }
  0x36   :  { %4233 = dma.done.wait [#allocation9], 6144  }
  0x37   :  { %4234 = vsyncadd [#allocation9], 4294961152  ;;  %v3205_v0 = vld [vmem:[%s5596_s0] sm:$0xff]   ;;  %vm111_vm0 = vcmask 261120   ;;  %v3220_v1 = vld [vmem:[%s5596_s0 + $0x8] sm:$0xff]   ;;  %vm4246_vm3 = vmmov 0  }
  0x38   :  { %v3206_v2 = vunpack.c.l.bf16 %v3205_v0  ;;  %v3210_v3 = vunpack.c.l.bf16 %v3220_v1  ;;  %v3207_v4 = vunpack.c.h.bf16 %v3205_v0  ;;  %v3211_v5 = vunpack.c.h.bf16 %v3220_v1  ;;  %v3221_v6 = vld [vmem:[%s5596_s0 + $0x10] sm:$0xff]   ;;  %v3222_v9 = vld [vmem:[%s5596_s0 + $0x18] sm:$0xff]   ;;  %v3794_v61 = vld [vmem:[%s5600_s4] ss:$12 sps:$4 sm:$0xff]   ;;  %s4249_s21 = smov [#allocation12]  }
  0x39   :  { %v3214_v12 = vunpack.c.l.bf16 %v3221_v6  ;;  %v3215_v13 = vunpack.c.h.bf16 %v3221_v6  ;;  %v3218_v14 = vunpack.c.l.bf16 %v3222_v9  ;;  %v3219_v15 = vunpack.c.h.bf16 %v3222_v9  ;;  %v3792_v60 = vld [vmem:[%s5600_s4 + $0x4] ss:$12 sps:$4 sm:$0xff]   ;;  %v3795_v62 = vld [vmem:[%s5600_s4 + $0x1c] ss:$12 sps:$4 sm:$0xff]   ;;  %s3053_s18 = sshll.u32 %s4249_s21, 4  ;;  %s5565_s18 = int_to_ptr.vmem [resolvable:$true] %s3053_s18 }
  0x3a   :  { %v112_v7 = vsel %vm111_vm0, %v3206_v2, 0.0  ;;  %v118_v8 = vsel %vm111_vm0, %v3210_v3, 0.0  ;;  %v115_v10 = vsel %vm111_vm0, %v3207_v4, 0.0  ;;  %v121_v11 = vsel %vm111_vm0, %v3211_v5, 0.0  ;;  %320 = vmatprep.subr.bf16.mxu0 %v3792_v60  ;;  %v3798_v63 = vld [vmem:[%s5600_s4 + $0x8] ss:$12 sps:$4 sm:$0xff]  }
  0x3b   :  { %113 = vadd.xlane.f32.xlu0 %v112_v7  ;;  %119 = vadd.xlane.f32.xlu1 %v118_v8  ;;  %v124_v16 = vsel %vm111_vm0, %v3214_v12, 0.0  ;;  %v127_v17 = vsel %vm111_vm0, %v3215_v13, 0.0  ;;  %v130_v18 = vsel %vm111_vm0, %v3218_v14, 0.0  ;;  %v133_v19 = vsel %vm111_vm0, %v3219_v15, 0.0  ;;  %v3797_v0 = vld [vmem:[%s5600_s4 + $0x18] ss:$12 sps:$4 sm:$0xff]  }
  0x3c   :  { %321 = vmatpush1.bf16.msra.mxu0 %v3794_v61  ;;  %3421 = vmatprep.subr.bf16.mxu1 %v3798_v63  ;;  %v4449_v1 = vld [vmem:[#allocation5 + $0x4] ss:$12 sps:$4 sm:$0xff]  }
  0x3d   :  { %322 = vmatprep.subr.bf16.mxu0 %v3795_v62  ;;  %3422 = vmatpush3.bf16.msra.mxu1 %v3798_v63 }
  0x3f   :  { %116 = vadd.xlane.f32.xlu0 %v115_v10  ;;  %122 = vadd.xlane.f32.xlu1 %v121_v11 }
  0x40   :  { %323 = vmatpush1.bf16.msra.mxu0 %v3797_v0  ;;  %v4491_v0 = vld [vmem:[#allocation5 + $0x8] ss:$12 sps:$4 sm:$0xff]  }
  0x41   :  { %657 = vmatprep.subr.bf16.mxu0 %v4449_v1 }
  0x43   :  { %125 = vadd.xlane.f32.xlu0 %v124_v16  ;;  %128 = vadd.xlane.f32.xlu1 %v127_v17 }
  0x47   :  { %131 = vadd.xlane.f32.xlu0 %v130_v18  ;;  %134 = vadd.xlane.f32.xlu1 %v133_v19 }
  0xc8   :  { %v114_v20 = vpop.xlane.xlu0 %113  ;;  %v120_v21 = vpop.xlane.xlu1 %119 }
  0xc9   :  { %v137_v22 = vmul.f32 0.03125, %v114_v20  ;;  %v139_v23 = vmul.f32 0.03125, %v120_v21 }
  0xcb   :  { %v4394_v24 = vsub.f32 %v3206_v2, %v137_v22  ;;  %v4396_v25 = vsub.f32 %v3210_v3, %v139_v23  ;;  %v3801_v2 = vld [vmem:[%s5600_s4 + $0x20] ss:$12 sps:$4 sm:$0xff]   ;;  %v5615_v3 = vmov 0  }
  0xcc   :  { %v117_v26 = vpop.xlane.xlu0 %116  ;;  %v123_v27 = vpop.xlane.xlu1 %122  ;;  %352 = vmatprep.mubr.bf16.mxu0 %v5615_v3  ;;  %3790 = vset.pattern.permute.xlu0 %v5615_v3 }
  0xcd   :  { %v138_v28 = vmul.f32 0.03125, %v117_v26  ;;  %v140_v29 = vmul.f32 0.03125, %v123_v27  ;;  %v153_v30 = vmul.f32 %v4394_v24, %v4394_v24  ;;  %v155_v31 = vmul.f32 %v4396_v25, %v4396_v25  ;;  %3423 = vmatprep.subr.bf16.mxu1 %v3801_v2  ;;  %3791 = vset.pattern.permute.xlu1 %v5615_v3 }
  0xce   :  { %3424 = vmatpush3.bf16.msra.mxu1 %v3801_v2 }
  0xcf   :  { %v4402_v32 = vsub.f32 %v3207_v4, %v138_v28  ;;  %v4404_v33 = vsub.f32 %v3211_v5, %v140_v29  ;;  %v161_v34 = vsel %vm111_vm0, %v153_v30, 0.0  ;;  %v167_v37 = vsel %vm111_vm0, %v155_v31, 0.0  ;;  %v4462_v5 = vld [vmem:[%s5597_s1] sm:$0xff] }
  0xd0   :  { %162 = vadd.xlane.f32.xlu0 %v161_v34  ;;  %v126_v35 = vpop.xlane.xlu0 %125  ;;  %v129_v36 = vpop.xlane.xlu1 %128  ;;  %v5617_v4 = vmov 0.0   ;;  %vm3117_vm1 = vcmp.gt.s32.totalorder %v4462_v5, 0  ;;  %vm3120_vm2 = vcmp.gt.s32.totalorder %v4462_v5, 1  ;;  %vm3123_vm4 = vcmp.gt.s32.totalorder %v4462_v5, 2 }
  0xd1   :  { %v141_v38 = vmul.f32 0.03125, %v126_v35  ;;  %v142_v39 = vmul.f32 0.03125, %v129_v36  ;;  %v154_v40 = vmul.f32 %v4402_v32, %v4402_v32  ;;  %v156_v41 = vmul.f32 %v4404_v33, %v4404_v33  ;;  %3433 = vmatprep.subr.bf16.mxu1 %v5617_v4 }
  0xd2   :  { %v762_v6 = vsel %vm3117_vm1, 1, %v5615_v3  ;;  %v883_v7 = vsel %vm3120_vm2, 1, %v5615_v3  ;;  %vm3126_vm5 = vcmp.gt.s32.totalorder %v4462_v5, 3  ;;  %vm3129_vm6 = vcmp.gt.s32.totalorder %v4462_v5, 4 }
  0xd3   :  { %v4412_v42 = vsub.f32 %v3214_v12, %v141_v38  ;;  %v4414_v43 = vsub.f32 %v3215_v13, %v142_v39  ;;  %v164_v44 = vsel %vm111_vm0, %v154_v40, 0.0  ;;  %v170_v47 = vsel %vm111_vm0, %v156_v41, 0.0 }
  0xd4   :  { %168 = vadd.xlane.f32.xlu0 %v167_v37  ;;  %165 = vadd.xlane.f32.xlu1 %v164_v44  ;;  %v132_v45 = vpop.xlane.xlu0 %131  ;;  %v135_v46 = vpop.xlane.xlu1 %134  ;;  %v3074_v37 = vld [vmem:[%s5598_s2] ss:$0 sm:$0xff]  ;;  %vm3132_vm7 = vcmp.gt.s32.totalorder %v4462_v5, 5  ;;  %vm3135_vm8 = vcmp.gt.s32.totalorder %v4462_v5, 6  ;;  %vm3138_vm9 = vcmp.gt.s32.totalorder %v4462_v5, 7 }
  0xd5   :  { %v143_v48 = vmul.f32 0.03125, %v132_v45  ;;  %v144_v49 = vmul.f32 0.03125, %v135_v46  ;;  %v157_v50 = vmul.f32 %v4412_v42, %v4412_v42  ;;  %v158_v51 = vmul.f32 %v4414_v43, %v4414_v43 }
  0xd7   :  { %v4422_v52 = vsub.f32 %v3218_v14, %v143_v48  ;;  %v4424_v53 = vsub.f32 %v3219_v15, %v144_v49  ;;  %v173_v54 = vsel %vm111_vm0, %v157_v50, 0.0  ;;  %v176_v55 = vsel %vm111_vm0, %v158_v51, 0.0 }
  0xd8   :  { %171 = vadd.xlane.f32.xlu1 %v170_v47  ;;  %174 = vadd.xlane.f32.xlu0 %v173_v54 }
  0xd9   :  { %v159_v56 = vmul.f32 %v4422_v52, %v4422_v52  ;;  %v160_v57 = vmul.f32 %v4424_v53, %v4424_v53 }
  0xdb   :  { %v179_v58 = vsel %vm111_vm0, %v159_v56, 0.0  ;;  %v182_v59 = vsel %vm111_vm0, %v160_v57, 0.0  ;;  %v4479_v56 = vld [vmem:[#allocation5] ss:$12 sps:$4 sm:$0xff]   ;;  %v4481_v57 = vld [vmem:[#allocation5 + $0x1c] ss:$12 sps:$4 sm:$0xff]  }
  0xdc   :  { %177 = vadd.xlane.f32.xlu1 %v176_v55  ;;  %180 = vadd.xlane.f32.xlu0 %v179_v58 }
  0xe0   :  { %183 = vadd.xlane.f32.xlu1 %v182_v59 }
  0xf1   :  { %885 = vperm.xlu1 %3791, %v883_v7  }
  0xf2   :  { %764 = vperm.xlu0 %3790, %v762_v6  }
 0x15d   :  { %v163_v8 = vpop.xlane.xlu0 %162 }
 0x15e   :  { %v185_v9 = vmul.f32 0.03125, %v163_v8 }
 0x160   :  { %v193_v10 = vadd.f32 1e-05, %v185_v9 }
 0x161   :  { %v166_v11 = vpop.xlane.xlu1 %165  ;;  %v169_v12 = vpop.xlane.xlu0 %168 }
 0x162   :  { %3896 = vrsqrt.f32 %v193_v10  ;;  %v186_v13 = vmul.f32 0.03125, %v166_v11  ;;  %v187_v14 = vmul.f32 0.03125, %v169_v12  ;;  %v4499_v11 = vld [vmem:[#allocation5 + $0x30] ss:$12 sps:$4 sm:$0xff]  }
 0x164   :  { %v194_v15 = vadd.f32 1e-05, %v186_v13  ;;  %v195_v16 = vadd.f32 1e-05, %v187_v14  ;;  %v4503_v13 = vld [vmem:[#allocation5 + $0x4c] ss:$12 sps:$4 sm:$0xff]  }
 0x165   :  { %v172_v17 = vpop.xlane.xlu1 %171  ;;  %v175_v18 = vpop.xlane.xlu0 %174 }
 0x166   :  { %3898 = vrsqrt.f32 %v194_v15  ;;  %v188_v19 = vmul.f32 0.03125, %v172_v17  ;;  %v189_v20 = vmul.f32 0.03125, %v175_v18  ;;  %v4511_v17 = vld [vmem:[#allocation5 + $0x48] ss:$12 sps:$4 sm:$0xff]  }
 0x167   :  { %3900 = vrsqrt.f32 %v195_v16 }
 0x168   :  { %v196_v21 = vadd.f32 1e-05, %v188_v19  ;;  %v197_v22 = vadd.f32 1e-05, %v189_v20  ;;  %v4515_v19 = vld [vmem:[#allocation5 + $0x64] ss:$12 sps:$4 sm:$0xff]  }
 0x169   :  { %v178_v23 = vpop.xlane.xlu1 %177  ;;  %v181_v26 = vpop.xlane.xlu0 %180  ;;  %v4518_v20 = vld [vmem:[#allocation5 + $0x38] ss:$12 sps:$4 sm:$0xff]  }
 0x16a   :  { %3902 = vrsqrt.f32 %v196_v21  ;;  %v190_v27 = vmul.f32 0.03125, %v178_v23  ;;  %v191_v28 = vmul.f32 0.03125, %v181_v26  ;;  %v4523_v21 = vld [vmem:[#allocation5 + $0x60] ss:$12 sps:$4 sm:$0xff]   ;;  %v4531_v23 = vld [vmem:[#allocation5 + $0x50] ss:$12 sps:$4 sm:$0xff]  }
 0x16b   :  { %3904 = vrsqrt.f32 %v197_v22  ;;  %v4528_v22 = vld [vmem:[#allocation5 + $0x7c] ss:$12 sps:$4 sm:$0xff]   ;;  %v4536_v26 = vld [vmem:[#allocation5 + $0x78] ss:$12 sps:$4 sm:$0xff]  }
 0x16c   :  { %v3897_v29 = vpop.eup %3896  ;;  %v198_v30 = vadd.f32 1e-05, %v190_v27  ;;  %v199_v31 = vadd.f32 1e-05, %v191_v28  ;;  %v4540_v27 = vld [vmem:[#allocation5 + $0x94] ss:$12 sps:$4 sm:$0xff]  }
 0x16d   :  { %v209_v34 = vmul.f32 %v3897_v29, %v4394_v24  ;;  %v184_v35 = vpop.xlane.xlu1 %183  ;;  %v3075_v24 = vld [vmem:[%s5599_s3] ss:$0 sm:$0xff]  ;;  %v4543_v28 = vld [vmem:[#allocation5 + $0x68] ss:$12 sps:$4 sm:$0xff]   ;;  %v4547_v29 = vld [vmem:[#allocation5 + $0x90] ss:$12 sps:$4 sm:$0xff]  }
 0x16e   :  { %3906 = vrsqrt.f32 %v198_v30  ;;  %v192_v36 = vmul.f32 0.03125, %v184_v35  ;;  %v4550_v30 = vld [vmem:[#allocation5 + $0xac] ss:$12 sps:$4 sm:$0xff]  }
 0x16f   :  { %3908 = vrsqrt.f32 %v199_v31  ;;  %v224_v44 = vmul.f32 %v3074_v37, %v209_v34  ;;  %v4553_v31 = vld [vmem:[#allocation5 + $0x80] ss:$12 sps:$4 sm:$0xff]   ;;  %v4558_v34 = vld [vmem:[#allocation5 + $0xa8] ss:$12 sps:$4 sm:$0xff]   ;;  %v4563_v35 = vld [vmem:[#allocation5 + $0x98] ss:$12 sps:$4 sm:$0xff]  }
 0x170   :  { %v3899_v38 = vpop.eup %3898  ;;  %v200_v39 = vadd.f32 1e-05, %v192_v36  ;;  %v4568_v36 = vld [vmem:[#allocation5 + $0xb0] ss:$12 sps:$4 sm:$0xff]  }
 0x171   :  { %v3901_v40 = vpop.eup %3900  ;;  %v210_v41 = vmul.f32 %v3899_v38, %v4402_v32  ;;  %v239_v51 = vadd.f32 %v3075_v24, %v224_v44  ;;  %v1005_v38 = vsel %vm3123_vm4, 1, %v5615_v3  ;;  %v1493_v44 = vsel %vm3135_vm8, 1, %v5615_v3 }
 0x172   :  { %v211_v45 = vmul.f32 %v3901_v40, %v4396_v25  ;;  %3910 = vrsqrt.f32 %v200_v39  ;;  %1007 = vperm.xlu1 %3791, %v1005_v38   ;;  %v1127_v39 = vsel %vm3126_vm5, 1, %v5615_v3  ;;  %v1249_v40 = vsel %vm3129_vm6, 1, %v5615_v3 }
 0x173   :  { %v225_v46 = vmul.f32 %v3074_v37, %v210_v41  ;;  %v1371_v41 = vsel %vm3132_vm7, 1, %v5615_v3 }
 0x174   :  { %v3903_v47 = vpop.eup %3902  ;;  %v226_v48 = vmul.f32 %v3074_v37, %v211_v45  ;;  %v1615_v45 = vsel %vm3138_vm9, 1, %v5615_v3 }
 0x175   :  { %v3905_v49 = vpop.eup %3904  ;;  %v212_v50 = vmul.f32 %v3903_v47, %v4404_v33  ;;  %v240_v54 = vadd.f32 %v3075_v24, %v225_v46 }
 0x176   :  { %v213_v55 = vmul.f32 %v3905_v49, %v4412_v42  ;;  %v241_v59 = vadd.f32 %v3075_v24, %v226_v48  ;;  %v4488_v42 = vld [vmem:[#allocation5 + $0x18] ss:$12 sps:$4 sm:$0xff]   ;;  %1129 = vperm.xlu1 %3791, %v1127_v39   ;;  %v259_v49 = vld [vmem:[%s5602_s6] sm:$0x7] }
 0x177   :  { %v247_v32 = vpack.c.bf16 %v240_v54, %v239_v51  ;;  %v227_v25 = vmul.f32 %v3074_v37, %v212_v50 }
 0x178   :  { %v3907_v58 = vpop.eup %3906  ;;  %v228_v62 = vmul.f32 %v3074_v37, %v213_v55 }
 0x179   :  { %v3909_v60 = vpop.eup %3908  ;;  %v214_v61 = vmul.f32 %v3907_v58, %v4414_v43  ;;  %3082 = vmatmul.mubr.msk.bf16.vlgmr.msra.gmra.mrb[0].mxu0 %vm111_vm0, %v247_v32  ;;  %3425 = vmatprep.mubr.msk.bf16.mxu1 %vm111_vm0, %v247_v32  ;;  %v242_v33 = vadd.f32 %v3075_v24, %v227_v25  ;;  %v4494_v43 = vld [vmem:[#allocation5 + $0x34] ss:$12 sps:$4 sm:$0xff]  }
 0x17a   :  { %v215_v63 = vmul.f32 %v3909_v60, %v4422_v52  ;;  %658 = vmatpush1.bf16.msra.mxu0 %v4479_v56  ;;  %362 = vmatprep.mubr.bf16.mxu0 %v5615_v3  ;;  %v243_v52 = vadd.f32 %v3075_v24, %v228_v62 }
 0x17b   :  { %659 = vmatprep.subr.bf16.mxu0 %v4481_v57  ;;  %v248_v2 = vpack.c.bf16 %v242_v33, %v241_v59  ;;  %v229_v6 = vmul.f32 %v3074_v37, %v214_v61  ;;  %1251 = vperm.xlu1 %3791, %v1249_v40  }
 0x17c   :  { %v3911_v7 = vpop.eup %3910  ;;  %v230_v10 = vmul.f32 %v3074_v37, %v215_v63 }
 0x17d   :  { %v216_v8 = vmul.f32 %v3911_v7, %v4424_v53  ;;  %3426 = vmatmul.mubr.msk.bf16.vlgmr.msra.gmra.mrb[0].mxu1 %vm111_vm0, %v248_v2  ;;  %v244_v9 = vadd.f32 %v3075_v24, %v229_v6  ;;  %v4506_v53 = vld [vmem:[#allocation5 + $0x20] ss:$12 sps:$4 sm:$0xff]  }
 0x17e   :  { %660 = vmatpush1.bf16.msra.mxu0 %v4488_v42  ;;  %3434 = vmatpush3.bf16.msra.mxu1 %v4491_v0  ;;  %v245_v15 = vadd.f32 %v3075_v24, %v230_v10 }
 0x17f   :  { %661 = vmatprep.subr.bf16.mxu0 %v4494_v43  ;;  %v249_v12 = vpack.c.bf16 %v244_v9, %v243_v52  ;;  %v231_v14 = vmul.f32 %v3074_v37, %v216_v8  ;;  %3435 = vmatprep.subr.bf16.mxu1 %v5617_v4  ;;  %v5613_v37 = vmov 0.0|0.0  }
 0x180   :  { %1373 = vperm.xlu1 %3791, %v1371_v41  }
 0x181   :  { %3083 = vmatmul.mubr.msk.bf16.gmra.mrb[4].mxu0 %vm111_vm0, %v248_v2  ;;  %3429 = vmatprep.mubr.msk.bf16.mxu1 %vm111_vm0, %v249_v12  ;;  %v246_v16 = vadd.f32 %v3075_v24, %v231_v14  ;;  %v261_v24 = vlaneseq }
 0x182   :  { %662 = vmatpush1.bf16.msra.mxu0 %v4499_v11  ;;  %372 = vmatprep.mubr.bf16.mxu0 %v5615_v3 }
 0x183   :  { %663 = vmatprep.subr.bf16.mxu0 %v4503_v13  ;;  %v250_v18 = vpack.c.bf16 %v246_v16, %v245_v15  ;;  %3436 = vmatpush3.bf16.msra.mxu1 %v4506_v53  ;;  %v4623_v46 = vshrl.u32 %v261_v24, 7 }
 0x184   :  { %3437 = vmatprep.subr.bf16.mxu1 %v5617_v4  ;;  %1495 = vperm.xlu1 %3791, %v1493_v44  }
 0x185   :  { %3430 = vmatmul.mubr.msk.bf16.gmra.mrb[4].mxu1 %vm111_vm0, %v250_v18  ;;  %5629 = vst [vmem:[#allocation18_spill] sm:$0xff] %v4623_v46  ;;  %v5612_v47 = vsub.s32 0, %v4623_v46  ;;  %v5610_v48 = vsub.s32 2, %v4623_v46  ;;  %v5611_v50 = vsub.s32 1, %v4623_v46 }
 0x186   :  { %664 = vmatpush1.bf16.msra.mxu0 %v4511_v17  ;;  %3449 = vmatprep.mubr.msk.bf16.mxu1 %vm4246_vm3, %v5617_v4 }
 0x187   :  { %665 = vmatprep.subr.bf16.mxu0 %v4515_v19  ;;  %3438 = vmatpush3.bf16.msra.mxu1 %v4518_v20  ;;  %v264_v5 = vrot.slane %v259_v49, %v5612_v47  ;;  %v4635_v55 = vrot.slane %v259_v49, %v5610_v48  ;;  %v268_v32 = vrot.slane %v259_v49, %v5611_v50 }
 0x188   :  { %3439 = vmatprep.subr.bf16.mxu1 %v5617_v4  ;;  %1617 = vperm.xlu1 %3791, %v1615_v45  }
 0x189   :  { %3084 = vmatmul.mubr.msk.bf16.gmra.mrb[8].mxu0 %vm111_vm0, %v249_v12 }
 0x18a   :  { %666 = vmatpush1.bf16.msra.mxu0 %v4523_v21  ;;  %382 = vmatprep.mubr.bf16.mxu0 %v5615_v3 }
 0x18b   :  { %667 = vmatprep.subr.bf16.mxu0 %v4528_v22  ;;  %3440 = vmatpush3.bf16.msra.mxu1 %v4531_v23 }
 0x18c   :  { %3441 = vmatprep.subr.bf16.mxu1 %v5617_v4 }
 0x18e   :  { %668 = vmatpush1.bf16.msra.mxu0 %v4536_v26 }
 0x18f   :  { %669 = vmatprep.subr.bf16.mxu0 %v4540_v27  ;;  %3442 = vmatpush3.bf16.msra.mxu1 %v4543_v28 }
 0x190   :  { %3443 = vmatprep.subr.bf16.mxu1 %v5617_v4 }
 0x191   :  { %3085 = vmatmul.mubr.msk.bf16.gmra.mrb[12].mxu0 %vm111_vm0, %v250_v18 }
 0x192   :  { %670 = vmatpush1.bf16.msra.mxu0 %v4547_v29  ;;  %689 = vmatprep.mubr.bf16.mxu0 %v5615_v3 }
 0x193   :  { %671 = vmatprep.subr.bf16.mxu0 %v4550_v30  ;;  %3444 = vmatpush3.bf16.msra.mxu1 %v4553_v31 }
 0x194   :  { %3445 = vmatprep.subr.bf16.mxu1 %v5617_v4 }
 0x196   :  { %672 = vmatpush1.bf16.msra.mxu0 %v4558_v34 }
 0x197   :  { %3446 = vmatpush3.bf16.msra.mxu1 %v4563_v35  ;;  %777 = vmatprep.subr.bf16.mxu0 %v4449_v1 }
 0x198   :  { %3447 = vmatprep.subr.bf16.mxu1 %v5617_v4 }
 0x199   :  { %690 = vmatmul.mubr.bf16.vlgmr.msra.gmra.mrb[16].mxu0 %v5613_v37 }
 0x19a   :  { %778 = vmatpush1.bf16.msra.mxu0 %v4479_v56  ;;  %809 = vmatprep.mubr.bf16.mxu0 %v5615_v3 }
 0x19b   :  { %3448 = vmatpush3.bf16.msra.mxu1 %v4568_v36  ;;  %779 = vmatprep.subr.bf16.mxu0 %v4481_v57 }
 0x19c   :  { %3453 = vmatprep.subr.bf16.mxu1 %v5617_v4 }
 0x19e   :  { %3450 = vmatmul.mubr.bf16.vlgmr.msra.gmra.mrb[8].mxu1 %v5613_v37  ;;  %780 = vmatpush1.bf16.msra.mxu0 %v4488_v42 }
 0x19f   :  { %3454 = vmatpush3.bf16.msra.mxu1 %v4491_v0  ;;  %781 = vmatprep.subr.bf16.mxu0 %v4494_v43 }
 0x1a0   :  { %3455 = vmatprep.subr.bf16.mxu1 %v5617_v4  ;;  %3469 = vmatprep.mubr.msk.bf16.mxu1 %vm4246_vm3, %v5617_v4 }
 0x1a2   :  { %782 = vmatpush1.bf16.msra.mxu0 %v4499_v11 }
 0x1a3   :  { %3456 = vmatpush3.bf16.msra.mxu1 %v4506_v53  ;;  %783 = vmatprep.subr.bf16.mxu0 %v4503_v13 }
 0x1a4   :  { %3457 = vmatprep.subr.bf16.mxu1 %v5617_v4 }
 0x1a6   :  { %784 = vmatpush1.bf16.msra.mxu0 %v4511_v17 }
 0x1a7   :  { %3458 = vmatpush3.bf16.msra.mxu1 %v4518_v20  ;;  %785 = vmatprep.subr.bf16.mxu0 %v4515_v19 }
 0x1a8   :  { %3459 = vmatprep.subr.bf16.mxu1 %v5617_v4 }
 0x1aa   :  { %786 = vmatpush1.bf16.msra.mxu0 %v4523_v21 }
 0x1ab   :  { %3460 = vmatpush3.bf16.msra.mxu1 %v4531_v23  ;;  %787 = vmatprep.subr.bf16.mxu0 %v4528_v22 }
 0x1ac   :  { %3461 = vmatprep.subr.bf16.mxu1 %v5617_v4 }
 0x1ae   :  { %788 = vmatpush1.bf16.msra.mxu0 %v4536_v26 }
 0x1af   :  { %3462 = vmatpush3.bf16.msra.mxu1 %v4543_v28  ;;  %789 = vmatprep.subr.bf16.mxu0 %v4540_v27 }
 0x1b0   :  { %3463 = vmatprep.subr.bf16.mxu1 %v5617_v4 }
 0x1b2   :  { %790 = vmatpush1.bf16.msra.mxu0 %v4547_v29 }
 0x1b3   :  { %3464 = vmatpush3.bf16.msra.mxu1 %v4553_v31  ;;  %791 = vmatprep.subr.bf16.mxu0 %v4550_v30 }
 0x1b4   :  { %3465 = vmatprep.subr.bf16.mxu1 %v5617_v4 }
 0x1b6   :  { %792 = vmatpush1.bf16.msra.mxu0 %v4558_v34 }
 0x1b7   :  { %3466 = vmatpush3.bf16.msra.mxu1 %v4563_v35  ;;  %899 = vmatprep.subr.bf16.mxu0 %v4449_v1 }
 0x1b8   :  { %3467 = vmatprep.subr.bf16.mxu1 %v5617_v4 }
 0x1bb   :  { %3468 = vmatpush3.bf16.msra.mxu1 %v4568_v36 }
 0x1bc   :  { %3473 = vmatprep.subr.bf16.mxu1 %v5617_v4 }
 0x24c   :  { %v354_v51 = vpop.f32.mrb[0].mxu0 }
 0x24d   :  { %v356_v54 = vpop.f32.mrb[1].mxu0 }
 0x24e   :  { %v358_v25 = vpop.f32.mrb[2].mxu0  ;;  %v357_v50 = vadd.f32 %v356_v54, %v268_v32  ;;  %v4695_v54 = vpop.permute.xlu0 %764 }
 0x24f   :  { %v4639_v58 = vadd.f32 %v358_v25, %v264_v5  ;;  %v360_v59 = vpop.f32.mrb[3].mxu0  ;;  %vm766_vm10 = vcmp.eq.s32.totalorder %v4695_v54, 1 }
 0x250   :  { %v4641_v60 = vadd.f32 %v360_v59, %v268_v32  ;;  %v3427_v61 = vpop.f32.mrb[0].mxu1  ;;  %vm4703_vm11 = vmpackc.low %vm766_vm10, %vm766_vm10 }
 0x251   :  { %v4644_v33 = vadd.f32 %v3427_v61, %v4635_v55  ;;  %v427_v62 = vpop.f32.mrb[1].mxu1 }
 0x252   :  { %v3428_v63 = vpop.f32.mrb[2].mxu1 }
 0x253   :  { %v4647_v2 = vadd.f32 %v3428_v63, %v4635_v55  ;;  %v430_v6 = vpop.f32.mrb[3].mxu1 }
 0x254   :  { %v4650_v7 = vadd.f32 %v430_v6, %v4635_v55  ;;  %v364_v8 = vpop.f32.mrb[4].mxu0 }
 0x255   :  { %v4652_v52 = vadd.f32 %v364_v8, %v264_v5  ;;  %v366_v9 = vpop.f32.mrb[5].mxu0 }
 0x256   :  { %v4654_v10 = vadd.f32 %v366_v9, %v268_v32  ;;  %v368_v12 = vpop.f32.mrb[6].mxu0 }
 0x257   :  { %v4656_v14 = vadd.f32 %v368_v12, %v264_v5  ;;  %v370_v15 = vpop.f32.mrb[7].mxu0 }
 0x258   :  { %v4658_v16 = vadd.f32 %v370_v15, %v268_v32  ;;  %v3431_v18 = vpop.f32.mrb[4].mxu1 }
 0x259   :  { %v4661_v38 = vadd.f32 %v3431_v18, %v4635_v55  ;;  %v443_v39 = vpop.f32.mrb[5].mxu1 }
 0x25a   :  { %v4664_v40 = vadd.f32 %v443_v39, %v4635_v55  ;;  %v3432_v41 = vpop.f32.mrb[6].mxu1 }
 0x25b   :  { %5630 = vst [vmem:[#allocation19_spill] sm:$0xff] %v4661_v38  ;;  %v4667_v44 = vadd.f32 %v3432_v41, %v4635_v55  ;;  %v446_v45 = vpop.f32.mrb[7].mxu1 }
 0x25c   :  { %v4670_v24 = vadd.f32 %v446_v45, %v4635_v55  ;;  %v374_v49 = vpop.f32.mrb[8].mxu0 }
 0x25d   :  { %5631 = vst [vmem:[#allocation20_spill] sm:$0xff] %v4667_v44  ;;  %v4672_v25 = vadd.f32 %v374_v49, %v264_v5  ;;  %v376_v59 = vpop.f32.mrb[9].mxu0 }
 0x25e   :  { %v4674_v61 = vadd.f32 %v376_v59, %v268_v32  ;;  %v378_v63 = vpop.f32.mrb[10].mxu0  ;;  %v355_v59 = vadd.f32 %v354_v51, %v264_v5 }
 0x25f   :  { %v4676_v6 = vadd.f32 %v378_v63, %v264_v5  ;;  %v380_v8 = vpop.f32.mrb[11].mxu0 }
 0x260   :  { %v4678_v9 = vadd.f32 %v380_v8, %v268_v32 }
 0x264   :  { %v384_v12 = vpop.f32.mrb[12].mxu0 }
 0x265   :  { %v4680_v15 = vadd.f32 %v384_v12, %v264_v5  ;;  %v386_v18 = vpop.f32.mrb[13].mxu0 }
 0x266   :  { %v4682_v39 = vadd.f32 %v386_v18, %v268_v32  ;;  %v388_v41 = vpop.f32.mrb[14].mxu0 }
 0x267   :  { %v4684_v45 = vadd.f32 %v388_v41, %v264_v5  ;;  %v390_v49 = vpop.f32.mrb[15].mxu0 }
 0x268   :  { %5632 = vst [vmem:[#allocation21_spill] sm:$0xff] %v4682_v39  ;;  %v4686_v48 = vadd.f32 %v390_v49, %v268_v32 }
 0x269   :  { %5633 = vst [vmem:[#allocation22_spill] sm:$0xff] %v4684_v45 }
 0x26c   :  { %v691_v47 = vpop.f32.mrb[16].mxu0 }
 0x26d   :  { %v738_v63 = vadd.f32 %v691_v47, %v355_v59  ;;  %v693_v37 = vpop.f32.mrb[17].mxu0  ;;  %v4691_v47 = vld [vmem:[%s5603_s7] ss:$0 sm:$0xff]  ;;  %v5636_v59 = vmov 0.0  }
 0x26e   :  { %v739_v3 = vadd.f32 %v693_v37, %v357_v50  ;;  %v695_v8 = vpop.f32.mrb[18].mxu0 }
 0x26f   :  { %v3115_v4 = vmul.f32 -1.442695, %v738_v63  ;;  %v696_v46 = vpop.f32.mrb[19].mxu0  ;;  %v5637_v63 = vmov 0  }
 0x270   :  { %v3116_v38 = vmul.f32 -1.442695, %v739_v3 }
 0x271   :  { %3912 = vpow2.f32 %v3115_v4  ;;  %v732_v12 = vpop.f32.mrb[8].mxu1  ;;  %v428_v4 = vadd.f32 %v427_v62, %v4635_v55 }
 0x272   :  { %v3451_v44 = vpop.f32.mrb[9].mxu1  ;;  %3914 = vpow2.f32 %v3116_v38  ;;  %v752_v50 = vadd.f32 %v4691_v47, %v732_v12 }
 0x273   :  { %v735_v18 = vpop.f32.mrb[10].mxu1 }
 0x274   :  { %v3452_v39 = vpop.f32.mrb[11].mxu1 }
 0x27b   :  { %v3913_v41 = vpop.eup %3912 }
 0x27c   :  { %v746_v45 = vadd.f32 1.0, %v3913_v41  ;;  %v3915_v49 = vpop.eup %3914 }
 0x27d   :  { %v747_v37 = vadd.f32 1.0, %v3915_v49 }
 0x27e   :  { %3916 = vrcp.f32 %v746_v45 }
 0x27f   :  { %3918 = vrcp.f32 %v747_v37 }
 0x288   :  { %v3917_v46 = vpop.eup %3916 }
 0x289   :  { %v753_v51 = vmul.f32 %v3917_v46, %v752_v50  ;;  %v3919_v5 = vpop.eup %3918 }
 0x28a   :  { %v756_v32 = vsub.f32 1.0, %v3919_v5  ;;  %v758_v39 = vmul.f32 0.0, %v3919_v5 }
 0x28b   :  { %v754_v3 = vadd.f32 %v753_v51, %v428_v4 }
 0x28d   :  { %3920 = vtanh.f32 %v754_v3 }
 0x297   :  { %v3921_v38 = vpop.eup %3920 }
 0x298   :  { %v757_v44 = vmul.f32 %v3921_v38, %v756_v32 }
 0x29a   :  { %v4698_v45 = vadd.f32 %v758_v39, %v757_v44 }
 0x29c   :  { %v3224_v62 = vpack.c.bf16 %v4698_v45, %v4698_v45 }
 0x29e   :  { %3225 = vmatmul.mubr.msk.bf16.vlgmr.msra.gmra.mrb[20].mxu0 %vm4703_vm11, %v3224_v62  ;;  %3470 = vmatmul.mubr.msk.bf16.vlgmr.msra.gmra.mrb[12].mxu1 %vm4703_vm11, %v3224_v62 }
 0x29f   :  { %900 = vmatpush1.bf16.msra.mxu0 %v4479_v56  ;;  %3474 = vmatpush3.bf16.msra.mxu1 %v4491_v0 }
 0x2a0   :  { %901 = vmatprep.subr.bf16.mxu0 %v4481_v57  ;;  %3475 = vmatprep.subr.bf16.mxu1 %v5636_v59 }
 0x2a1   :  { %931 = vmatprep.mubr.bf16.mxu0 %v5637_v63  ;;  %3489 = vmatprep.mubr.msk.bf16.mxu1 %vm4246_vm3, %v5636_v59 }
 0x2a3   :  { %902 = vmatpush1.bf16.msra.mxu0 %v4488_v42  ;;  %3476 = vmatpush3.bf16.msra.mxu1 %v4506_v53 }
 0x2a4   :  { %903 = vmatprep.subr.bf16.mxu0 %v4494_v43  ;;  %3477 = vmatprep.subr.bf16.mxu1 %v5636_v59 }
 0x2a7   :  { %904 = vmatpush1.bf16.msra.mxu0 %v4499_v11  ;;  %3478 = vmatpush3.bf16.msra.mxu1 %v4518_v20 }
 0x2a8   :  { %905 = vmatprep.subr.bf16.mxu0 %v4503_v13  ;;  %3479 = vmatprep.subr.bf16.mxu1 %v5636_v59 }
 0x2ab   :  { %906 = vmatpush1.bf16.msra.mxu0 %v4511_v17  ;;  %3480 = vmatpush3.bf16.msra.mxu1 %v4531_v23 }
 0x2ac   :  { %907 = vmatprep.subr.bf16.mxu0 %v4515_v19  ;;  %3481 = vmatprep.subr.bf16.mxu1 %v5636_v59 }
 0x2af   :  { %908 = vmatpush1.bf16.msra.mxu0 %v4523_v21  ;;  %3482 = vmatpush3.bf16.msra.mxu1 %v4543_v28 }
 0x2b0   :  { %909 = vmatprep.subr.bf16.mxu0 %v4528_v22  ;;  %3483 = vmatprep.subr.bf16.mxu1 %v5636_v59 }
 0x2b3   :  { %910 = vmatpush1.bf16.msra.mxu0 %v4536_v26  ;;  %3484 = vmatpush3.bf16.msra.mxu1 %v4553_v31 }
 0x2b4   :  { %911 = vmatprep.subr.bf16.mxu0 %v4540_v27  ;;  %3485 = vmatprep.subr.bf16.mxu1 %v5636_v59 }
 0x2b7   :  { %912 = vmatpush1.bf16.msra.mxu0 %v4547_v29  ;;  %3486 = vmatpush3.bf16.msra.mxu1 %v4563_v35 }
 0x2b8   :  { %913 = vmatprep.subr.bf16.mxu0 %v4550_v30  ;;  %3487 = vmatprep.subr.bf16.mxu1 %v5636_v59 }
 0x2bb   :  { %914 = vmatpush1.bf16.msra.mxu0 %v4558_v34  ;;  %3488 = vmatpush3.bf16.msra.mxu1 %v4568_v36 }
 0x2bc   :  { %1021 = vmatprep.subr.bf16.mxu0 %v4449_v1  ;;  %3493 = vmatprep.subr.bf16.mxu1 %v5636_v59 }
 0x371   :  { %v811_v8 = vpop.f32.mrb[20].mxu0  ;;  %v852_v12 = vpop.f32.mrb[12].mxu1 }
 0x372   :  { %v858_v18 = vadd.f32 %v811_v8, %v4639_v58  ;;  %v813_v41 = vpop.f32.mrb[21].mxu0  ;;  %v3471_v49 = vpop.f32.mrb[13].mxu1  ;;  %v872_v62 = vadd.f32 %v4691_v47, %v852_v12 }
 0x373   :  { %v859_v37 = vadd.f32 %v813_v41, %v4641_v60  ;;  %v815_v50 = vpop.f32.mrb[22].mxu0  ;;  %v855_v46 = vpop.f32.mrb[14].mxu1 }
 0x374   :  { %v3118_v4 = vmul.f32 -1.442695, %v858_v18  ;;  %v816_v51 = vpop.f32.mrb[23].mxu0  ;;  %v3472_v3 = vpop.f32.mrb[15].mxu1 }
 0x375   :  { %v3119_v5 = vmul.f32 -1.442695, %v859_v37  ;;  %v767_v37 = vsel %vm766_vm10, %v4698_v45, 0.0  ;;  %v4755_v50 = vpop.permute.xlu1 %885 }
 0x376   :  { %3922 = vpow2.f32 %v3118_v4  ;;  %vm887_vm12 = vcmp.eq.s32.totalorder %v4755_v50, 1 }
 0x377   :  { %3924 = vpow2.f32 %v3119_v5  ;;  %vm5027_vm2 = vmpackc.low %vm887_vm12, %vm766_vm10 }
 0x380   :  { %v3923_v32 = vpop.eup %3922 }
 0x381   :  { %v866_v38 = vadd.f32 1.0, %v3923_v32  ;;  %v3925_v44 = vpop.eup %3924 }
 0x382   :  { %v867_v39 = vadd.f32 1.0, %v3925_v44 }
 0x383   :  { %3926 = vrcp.f32 %v866_v38 }
 0x384   :  { %3928 = vrcp.f32 %v867_v39 }
 0x38d   :  { %v3927_v58 = vpop.eup %3926 }
 0x38e   :  { %v873_v8 = vmul.f32 %v3927_v58, %v872_v62  ;;  %v3929_v41 = vpop.eup %3928 }
 0x38f   :  { %v876_v18 = vsub.f32 1.0, %v3929_v41  ;;  %v878_v46 = vmul.f32 %v3929_v41, %v767_v37 }
 0x390   :  { %v874_v60 = vadd.f32 %v873_v8, %v4650_v7 }
 0x392   :  { %3930 = vtanh.f32 %v874_v60 }
 0x39c   :  { %v3931_v49 = vpop.eup %3930 }
 0x39d   :  { %v877_v4 = vmul.f32 %v3931_v49, %v876_v18 }
 0x39f   :  { %v4757_v51 = vadd.f32 %v878_v46, %v877_v4 }
 0x3a1   :  { %v4763_v7 = vsel %vm887_vm12, %v4757_v51, %v767_v37 }
 0x3a2   :  { %v898_v12 = vpack.c.bf16 %v4763_v7, %v4763_v7 }
 0x3a4   :  { %932 = vmatmul.mubr.bf16.vlgmr.msra.gmra.mrb[24].mxu0 %v898_v12  ;;  %3490 = vmatmul.mubr.bf16.vlgmr.msra.gmra.mrb[16].mxu1 %v898_v12 }
 0x3a5   :  { %1022 = vmatpush1.bf16.msra.mxu0 %v4479_v56  ;;  %3494 = vmatpush3.bf16.msra.mxu1 %v4491_v0 }
 0x3a6   :  { %1023 = vmatprep.subr.bf16.mxu0 %v4481_v57  ;;  %3495 = vmatprep.subr.bf16.mxu1 %v5636_v59 }
 0x3a7   :  { %1053 = vmatprep.mubr.bf16.mxu0 %v5637_v63  ;;  %3509 = vmatprep.mubr.msk.bf16.mxu1 %vm4246_vm3, %v5636_v59 }
 0x3a9   :  { %1024 = vmatpush1.bf16.msra.mxu0 %v4488_v42  ;;  %3496 = vmatpush3.bf16.msra.mxu1 %v4506_v53 }
 0x3aa   :  { %1025 = vmatprep.subr.bf16.mxu0 %v4494_v43  ;;  %3497 = vmatprep.subr.bf16.mxu1 %v5636_v59 }
 0x3ad   :  { %1026 = vmatpush1.bf16.msra.mxu0 %v4499_v11  ;;  %3498 = vmatpush3.bf16.msra.mxu1 %v4518_v20 }
 0x3ae   :  { %1027 = vmatprep.subr.bf16.mxu0 %v4503_v13  ;;  %3499 = vmatprep.subr.bf16.mxu1 %v5636_v59 }
 0x3b1   :  { %1028 = vmatpush1.bf16.msra.mxu0 %v4511_v17  ;;  %3500 = vmatpush3.bf16.msra.mxu1 %v4531_v23 }
 0x3b2   :  { %1029 = vmatprep.subr.bf16.mxu0 %v4515_v19  ;;  %3501 = vmatprep.subr.bf16.mxu1 %v5636_v59 }
 0x3b5   :  { %1030 = vmatpush1.bf16.msra.mxu0 %v4523_v21  ;;  %3502 = vmatpush3.bf16.msra.mxu1 %v4543_v28 }
 0x3b6   :  { %1031 = vmatprep.subr.bf16.mxu0 %v4528_v22  ;;  %3503 = vmatprep.subr.bf16.mxu1 %v5636_v59 }
 0x3b9   :  { %1032 = vmatpush1.bf16.msra.mxu0 %v4536_v26  ;;  %3504 = vmatpush3.bf16.msra.mxu1 %v4553_v31 }
 0x3ba   :  { %1033 = vmatprep.subr.bf16.mxu0 %v4540_v27  ;;  %3505 = vmatprep.subr.bf16.mxu1 %v5636_v59 }
 0x3bd   :  { %1034 = vmatpush1.bf16.msra.mxu0 %v4547_v29  ;;  %3506 = vmatpush3.bf16.msra.mxu1 %v4563_v35 }
 0x3be   :  { %1035 = vmatprep.subr.bf16.mxu0 %v4550_v30  ;;  %3507 = vmatprep.subr.bf16.mxu1 %v5636_v59 }
 0x3c1   :  { %1036 = vmatpush1.bf16.msra.mxu0 %v4558_v34  ;;  %3508 = vmatpush3.bf16.msra.mxu1 %v4568_v36 }
 0x3c2   :  { %1143 = vmatprep.subr.bf16.mxu0 %v4449_v1  ;;  %3513 = vmatprep.subr.bf16.mxu1 %v5636_v59 }
 0x477   :  { %v933_v3 = vpop.f32.mrb[24].mxu0  ;;  %v974_v5 = vpop.f32.mrb[16].mxu1 }
 0x478   :  { %v980_v32 = vadd.f32 %v933_v3, %v4652_v52  ;;  %v935_v38 = vpop.f32.mrb[25].mxu0  ;;  %v3491_v44 = vpop.f32.mrb[17].mxu1  ;;  %v994_v12 = vadd.f32 %v4691_v47, %v974_v5 }
 0x479   :  { %v981_v39 = vadd.f32 %v935_v38, %v4654_v10  ;;  %v937_v62 = vpop.f32.mrb[26].mxu0  ;;  %v977_v58 = vpop.f32.mrb[18].mxu1 }
 0x47a   :  { %v3121_v8 = vmul.f32 -1.442695, %v980_v32  ;;  %v938_v60 = vpop.f32.mrb[27].mxu0  ;;  %v3492_v41 = vpop.f32.mrb[19].mxu1 }
 0x47b   :  { %v3122_v18 = vmul.f32 -1.442695, %v981_v39  ;;  %v4807_v58 = vpop.permute.xlu1 %1007 }
 0x47c   :  { %3932 = vpow2.f32 %v3121_v8  ;;  %vm1009_vm13 = vcmp.eq.s32.totalorder %v4807_v58, 1 }
 0x47d   :  { %3934 = vpow2.f32 %v3122_v18 }
 0x486   :  { %v3933_v49 = vpop.eup %3932 }
 0x487   :  { %v988_v37 = vadd.f32 1.0, %v3933_v49  ;;  %v3935_v46 = vpop.eup %3934 }
 0x488   :  { %v989_v4 = vadd.f32 1.0, %v3935_v46 }
 0x489   :  { %3936 = vrcp.f32 %v988_v37 }
 0x48a   :  { %3938 = vrcp.f32 %v989_v4 }
 0x493   :  { %v3937_v52 = vpop.eup %3936 }
 0x494   :  { %v995_v3 = vmul.f32 %v3937_v52, %v994_v12  ;;  %v3939_v38 = vpop.eup %3938 }
 0x495   :  { %v998_v32 = vsub.f32 1.0, %v3939_v38  ;;  %v1000_v62 = vmul.f32 %v3939_v38, %v4763_v7 }
 0x496   :  { %v996_v10 = vadd.f32 %v995_v3, %v4644_v33 }
 0x498   :  { %3940 = vtanh.f32 %v996_v10 }
 0x4a2   :  { %v3941_v44 = vpop.eup %3940 }
 0x4a3   :  { %v999_v39 = vmul.f32 %v3941_v44, %v998_v32 }
 0x4a5   :  { %v4809_v8 = vadd.f32 %v1000_v62, %v999_v39 }
 0x4a7   :  { %v4816_v5 = vsel %vm1009_vm13, %v4809_v8, %v4763_v7 }
 0x4a8   :  { %v1020_v33 = vpack.c.bf16 %v4816_v5, %v4816_v5 }
 0x4aa   :  { %1054 = vmatmul.mubr.bf16.vlgmr.msra.gmra.mrb[28].mxu0 %v1020_v33  ;;  %3510 = vmatmul.mubr.bf16.vlgmr.msra.gmra.mrb[20].mxu1 %v1020_v33 }
 0x4ab   :  { %1144 = vmatpush1.bf16.msra.mxu0 %v4479_v56  ;;  %3514 = vmatpush3.bf16.msra.mxu1 %v4491_v0 }
 0x4ac   :  { %1145 = vmatprep.subr.bf16.mxu0 %v4481_v57  ;;  %3515 = vmatprep.subr.bf16.mxu1 %v5636_v59 }
 0x4ad   :  { %1175 = vmatprep.mubr.bf16.mxu0 %v5637_v63  ;;  %3529 = vmatprep.mubr.msk.bf16.mxu1 %vm4246_vm3, %v5636_v59 }
 0x4af   :  { %1146 = vmatpush1.bf16.msra.mxu0 %v4488_v42  ;;  %3516 = vmatpush3.bf16.msra.mxu1 %v4506_v53 }
 0x4b0   :  { %1147 = vmatprep.subr.bf16.mxu0 %v4494_v43  ;;  %3517 = vmatprep.subr.bf16.mxu1 %v5636_v59 }
 0x4b3   :  { %1148 = vmatpush1.bf16.msra.mxu0 %v4499_v11  ;;  %3518 = vmatpush3.bf16.msra.mxu1 %v4518_v20 }
 0x4b4   :  { %1149 = vmatprep.subr.bf16.mxu0 %v4503_v13  ;;  %3519 = vmatprep.subr.bf16.mxu1 %v5636_v59 }
 0x4b7   :  { %1150 = vmatpush1.bf16.msra.mxu0 %v4511_v17  ;;  %3520 = vmatpush3.bf16.msra.mxu1 %v4531_v23 }
 0x4b8   :  { %1151 = vmatprep.subr.bf16.mxu0 %v4515_v19  ;;  %3521 = vmatprep.subr.bf16.mxu1 %v5636_v59 }
 0x4bb   :  { %1152 = vmatpush1.bf16.msra.mxu0 %v4523_v21  ;;  %3522 = vmatpush3.bf16.msra.mxu1 %v4543_v28 }
 0x4bc   :  { %1153 = vmatprep.subr.bf16.mxu0 %v4528_v22  ;;  %3523 = vmatprep.subr.bf16.mxu1 %v5636_v59 }
 0x4bf   :  { %1154 = vmatpush1.bf16.msra.mxu0 %v4536_v26  ;;  %3524 = vmatpush3.bf16.msra.mxu1 %v4553_v31 }
 0x4c0   :  { %1155 = vmatprep.subr.bf16.mxu0 %v4540_v27  ;;  %3525 = vmatprep.subr.bf16.mxu1 %v5636_v59 }
 0x4c3   :  { %1156 = vmatpush1.bf16.msra.mxu0 %v4547_v29  ;;  %3526 = vmatpush3.bf16.msra.mxu1 %v4563_v35 }
 0x4c4   :  { %1157 = vmatprep.subr.bf16.mxu0 %v4550_v30  ;;  %3527 = vmatprep.subr.bf16.mxu1 %v5636_v59 }
 0x4c7   :  { %1158 = vmatpush1.bf16.msra.mxu0 %v4558_v34  ;;  %3528 = vmatpush3.bf16.msra.mxu1 %v4568_v36 }
 0x4c8   :  { %1265 = vmatprep.subr.bf16.mxu0 %v4449_v1  ;;  %3533 = vmatprep.subr.bf16.mxu1 %v5636_v59 }
 0x57d   :  { %v1055_v7 = vpop.f32.mrb[28].mxu0  ;;  %v1096_v60 = vpop.f32.mrb[20].mxu1 }
 0x57e   :  { %v1102_v41 = vadd.f32 %v1055_v7, %v4656_v14  ;;  %v1057_v18 = vpop.f32.mrb[29].mxu0  ;;  %v3511_v49 = vpop.f32.mrb[21].mxu1  ;;  %v1116_v62 = vadd.f32 %v4691_v47, %v1096_v60 }
 0x57f   :  { %v1103_v37 = vadd.f32 %v1057_v18, %v4658_v16  ;;  %v1059_v46 = vpop.f32.mrb[30].mxu0  ;;  %v1099_v4 = vpop.f32.mrb[22].mxu1 }
 0x580   :  { %v3124_v12 = vmul.f32 -1.442695, %v1102_v41  ;;  %v1060_v52 = vpop.f32.mrb[31].mxu0  ;;  %v3512_v3 = vpop.f32.mrb[23].mxu1 }
 0x581   :  { %v3125_v10 = vmul.f32 -1.442695, %v1103_v37  ;;  %v4860_v37 = vpop.permute.xlu1 %1129 }
 0x582   :  { %3942 = vpow2.f32 %v3124_v12  ;;  %vm1131_vm14 = vcmp.eq.s32.totalorder %v4860_v37, 1 }
 0x583   :  { %3944 = vpow2.f32 %v3125_v10  ;;  %vm3232_vm4 = vmpackc.low %vm1131_vm14, %vm1009_vm13 }
 0x58c   :  { %v3943_v38 = vpop.eup %3942 }
 0x58d   :  { %v1110_v1 = vadd.f32 1.0, %v3943_v38  ;;  %v3945_v32 = vpop.eup %3944 }
 0x58e   :  { %v1111_v44 = vadd.f32 1.0, %v3945_v32 }
 0x58f   :  { %3946 = vrcp.f32 %v1110_v1 }
 0x590   :  { %3948 = vrcp.f32 %v1111_v44 }
 0x599   :  { %v3947_v14 = vpop.eup %3946 }
 0x59a   :  { %v1117_v39 = vmul.f32 %v3947_v14, %v1116_v62  ;;  %v3949_v33 = vpop.eup %3948 }
 0x59b   :  { %v1120_v7 = vsub.f32 1.0, %v3949_v33  ;;  %v1122_v18 = vmul.f32 %v3949_v33, %v4816_v5 }
 0x59c   :  { %v1118_v16 = vadd.f32 %v1117_v39, %v4647_v2 }
 0x59e   :  { %3950 = vtanh.f32 %v1118_v16 }
 0x5a8   :  { %v3951_v41 = vpop.eup %3950 }
 0x5a9   :  { %v1121_v49 = vmul.f32 %v3951_v41, %v1120_v7 }
 0x5ab   :  { %v4862_v46 = vadd.f32 %v1122_v18, %v1121_v49 }
 0x5ad   :  { %v4869_v60 = vsel %vm1131_vm14, %v4862_v46, %v4816_v5 }
 0x5ae   :  { %v1142_v2 = vpack.c.bf16 %v4869_v60, %v4869_v60 }
 0x5b0   :  { %1176 = vmatmul.mubr.bf16.vlgmr.msra.gmra.mrb[32].mxu0 %v1142_v2  ;;  %3530 = vmatmul.mubr.bf16.vlgmr.msra.gmra.mrb[24].mxu1 %v1142_v2 }
 0x5b1   :  { %1266 = vmatpush1.bf16.msra.mxu0 %v4479_v56  ;;  %3534 = vmatpush3.bf16.msra.mxu1 %v4491_v0  ;;  %v4906_v56 = vld [vmem:[#allocation5 + $0x4] ss:$12 sps:$4 sm:$0xff]  }
 0x5b2   :  { %1267 = vmatprep.subr.bf16.mxu0 %v4481_v57  ;;  %3535 = vmatprep.subr.bf16.mxu1 %v5636_v59 }
 0x5b3   :  { %1297 = vmatprep.mubr.bf16.mxu0 %v5637_v63  ;;  %3549 = vmatprep.mubr.msk.bf16.mxu1 %vm4246_vm3, %v5636_v59 }
 0x5b5   :  { %1268 = vmatpush1.bf16.msra.mxu0 %v4488_v42  ;;  %3536 = vmatpush3.bf16.msra.mxu1 %v4506_v53 }
 0x5b6   :  { %1269 = vmatprep.subr.bf16.mxu0 %v4494_v43  ;;  %3537 = vmatprep.subr.bf16.mxu1 %v5636_v59 }
 0x5b9   :  { %1270 = vmatpush1.bf16.msra.mxu0 %v4499_v11  ;;  %3538 = vmatpush3.bf16.msra.mxu1 %v4518_v20 }
 0x5ba   :  { %1271 = vmatprep.subr.bf16.mxu0 %v4503_v13  ;;  %3539 = vmatprep.subr.bf16.mxu1 %v5636_v59 }
 0x5bd   :  { %1272 = vmatpush1.bf16.msra.mxu0 %v4511_v17  ;;  %3540 = vmatpush3.bf16.msra.mxu1 %v4531_v23 }
 0x5be   :  { %1273 = vmatprep.subr.bf16.mxu0 %v4515_v19  ;;  %3541 = vmatprep.subr.bf16.mxu1 %v5636_v59 }
 0x5c1   :  { %1274 = vmatpush1.bf16.msra.mxu0 %v4523_v21  ;;  %3542 = vmatpush3.bf16.msra.mxu1 %v4543_v28 }
 0x5c2   :  { %1275 = vmatprep.subr.bf16.mxu0 %v4528_v22  ;;  %3543 = vmatprep.subr.bf16.mxu1 %v5636_v59 }
 0x5c5   :  { %1276 = vmatpush1.bf16.msra.mxu0 %v4536_v26  ;;  %3544 = vmatpush3.bf16.msra.mxu1 %v4553_v31 }
 0x5c6   :  { %1277 = vmatprep.subr.bf16.mxu0 %v4540_v27  ;;  %3545 = vmatprep.subr.bf16.mxu1 %v5636_v59 }
 0x5c9   :  { %1278 = vmatpush1.bf16.msra.mxu0 %v4547_v29  ;;  %3546 = vmatpush3.bf16.msra.mxu1 %v4563_v35 }
 0x5ca   :  { %1279 = vmatprep.subr.bf16.mxu0 %v4550_v30  ;;  %3547 = vmatprep.subr.bf16.mxu1 %v5636_v59 }
 0x5cd   :  { %1280 = vmatpush1.bf16.msra.mxu0 %v4558_v34  ;;  %3548 = vmatpush3.bf16.msra.mxu1 %v4568_v36 }
 0x5ce   :  { %1387 = vmatprep.subr.bf16.mxu0 %v4906_v56  ;;  %3553 = vmatprep.subr.bf16.mxu1 %v5636_v59 }
 0x683   :  { %v1177_v57 = vpop.f32.mrb[32].mxu0  ;;  %v1218_v42 = vpop.f32.mrb[24].mxu1 }
 0x684   :  { %v1224_v43 = vadd.f32 %v1177_v57, %v4672_v25  ;;  %v1179_v5 = vpop.f32.mrb[33].mxu0  ;;  %v3531_v4 = vpop.f32.mrb[25].mxu1  ;;  %v1238_v16 = vadd.f32 %v4691_v47, %v1218_v42 }
 0x685   :  { %v1225_v12 = vadd.f32 %v1179_v5, %v4674_v61  ;;  %v1181_v52 = vpop.f32.mrb[34].mxu0  ;;  %v1221_v3 = vpop.f32.mrb[26].mxu1  ;;  %v4928_v5 = vld [vmem:[#allocation5] ss:$12 sps:$4 sm:$0xff]   ;;  %v4932_v4 = vld [vmem:[#allocation5 + $0x1c] ss:$12 sps:$4 sm:$0xff]  }
 0x686   :  { %v3127_v10 = vmul.f32 -1.442695, %v1224_v43  ;;  %v1182_v38 = vpop.f32.mrb[35].mxu0  ;;  %v3532_v1 = vpop.f32.mrb[27].mxu1 }
 0x687   :  { %v3128_v32 = vmul.f32 -1.442695, %v1225_v12  ;;  %v4915_v57 = vpop.permute.xlu1 %1251  ;;  %v4943_v12 = vld [vmem:[#allocation5 + $0x34] ss:$12 sps:$4 sm:$0xff]  }
 0x688   :  { %3952 = vpow2.f32 %v3127_v10  ;;  %5638 = vst [vmem:[#allocation23_spill] sm:$0xff] %v4915_v57  ;;  %vm1253_vm15 = vcmp.eq.s32.totalorder %v4915_v57, 1 }
 0x689   :  { %3954 = vpow2.f32 %v3128_v32 }
 0x68b   :  { %v4976_v38 = vpop.permute.xlu1 %1373 }
 0x68c   :  { %5639 = vst [vmem:[#allocation24_spill] sm:$0xff] %v4976_v38  ;;  %vm1375_vm0 = vcmp.eq.s32.totalorder %v4976_v38, 1 }
 0x68d   :  { %vm3235_vm5 = vmpackc.low %vm1375_vm0, %vm1253_vm15 }
 0x692   :  { %v3953_v44 = vpop.eup %3952 }
 0x693   :  { %v1232_v62 = vadd.f32 1.0, %v3953_v44  ;;  %v3955_v14 = vpop.eup %3954  ;;  %v4077_v44 = vld [vmem:[#allocation5 + $0x8] ss:$12 sps:$4 sm:$0xff]  }
 0x694   :  { %v1233_v39 = vadd.f32 1.0, %v3955_v14  ;;  %v4079_v14 = vld [vmem:[#allocation5 + $0x30] ss:$12 sps:$4 sm:$0xff]  }
 0x695   :  { %3956 = vrcp.f32 %v1232_v62  ;;  %v4078_v62 = vld [vmem:[#allocation5 + $0x20] ss:$12 sps:$4 sm:$0xff]  }
 0x696   :  { %3958 = vrcp.f32 %v1233_v39  ;;  %v4080_v39 = vld [vmem:[#allocation5 + $0x38] ss:$12 sps:$4 sm:$0xff]  }
 0x69f   :  { %v3957_v25 = vpop.eup %3956 }
 0x6a0   :  { %v1239_v33 = vmul.f32 %v3957_v25, %v1238_v16  ;;  %v3959_v7 = vpop.eup %3958  ;;  %v4081_v16 = vld [vmem:[#allocation5 + $0x4c] ss:$12 sps:$4 sm:$0xff]   ;;  %v4082_v25 = vld [vmem:[#allocation5 + $0x48] ss:$12 sps:$4 sm:$0xff]  }
 0x6a1   :  { %v1242_v41 = vsub.f32 1.0, %v3959_v7  ;;  %v1244_v49 = vmul.f32 %v3959_v7, %v4869_v60  ;;  %v4085_v7 = vld [vmem:[#allocation5 + $0x60] ss:$12 sps:$4 sm:$0xff]  }
 0x6a2   :  { %v1240_v61 = vadd.f32 %v1239_v33, %v4664_v40  ;;  %v4083_v33 = vld [vmem:[#allocation5 + $0x50] ss:$12 sps:$4 sm:$0xff]  }
 0x6a4   :  { %3960 = vtanh.f32 %v1240_v61  ;;  %v4084_v61 = vld [vmem:[#allocation5 + $0x64] ss:$12 sps:$4 sm:$0xff]  }
 0x6ae   :  { %v3961_v18 = vpop.eup %3960 }
 0x6af   :  { %v1243_v2 = vmul.f32 %v3961_v18, %v1242_v41  ;;  %v4086_v41 = vld [vmem:[#allocation5 + $0x68] ss:$12 sps:$4 sm:$0xff]  }
 0x6b0   :  { %v4087_v18 = vld [vmem:[#allocation5 + $0x7c] ss:$12 sps:$4 sm:$0xff]  }
 0x6b1   :  { %v4917_v43 = vadd.f32 %v1244_v49, %v1243_v2  ;;  %v4088_v49 = vld [vmem:[#allocation5 + $0x78] ss:$12 sps:$4 sm:$0xff]   ;;  %v4089_v2 = vld [vmem:[#allocation5 + $0x80] ss:$12 sps:$4 sm:$0xff]  }
 0x6b3   :  { %v4924_v42 = vsel %vm1253_vm15, %v4917_v43, %v4869_v60  ;;  %v4939_v60 = vld [vmem:[#allocation5 + $0x18] ss:$12 sps:$4 sm:$0xff]  }
 0x6b4   :  { %v1264_v40 = vpack.c.bf16 %v4924_v42, %v4924_v42 }
 0x6b6   :  { %1298 = vmatmul.mubr.bf16.vlgmr.msra.gmra.mrb[36].mxu0 %v1264_v40  ;;  %3550 = vmatmul.mubr.bf16.vlgmr.msra.gmra.mrb[28].mxu1 %v1264_v40  ;;  %v4091_v40 = vld [vmem:[#allocation5 + $0x90] ss:$12 sps:$4 sm:$0xff]  }
 0x6b7   :  { %1388 = vmatpush1.bf16.msra.mxu0 %v4928_v5  ;;  %3554 = vmatpush3.bf16.msra.mxu1 %v4491_v0 }
 0x6b8   :  { %1389 = vmatprep.subr.bf16.mxu0 %v4932_v4  ;;  %3555 = vmatprep.subr.bf16.mxu1 %v5636_v59 }
 0x6b9   :  { %1419 = vmatprep.mubr.bf16.mxu0 %v5637_v63  ;;  %3569 = vmatprep.mubr.msk.bf16.mxu1 %vm4246_vm3, %v5636_v59 }
 0x6bb   :  { %1390 = vmatpush1.bf16.msra.mxu0 %v4939_v60  ;;  %3556 = vmatpush3.bf16.msra.mxu1 %v4506_v53 }
 0x6bc   :  { %1391 = vmatprep.subr.bf16.mxu0 %v4943_v12  ;;  %3557 = vmatprep.subr.bf16.mxu1 %v5636_v59 }
 0x6bf   :  { %1392 = vmatpush1.bf16.msra.mxu0 %v4499_v11  ;;  %3558 = vmatpush3.bf16.msra.mxu1 %v4518_v20 }
 0x6c0   :  { %1393 = vmatprep.subr.bf16.mxu0 %v4503_v13  ;;  %3559 = vmatprep.subr.bf16.mxu1 %v5636_v59 }
 0x6c3   :  { %1394 = vmatpush1.bf16.msra.mxu0 %v4511_v17  ;;  %3560 = vmatpush3.bf16.msra.mxu1 %v4531_v23 }
 0x6c4   :  { %1395 = vmatprep.subr.bf16.mxu0 %v4515_v19  ;;  %3561 = vmatprep.subr.bf16.mxu1 %v5636_v59 }
 0x6c7   :  { %1396 = vmatpush1.bf16.msra.mxu0 %v4523_v21  ;;  %3562 = vmatpush3.bf16.msra.mxu1 %v4543_v28 }
 0x6c8   :  { %1397 = vmatprep.subr.bf16.mxu0 %v4528_v22  ;;  %3563 = vmatprep.subr.bf16.mxu1 %v5636_v59 }
 0x6cb   :  { %1398 = vmatpush1.bf16.msra.mxu0 %v4536_v26  ;;  %3564 = vmatpush3.bf16.msra.mxu1 %v4553_v31 }
 0x6cc   :  { %1399 = vmatprep.subr.bf16.mxu0 %v4540_v27  ;;  %3565 = vmatprep.subr.bf16.mxu1 %v5636_v59 }
 0x6cf   :  { %1400 = vmatpush1.bf16.msra.mxu0 %v4547_v29  ;;  %3566 = vmatpush3.bf16.msra.mxu1 %v4563_v35 }
 0x6d0   :  { %1401 = vmatprep.subr.bf16.mxu0 %v4550_v30  ;;  %3567 = vmatprep.subr.bf16.mxu1 %v5636_v59 }
 0x6d3   :  { %1402 = vmatpush1.bf16.msra.mxu0 %v4558_v34  ;;  %3568 = vmatpush3.bf16.msra.mxu1 %v4568_v36 }
 0x6d4   :  { %1509 = vmatprep.subr.bf16.mxu0 %v4906_v56  ;;  %3573 = vmatprep.subr.bf16.mxu1 %v5636_v59 }
 0x789   :  { %v1299_v0 = vpop.f32.mrb[36].mxu0  ;;  %v1340_v11 = vpop.f32.mrb[28].mxu1 }
 0x78a   :  { %v1346_v13 = vadd.f32 %v1299_v0, %v4676_v6  ;;  %v1301_v53 = vpop.f32.mrb[37].mxu0  ;;  %v3551_v17 = vpop.f32.mrb[29].mxu1  ;;  %v1360_v34 = vadd.f32 %v4691_v47, %v1340_v11  ;;  %v3834_v0 = vld [vmem:[#allocation8 + $0x4] ss:$12 sps:$4 sm:$0xff]   ;;  %v3835_v11 = vld [vmem:[#allocation8 + $0x8] ss:$12 sps:$4 sm:$0xff]  }
 0x78b   :  { %v1347_v19 = vadd.f32 %v1301_v53, %v4678_v9  ;;  %v1303_v20 = vpop.f32.mrb[38].mxu0  ;;  %v1343_v21 = vpop.f32.mrb[30].mxu1 }
 0x78c   :  { %v3130_v22 = vmul.f32 -1.442695, %v1346_v13  ;;  %v1304_v23 = vpop.f32.mrb[39].mxu0  ;;  %v3552_v26 = vpop.f32.mrb[31].mxu1  ;;  %v5640_v21 = vld [vmem:[#allocation21_spill] sm:$0xff] }
 0x78d   :  { %v3131_v27 = vmul.f32 -1.442695, %v1347_v19 }
 0x78e   :  { %3962 = vpow2.f32 %v3130_v22 }
 0x78f   :  { %3964 = vpow2.f32 %v3131_v27 }
 0x798   :  { %v3963_v28 = vpop.eup %3962 }
 0x799   :  { %v1354_v29 = vadd.f32 1.0, %v3963_v28  ;;  %v3965_v30 = vpop.eup %3964 }
 0x79a   :  { %v1355_v31 = vadd.f32 1.0, %v3965_v30 }
 0x79b   :  { %3966 = vrcp.f32 %v1354_v29 }
 0x79c   :  { %3968 = vrcp.f32 %v1355_v31 }
 0x7a5   :  { %v3967_v35 = vpop.eup %3966 }
 0x7a6   :  { %v1361_v36 = vmul.f32 %v3967_v35, %v1360_v34  ;;  %v3969_v9 = vpop.eup %3968 }
 0x7a7   :  { %v1364_v56 = vsub.f32 1.0, %v3969_v9  ;;  %v1366_v3 = vmul.f32 %v3969_v9, %v4924_v42 }
 0x7a8   :  { %v1362_v6 = vadd.f32 %v1361_v36, %v4670_v24 }
 0x7aa   :  { %3970 = vtanh.f32 %v1362_v6 }
 0x7b4   :  { %v3971_v52 = vpop.eup %3970 }
 0x7b5   :  { %v1365_v10 = vmul.f32 %v3971_v52, %v1364_v56  ;;  %v5641_v56 = vld [vmem:[#allocation19_spill] sm:$0xff] }
 0x7b7   :  { %v4978_v1 = vadd.f32 %v1366_v3, %v1365_v10 }
 0x7b9   :  { %v4985_v32 = vsel %vm1375_vm0, %v4978_v1, %v4924_v42  ;;  %v4090_v42 = vld [vmem:[#allocation5 + $0x94] ss:$12 sps:$4 sm:$0xff]  }
 0x7ba   :  { %v1386_v24 = vpack.c.bf16 %v4985_v32, %v4985_v32 }
 0x7bc   :  { %1420 = vmatmul.mubr.bf16.vlgmr.msra.gmra.mrb[40].mxu0 %v1386_v24  ;;  %3570 = vmatmul.mubr.bf16.vlgmr.msra.gmra.mrb[32].mxu1 %v1386_v24 }
 0x7bd   :  { %1510 = vmatpush1.bf16.msra.mxu0 %v4928_v5  ;;  %3574 = vmatpush3.bf16.msra.mxu1 %v4077_v44  ;;  %v4092_v5 = vld [vmem:[#allocation5 + $0x98] ss:$12 sps:$4 sm:$0xff]  }
 0x7be   :  { %1511 = vmatprep.subr.bf16.mxu0 %v4932_v4  ;;  %3575 = vmatprep.subr.bf16.mxu1 %v5636_v59  ;;  %v4093_v4 = vld [vmem:[#allocation5 + $0xac] ss:$12 sps:$4 sm:$0xff]  }
 0x7bf   :  { %1541 = vmatprep.mubr.bf16.mxu0 %v5637_v63  ;;  %3589 = vmatprep.mubr.msk.bf16.mxu1 %vm4246_vm3, %v5636_v59 }
 0x7c1   :  { %1512 = vmatpush1.bf16.msra.mxu0 %v4939_v60  ;;  %3576 = vmatpush3.bf16.msra.mxu1 %v4078_v62  ;;  %v4094_v60 = vld [vmem:[#allocation5 + $0xa8] ss:$12 sps:$4 sm:$0xff]  }
 0x7c2   :  { %1513 = vmatprep.subr.bf16.mxu0 %v4943_v12  ;;  %3577 = vmatprep.subr.bf16.mxu1 %v5636_v59  ;;  %v4095_v12 = vld [vmem:[#allocation5 + $0xb0] ss:$12 sps:$4 sm:$0xff]  }
 0x7c5   :  { %1514 = vmatpush1.bf16.msra.mxu0 %v4079_v14  ;;  %3578 = vmatpush3.bf16.msra.mxu1 %v4080_v39  ;;  %v5008_v14 = vpop.permute.xlu1 %1495 }
 0x7c6   :  { %1515 = vmatprep.subr.bf16.mxu0 %v4081_v16  ;;  %3579 = vmatprep.subr.bf16.mxu1 %v5636_v59  ;;  %5642 = vst [vmem:[#allocation21_spill] sm:$0xff] %v5008_v14  ;;  %vm1497_vm1 = vcmp.eq.s32.totalorder %v5008_v14, 1  ;;  %v3832_v16 = vld [vmem:[#allocation8] ss:$12 sps:$4 sm:$0xff]  }
 0x7c9   :  { %1516 = vmatpush1.bf16.msra.mxu0 %v4082_v25  ;;  %3580 = vmatpush3.bf16.msra.mxu1 %v4083_v33  ;;  %v3838_v33 = vld [vmem:[#allocation8 + $0x1c] ss:$12 sps:$4 sm:$0xff]  }
 0x7ca   :  { %1517 = vmatprep.subr.bf16.mxu0 %v4084_v61  ;;  %3581 = vmatprep.subr.bf16.mxu1 %v5636_v59  ;;  %v3839_v61 = vld [vmem:[#allocation8 + $0x20] ss:$12 sps:$4 sm:$0xff]  }
 0x7cd   :  { %1518 = vmatpush1.bf16.msra.mxu0 %v4085_v7  ;;  %3582 = vmatpush3.bf16.msra.mxu1 %v4086_v41  ;;  %v3230_v7 = vpack.c.bf16 %v4757_v51, %v4698_v45  ;;  %v3840_v45 = vld [vmem:[#allocation8 + $0x30] ss:$12 sps:$4 sm:$0xff]   ;;  %v3846_v51 = vld [vmem:[#allocation8 + $0x4c] ss:$12 sps:$4 sm:$0xff]  }
 0x7ce   :  { %1519 = vmatprep.subr.bf16.mxu0 %v4087_v18  ;;  %3583 = vmatprep.subr.bf16.mxu1 %v5636_v59  ;;  %v3842_v18 = vld [vmem:[#allocation8 + $0x34] ss:$12 sps:$4 sm:$0xff]  }
 0x7d1   :  { %1520 = vmatpush1.bf16.msra.mxu0 %v4088_v49  ;;  %3584 = vmatpush3.bf16.msra.mxu1 %v4089_v2  ;;  %v3843_v49 = vld [vmem:[#allocation8 + $0x38] ss:$12 sps:$4 sm:$0xff]   ;;  %v3847_v2 = vld [vmem:[#allocation8 + $0x50] ss:$12 sps:$4 sm:$0xff]  }
 0x7d2   :  { %1521 = vmatprep.subr.bf16.mxu0 %v4090_v42  ;;  %3585 = vmatprep.subr.bf16.mxu1 %v5636_v59  ;;  %v3844_v42 = vld [vmem:[#allocation8 + $0x48] ss:$12 sps:$4 sm:$0xff]  }
 0x7d5   :  { %1522 = vmatpush1.bf16.msra.mxu0 %v4091_v40  ;;  %3586 = vmatpush3.bf16.msra.mxu1 %v4092_v5  ;;  %v3850_v40 = vld [vmem:[#allocation8 + $0x64] ss:$12 sps:$4 sm:$0xff]   ;;  %v3851_v5 = vld [vmem:[#allocation8 + $0x68] ss:$12 sps:$4 sm:$0xff]  }
 0x7d6   :  { %1523 = vmatprep.subr.bf16.mxu0 %v4093_v4  ;;  %3587 = vmatprep.subr.bf16.mxu1 %v5636_v59  ;;  %v3848_v4 = vld [vmem:[#allocation8 + $0x60] ss:$12 sps:$4 sm:$0xff]  }
 0x7d9   :  { %1524 = vmatpush1.bf16.msra.mxu0 %v4094_v60  ;;  %3588 = vmatpush3.bf16.msra.mxu1 %v4095_v12  ;;  %v3854_v60 = vld [vmem:[#allocation8 + $0x7c] ss:$12 sps:$4 sm:$0xff]   ;;  %v3855_v12 = vld [vmem:[#allocation8 + $0x80] ss:$12 sps:$4 sm:$0xff]  }
 0x7da   :  { %1814 = vmatprep.subr.bf16.mxu0 %v3834_v0  ;;  %3593 = vmatprep.subr.bf16.mxu1 %v3835_v11  ;;  %v3852_v0 = vld [vmem:[#allocation8 + $0x78] ss:$12 sps:$4 sm:$0xff]  }
 0x88f   :  { %v1421_v13 = vpop.f32.mrb[40].mxu0  ;;  %v1462_v53 = vpop.f32.mrb[32].mxu1 }
 0x890   :  { %v1468_v17 = vadd.f32 %v1421_v13, %v4680_v15  ;;  %v1423_v19 = vpop.f32.mrb[41].mxu0  ;;  %v3571_v20 = vpop.f32.mrb[33].mxu1  ;;  %v1482_v6 = vadd.f32 %v4691_v47, %v1462_v53  ;;  %v3859_v13 = vld [vmem:[#allocation8 + $0x98] ss:$12 sps:$4 sm:$0xff]   ;;  %v3856_v53 = vld [vmem:[#allocation8 + $0x90] ss:$12 sps:$4 sm:$0xff]  }
 0x891   :  { %v1469_v22 = vadd.f32 %v1423_v19, %v5640_v21  ;;  %v1425_v23 = vpop.f32.mrb[42].mxu0  ;;  %v1465_v26 = vpop.f32.mrb[34].mxu1  ;;  %v3863_v19 = vld [vmem:[#allocation8 + $0xb0] ss:$12 sps:$4 sm:$0xff]   ;;  %v3860_v20 = vld [vmem:[#allocation8 + $0xa8] ss:$12 sps:$4 sm:$0xff]   ;;  %v3233_v21 = vpack.c.bf16 %v4862_v46, %v4809_v8 }
 0x892   :  { %v3133_v27 = vmul.f32 -1.442695, %v1468_v17  ;;  %v1426_v28 = vpop.f32.mrb[43].mxu0  ;;  %v3572_v29 = vpop.f32.mrb[35].mxu1  ;;  %v3862_v17 = vld [vmem:[#allocation8 + $0xac] ss:$12 sps:$4 sm:$0xff]  }
 0x893   :  { %v3134_v30 = vmul.f32 -1.442695, %v1469_v22  ;;  %v3236_v22 = vpack.c.bf16 %v4978_v1, %v4917_v43  ;;  %v5052_v8 = vld [vmem:[#allocation10 + $0x4] ss:$12 sps:$4 sm:$0xff]   ;;  %v5054_v46 = vld [vmem:[#allocation10] ss:$12 sps:$4 sm:$0xff]  }
 0x894   :  { %3972 = vpow2.f32 %v3133_v27  ;;  %v5058_v43 = vld [vmem:[#allocation10 + $0x1c] ss:$12 sps:$4 sm:$0xff]   ;;  %v5060_v1 = vld [vmem:[#allocation10 + $0x18] ss:$12 sps:$4 sm:$0xff]   ;;  %v5064_v23 = vld [vmem:[#allocation10 + $0x34] ss:$12 sps:$4 sm:$0xff]  }
 0x895   :  { %3974 = vpow2.f32 %v3134_v30  ;;  %v5066_v26 = vld [vmem:[#allocation10 + $0x30] ss:$12 sps:$4 sm:$0xff]   ;;  %v5070_v27 = vld [vmem:[#allocation10 + $0x4c] ss:$12 sps:$4 sm:$0xff]   ;;  %v5072_v28 = vld [vmem:[#allocation10 + $0x48] ss:$12 sps:$4 sm:$0xff]  }
 0x896   :  { %v5076_v29 = vld [vmem:[#allocation10 + $0x64] ss:$12 sps:$4 sm:$0xff]   ;;  %v5078_v30 = vld [vmem:[#allocation10 + $0x60] ss:$12 sps:$4 sm:$0xff]  }
 0x89e   :  { %v3973_v31 = vpop.eup %3972 }
 0x89f   :  { %v1476_v34 = vadd.f32 1.0, %v3973_v31  ;;  %v3975_v35 = vpop.eup %3974  ;;  %v5082_v31 = vld [vmem:[#allocation10 + $0x7c] ss:$12 sps:$4 sm:$0xff]  }
 0x8a0   :  { %v1477_v36 = vadd.f32 1.0, %v3975_v35  ;;  %v5088_v35 = vld [vmem:[#allocation10 + $0x94] ss:$12 sps:$4 sm:$0xff]  }
 0x8a1   :  { %3976 = vrcp.f32 %v1476_v34  ;;  %v5084_v34 = vld [vmem:[#allocation10 + $0x78] ss:$12 sps:$4 sm:$0xff]  }
 0x8a2   :  { %3978 = vrcp.f32 %v1477_v36  ;;  %v5090_v36 = vld [vmem:[#allocation10 + $0x8] ss:$12 sps:$4 sm:$0xff]  }
 0x8ab   :  { %v3977_v15 = vpop.eup %3976 }
 0x8ac   :  { %v1483_v9 = vmul.f32 %v3977_v15, %v1482_v6  ;;  %v3979_v3 = vpop.eup %3978  ;;  %v5092_v6 = vld [vmem:[#allocation10 + $0x90] ss:$12 sps:$4 sm:$0xff]   ;;  %v5097_v15 = vld [vmem:[#allocation10 + $0xac] ss:$12 sps:$4 sm:$0xff]  }
 0x8ad   :  { %v1486_v10 = vsub.f32 1.0, %v3979_v3  ;;  %v1488_v62 = vmul.f32 %v3979_v3, %v4985_v32  ;;  %v5112_v3 = vld [vmem:[#allocation10 + $0x50] ss:$12 sps:$4 sm:$0xff]  }
 0x8ae   :  { %v1484_v52 = vadd.f32 %v1483_v9, %v5641_v56  ;;  %v5100_v9 = vld [vmem:[#allocation10 + $0xa8] ss:$12 sps:$4 sm:$0xff]   ;;  %v5102_v56 = vld [vmem:[#allocation10 + $0x20] ss:$12 sps:$4 sm:$0xff]  }
 0x8b0   :  { %3980 = vtanh.f32 %v1484_v52  ;;  %v5108_v52 = vld [vmem:[#allocation10 + $0x38] ss:$12 sps:$4 sm:$0xff]  }
 0x8ba   :  { %v3981_v24 = vpop.eup %3980 }
 0x8bb   :  { %v1487_v44 = vmul.f32 %v3981_v24, %v1486_v10  ;;  %v5116_v10 = vld [vmem:[#allocation10 + $0x68] ss:$12 sps:$4 sm:$0xff]   ;;  %v5120_v24 = vld [vmem:[#allocation10 + $0x80] ss:$12 sps:$4 sm:$0xff]  }
 0x8bd   :  { %v5010_v39 = vadd.f32 %v1488_v62, %v1487_v44  ;;  %v5124_v44 = vld [vmem:[#allocation10 + $0x98] ss:$12 sps:$4 sm:$0xff]   ;;  %v5128_v62 = vld [vmem:[#allocation10 + $0xb0] ss:$12 sps:$4 sm:$0xff]  }
 0x8bf   :  { %v5017_v47 = vsel %vm1497_vm1, %v5010_v39, %v4985_v32  ;;  %v3836_v32 = vld [vmem:[#allocation8 + $0x18] ss:$12 sps:$4 sm:$0xff]  }
 0x8c0   :  { %v1508_v25 = vpack.c.bf16 %v5017_v47, %v5017_v47 }
 0x8c2   :  { %1542 = vmatmul.mubr.bf16.vlgmr.msra.gmra.mrb[44].mxu0 %v1508_v25  ;;  %3590 = vmatmul.mubr.bf16.vlgmr.msra.gmra.mrb[36].mxu1 %v1508_v25 }
 0x8c3   :  { %1815 = vmatpush1.bf16.msra.mxu0 %v3832_v16  ;;  %3594 = vmatpush3.bf16.msra.mxu1 %v3835_v11  ;;  %v3858_v11 = vld [vmem:[#allocation8 + $0x94] ss:$12 sps:$4 sm:$0xff]  }
 0x8c4   :  { %3609 = vmatprep.mubr.msk.bf16.mxu1 %vm5027_vm2, %v3230_v7  ;;  %1816 = vmatprep.subr.bf16.mxu0 %v3838_v33  ;;  %v5645_v33 = vld [vmem:[#allocation22_spill] sm:$0xff] }
 0x8c5   :  { %3595 = vmatprep.subr.bf16.mxu1 %v3839_v61  ;;  %1846 = vmatprep.mubr.bf16.mxu0 %v5637_v63 }
 0x8c7   :  { %1817 = vmatpush1.bf16.msra.mxu0 %v3836_v32  ;;  %3596 = vmatpush3.bf16.msra.mxu1 %v3839_v61 }
 0x8c8   :  { %1818 = vmatprep.subr.bf16.mxu0 %v3842_v18  ;;  %3597 = vmatprep.subr.bf16.mxu1 %v3843_v49 }
 0x8cb   :  { %1819 = vmatpush1.bf16.msra.mxu0 %v3840_v45  ;;  %3598 = vmatpush3.bf16.msra.mxu1 %v3843_v49 }
 0x8cc   :  { %1820 = vmatprep.subr.bf16.mxu0 %v3846_v51  ;;  %3599 = vmatprep.subr.bf16.mxu1 %v3847_v2 }
 0x8cf   :  { %1821 = vmatpush1.bf16.msra.mxu0 %v3844_v42  ;;  %3600 = vmatpush3.bf16.msra.mxu1 %v3847_v2 }
 0x8d0   :  { %1822 = vmatprep.subr.bf16.mxu0 %v3850_v40  ;;  %3601 = vmatprep.subr.bf16.mxu1 %v3851_v5 }
 0x8d3   :  { %1823 = vmatpush1.bf16.msra.mxu0 %v3848_v4  ;;  %3602 = vmatpush3.bf16.msra.mxu1 %v3851_v5 }
 0x8d4   :  { %1824 = vmatprep.subr.bf16.mxu0 %v3854_v60  ;;  %3603 = vmatprep.subr.bf16.mxu1 %v3855_v12 }
 0x8d7   :  { %1825 = vmatpush1.bf16.msra.mxu0 %v3852_v0  ;;  %3604 = vmatpush3.bf16.msra.mxu1 %v3855_v12  ;;  %v4096_v12 = vld [vmem:[%s5603_s7] ss:$0 sm:$0xff] }
 0x8d8   :  { %1826 = vmatprep.subr.bf16.mxu0 %v3858_v11  ;;  %3605 = vmatprep.subr.bf16.mxu1 %v3859_v13 }
 0x8db   :  { %1827 = vmatpush1.bf16.msra.mxu0 %v3856_v53  ;;  %3606 = vmatpush3.bf16.msra.mxu1 %v3859_v13  ;;  %v5646_v13 = vld [vmem:[#allocation20_spill] sm:$0xff] }
 0x8dc   :  { %1828 = vmatprep.subr.bf16.mxu0 %v3862_v17  ;;  %3607 = vmatprep.subr.bf16.mxu1 %v3863_v19 }
 0x8df   :  { %1829 = vmatpush1.bf16.msra.mxu0 %v3860_v20  ;;  %3608 = vmatpush3.bf16.msra.mxu1 %v3863_v19 }
 0x8e0   :  { %3617 = vmatprep.subr.bf16.mxu1 %v5636_v59  ;;  %2149 = vmatprep.subr.bf16.mxu0 %v5052_v8 }
 0x8e2   :  { %3231 = vmatmul.mubr.msk.bf16.vlgmr.msra.gmra.mrb[48].mxu0 %vm5027_vm2, %v3230_v7  ;;  %3610 = vmatmul.mubr.msk.bf16.vlgmr.msra.gmra.mrb[40].mxu1 %vm3232_vm4, %v3233_v21 }
 0x8e3   :  { %3613 = vmatprep.mubr.msk.bf16.mxu1 %vm3235_vm5, %v3236_v22  ;;  %1856 = vmatprep.mubr.bf16.mxu0 %v5637_v63 }
 0x8e4   :  { %2150 = vmatpush1.bf16.msra.mxu0 %v5054_v46  ;;  %3618 = vmatpush3.bf16.msra.mxu1 %v5090_v36 }
 0x8e5   :  { %2151 = vmatprep.subr.bf16.mxu0 %v5058_v43  ;;  %3619 = vmatprep.subr.bf16.mxu1 %v5636_v59 }
 0x8e8   :  { %2152 = vmatpush1.bf16.msra.mxu0 %v5060_v1  ;;  %3620 = vmatpush3.bf16.msra.mxu1 %v5102_v56 }
 0x8e9   :  { %2153 = vmatprep.subr.bf16.mxu0 %v5064_v23  ;;  %3621 = vmatprep.subr.bf16.mxu1 %v5636_v59 }
 0x8ea   :  { %3234 = vmatmul.mubr.msk.bf16.gmra.mrb[52].mxu0 %vm3232_vm4, %v3233_v21 }
 0x8eb   :  { %1866 = vmatprep.mubr.bf16.mxu0 %v5637_v63 }
 0x8ec   :  { %2154 = vmatpush1.bf16.msra.mxu0 %v5066_v26  ;;  %3622 = vmatpush3.bf16.msra.mxu1 %v5108_v52 }
 0x8ed   :  { %2155 = vmatprep.subr.bf16.mxu0 %v5070_v27  ;;  %3623 = vmatprep.subr.bf16.mxu1 %v5636_v59 }
 0x8f0   :  { %2156 = vmatpush1.bf16.msra.mxu0 %v5072_v28  ;;  %3624 = vmatpush3.bf16.msra.mxu1 %v5112_v3 }
 0x8f1   :  { %2157 = vmatprep.subr.bf16.mxu0 %v5076_v29  ;;  %3625 = vmatprep.subr.bf16.mxu1 %v5636_v59 }
 0x8f2   :  { %3237 = vmatmul.mubr.msk.bf16.gmra.mrb[56].mxu0 %vm3235_vm5, %v3236_v22 }
 0x8f3   :  { %1876 = vmatprep.mubr.bf16.mxu0 %v5637_v63 }
 0x8f4   :  { %2158 = vmatpush1.bf16.msra.mxu0 %v5078_v30  ;;  %3626 = vmatpush3.bf16.msra.mxu1 %v5116_v10 }
 0x8f5   :  { %2159 = vmatprep.subr.bf16.mxu0 %v5082_v31  ;;  %3627 = vmatprep.subr.bf16.mxu1 %v5636_v59 }
 0x8f8   :  { %2160 = vmatpush1.bf16.msra.mxu0 %v5084_v34  ;;  %3628 = vmatpush3.bf16.msra.mxu1 %v5120_v24 }
 0x8f9   :  { %2161 = vmatprep.subr.bf16.mxu0 %v5088_v35  ;;  %3629 = vmatprep.subr.bf16.mxu1 %v5636_v59 }
 0x8fc   :  { %2162 = vmatpush1.bf16.msra.mxu0 %v5092_v6  ;;  %3630 = vmatpush3.bf16.msra.mxu1 %v5124_v44 }
 0x8fd   :  { %2163 = vmatprep.subr.bf16.mxu0 %v5097_v15  ;;  %3631 = vmatprep.subr.bf16.mxu1 %v5636_v59 }
 0x900   :  { %2164 = vmatpush1.bf16.msra.mxu0 %v5100_v9  ;;  %3632 = vmatpush3.bf16.msra.mxu1 %v5128_v62 }
 0x901   :  { %2259 = vmatprep.subr.bf16.mxu0 %v5052_v8  ;;  %3637 = vmatprep.subr.bf16.mxu1 %v5636_v59 }
 0x995   :  { %v1543_v16 = vpop.f32.mrb[44].mxu0  ;;  %v1584_v25 = vpop.f32.mrb[36].mxu1 }
 0x996   :  { %v1590_v61 = vadd.f32 %v1543_v16, %v5645_v33  ;;  %v1545_v7 = vpop.f32.mrb[45].mxu0  ;;  %v3591_v41 = vpop.f32.mrb[37].mxu1  ;;  %v1604_v0 = vadd.f32 %v4096_v12, %v1584_v25 }
 0x997   :  { %v1591_v32 = vadd.f32 %v1545_v7, %v4686_v48  ;;  %v1547_v18 = vpop.f32.mrb[46].mxu0  ;;  %v1587_v49 = vpop.f32.mrb[38].mxu1 }
 0x998   :  { %v3136_v45 = vmul.f32 -1.442695, %v1590_v61  ;;  %v1548_v51 = vpop.f32.mrb[47].mxu0  ;;  %v3592_v2 = vpop.f32.mrb[39].mxu1 }
 0x999   :  { %v3137_v42 = vmul.f32 -1.442695, %v1591_v32 }
 0x99a   :  { %3982 = vpow2.f32 %v3136_v45  ;;  %v5161_v45 = vpop.permute.xlu1 %1617 }
 0x99b   :  { %3984 = vpow2.f32 %v3137_v42  ;;  %5647 = vst [vmem:[#allocation19_spill] sm:$0xff] %v5161_v45  ;;  %vm1619_vm6 = vcmp.eq.s32.totalorder %v5161_v45, 1 }
 0x99c   :  { %vm3238_vm7 = vmpackc.low %vm1619_vm6, %vm1497_vm1 }
 0x9a4   :  { %v3983_v40 = vpop.eup %3982 }
 0x9a5   :  { %v1598_v5 = vadd.f32 1.0, %v3983_v40  ;;  %v3985_v4 = vpop.eup %3984 }
 0x9a6   :  { %v1599_v60 = vadd.f32 1.0, %v3985_v4 }
 0x9a7   :  { %3986 = vrcp.f32 %v1598_v5 }
 0x9a8   :  { %3988 = vrcp.f32 %v1599_v60 }
 0x9b1   :  { %v3987_v11 = vpop.eup %3986 }
 0x9b2   :  { %v1605_v48 = vmul.f32 %v3987_v11, %v1604_v0  ;;  %v3989_v61 = vpop.eup %3988 }
 0x9b3   :  { %v1608_v18 = vsub.f32 1.0, %v3989_v61  ;;  %v1610_v42 = vmul.f32 %v3989_v61, %v5017_v47  ;;  %v5651_v47 = vmov 0.0|0.0  }
 0x9b4   :  { %v1606_v53 = vadd.f32 %v1605_v48, %v5646_v13 }
 0x9b5   :  { %v5139_v17 = vpop.f32.mrb[48].mxu0  ;;  %v5141_v19 = vpop.f32.mrb[40].mxu1 }
 0x9b6   :  { %3990 = vtanh.f32 %v1606_v53  ;;  %v5143_v20 = vpop.f32.mrb[49].mxu0  ;;  %v5145_v21 = vpop.f32.mrb[41].mxu1 }
 0x9b7   :  { %v5147_v22 = vpop.f32.mrb[50].mxu0  ;;  %v5149_v16 = vpop.f32.mrb[42].mxu1 }
 0x9b8   :  { %v5151_v33 = vpop.f32.mrb[51].mxu0  ;;  %v5153_v25 = vpop.f32.mrb[43].mxu1 }
 0x9bd   :  { %v5155_v7 = vpop.f32.mrb[52].mxu0 }
 0x9be   :  { %v5157_v41 = vpop.f32.mrb[53].mxu0 }
 0x9bf   :  { %v5159_v32 = vpop.f32.mrb[54].mxu0 }
 0x9c0   :  { %v3991_v49 = vpop.eup %3990  ;;  %v5163_v51 = vpop.f32.mrb[55].mxu0 }
 0x9c1   :  { %v1609_v2 = vmul.f32 %v3991_v49, %v1608_v18  ;;  %v5658_v49 = vld [vmem:[#allocation18_spill] sm:$0xff] }
 0x9c3   :  { %v1611_v40 = vadd.f32 %v1610_v42, %v1609_v2  ;;  %v5659_v2 = vsub.s32 0, %v5658_v49 }
 0x9c5   :  { %v5167_v5 = vpop.f32.mrb[56].mxu0  ;;  %v3239_v4 = vpack.c.bf16 %v1611_v40, %v5010_v39  ;;  %v1669_v39 = vld [vmem:[%s5606_s10] sm:$0x7] }
 0x9c6   :  { %v5174_v60 = vpop.f32.mrb[57].mxu0  ;;  %v5237_v42 = vrot.slane %v1669_v39, %v5659_v2 }
 0x9c7   :  { %5648 = vst [vmem:[#allocation22_spill] sm:$0xff] %v5174_v60  ;;  %v5176_v12 = vpop.f32.mrb[58].mxu0  ;;  %3240 = vmatmul.mubr.msk.bf16.gmra.mrb[60].mxu0 %vm3238_vm7, %v3239_v4  ;;  %3614 = vmatmul.mubr.msk.bf16.gmra.mrb[44].mxu1 %vm3238_vm7, %v3239_v4 }
 0x9c8   :  { %5649 = vst [vmem:[#allocation20_spill] sm:$0xff] %v5176_v12  ;;  %v5178_v0 = vpop.f32.mrb[59].mxu0  ;;  %2181 = vmatprep.mubr.bf16.mxu0 %v5637_v63  ;;  %3633 = vmatprep.mubr.msk.bf16.mxu1 %vm4246_vm3, %v5636_v59  ;;  %v1849_v14 = vadd.f32 %v5139_v17, %v5237_v42  ;;  %v1853_v54 = vadd.f32 %v5147_v22, %v5237_v42 }
 0x9c9   :  { %5650 = vst [vmem:[#allocation25_spill] sm:$0xff] %v5178_v0  ;;  %v1859_v50 = vadd.f32 %v5155_v7, %v5237_v42  ;;  %v1863_v58 = vadd.f32 %v5159_v32, %v5237_v42  ;;  %v1869_v37 = vadd.f32 %v5167_v5, %v5237_v42 }
 0x9cf   :  { %2182 = vmatmul.mubr.bf16.vlgmr.msra.gmra.mrb[64].mxu0 %v5651_v47  ;;  %3634 = vmatmul.mubr.bf16.vlgmr.msra.gmra.mrb[48].mxu1 %v5651_v47  ;;  %v5662_v47 = vsub.s32 1, %v5658_v49 }
 0x9d0   :  { %2260 = vmatpush1.bf16.msra.mxu0 %v5054_v46  ;;  %3638 = vmatpush3.bf16.msra.mxu1 %v5090_v36 }
 0x9d1   :  { %2261 = vmatprep.subr.bf16.mxu0 %v5058_v43  ;;  %3639 = vmatprep.subr.bf16.mxu1 %v5636_v59  ;;  %v5245_v45 = vrot.slane %v1669_v39, %v5662_v47 }
 0x9d2   :  { %2291 = vmatprep.mubr.bf16.mxu0 %v5637_v63  ;;  %3653 = vmatprep.mubr.msk.bf16.mxu1 %vm4246_vm3, %v5636_v59 }
 0x9d3   :  { %v1855_v55 = vadd.f32 %v5151_v33, %v5245_v45 }
 0x9d4   :  { %2262 = vmatpush1.bf16.msra.mxu0 %v5060_v1  ;;  %3640 = vmatpush3.bf16.msra.mxu1 %v5102_v56 }
 0x9d5   :  { %2263 = vmatprep.subr.bf16.mxu0 %v5064_v23  ;;  %3641 = vmatprep.subr.bf16.mxu1 %v5636_v59 }
 0x9d8   :  { %2264 = vmatpush1.bf16.msra.mxu0 %v5066_v26  ;;  %3642 = vmatpush3.bf16.msra.mxu1 %v5108_v52 }
 0x9d9   :  { %2265 = vmatprep.subr.bf16.mxu0 %v5070_v27  ;;  %3643 = vmatprep.subr.bf16.mxu1 %v5636_v59 }
 0x9dc   :  { %2266 = vmatpush1.bf16.msra.mxu0 %v5072_v28  ;;  %3644 = vmatpush3.bf16.msra.mxu1 %v5112_v3 }
 0x9dd   :  { %2267 = vmatprep.subr.bf16.mxu0 %v5076_v29  ;;  %3645 = vmatprep.subr.bf16.mxu1 %v5636_v59 }
 0x9e0   :  { %2268 = vmatpush1.bf16.msra.mxu0 %v5078_v30  ;;  %3646 = vmatpush3.bf16.msra.mxu1 %v5116_v10 }
 0x9e1   :  { %2269 = vmatprep.subr.bf16.mxu0 %v5082_v31  ;;  %3647 = vmatprep.subr.bf16.mxu1 %v5636_v59 }
 0x9e4   :  { %2270 = vmatpush1.bf16.msra.mxu0 %v5084_v34  ;;  %3648 = vmatpush3.bf16.msra.mxu1 %v5120_v24 }
 0x9e5   :  { %2271 = vmatprep.subr.bf16.mxu0 %v5088_v35  ;;  %3649 = vmatprep.subr.bf16.mxu1 %v5636_v59 }
 0x9e8   :  { %2272 = vmatpush1.bf16.msra.mxu0 %v5092_v6  ;;  %3650 = vmatpush3.bf16.msra.mxu1 %v5124_v44 }
 0x9e9   :  { %2273 = vmatprep.subr.bf16.mxu0 %v5097_v15  ;;  %3651 = vmatprep.subr.bf16.mxu1 %v5636_v59 }
 0x9ec   :  { %2274 = vmatpush1.bf16.msra.mxu0 %v5100_v9  ;;  %3652 = vmatpush3.bf16.msra.mxu1 %v5128_v62 }
 0x9ed   :  { %2370 = vmatprep.subr.bf16.mxu0 %v5052_v8  ;;  %3657 = vmatprep.subr.bf16.mxu1 %v5636_v59 }
 0xa9a   :  { %v5223_v11 = vpop.f32.mrb[60].mxu0  ;;  %v5225_v48 = vpop.f32.mrb[44].mxu1 }
 0xa9b   :  { %5652 = vst [vmem:[#allocation26_spill] sm:$0xff] %v5223_v11  ;;  %5653 = vst [vmem:[#allocation27_spill] sm:$0xff] %v5225_v48  ;;  %v5227_v13 = vpop.f32.mrb[61].mxu0  ;;  %v5229_v53 = vpop.f32.mrb[45].mxu1 }
 0xa9c   :  { %5654 = vst [vmem:[#allocation28_spill] sm:$0xff] %v5227_v13  ;;  %5655 = vst [vmem:[#allocation29_spill] sm:$0xff] %v5229_v53  ;;  %v5231_v61 = vpop.f32.mrb[62].mxu0  ;;  %v5233_v18 = vpop.f32.mrb[46].mxu1 }
 0xa9d   :  { %5656 = vst [vmem:[#allocation30_spill] sm:$0xff] %v5231_v61  ;;  %5657 = vst [vmem:[#allocation31_spill] sm:$0xff] %v5233_v18  ;;  %v5239_v40 = vpop.f32.mrb[63].mxu0  ;;  %v5241_v4 = vpop.f32.mrb[47].mxu1  ;;  %v1851_v61 = vadd.f32 %v5143_v20, %v5245_v45  ;;  %v5254_v20 = vld [vmem:[%s5607_s11] ss:$0 sm:$0xff] }
 0xa9e   :  { %5660 = vst [vmem:[#allocation18_spill] sm:$0xff] %v5239_v40  ;;  %5661 = vst [vmem:[#allocation32_spill] sm:$0xff] %v5241_v4  ;;  %s4248_s11 = smov [#allocation11]  }
 0xa9f   :  { %s3040_s0 = sshll.u32 %s4248_s11, 4  ;;  %s3041_s0 = int_to_ptr.vmem [resolvable:$true] %s3040_s0 }
 0xaa0   :  { %s4187_s19 = scalar_lea.vmem %s3041_s0, 1024  ;;  %p4192_p11 = scmp.lt.s32.totalorder %s3041_s0, %s3041_s0 }
 0xaa1   :  { %p4188_p10 = scmp.ne.s32.totalorder %s3041_s0, %s4187_s19  ;;  %p4193_p12 = scmp.lt.s32.totalorder %s4187_s19, %s4187_s19 }
 0xaa2   :  { %v2183_v48 = vpop.f32.mrb[64].mxu0  ;;  %v2224_v18 = vpop.f32.mrb[48].mxu1 }
 0xaa3   :  { %v2230_v13 = vadd.f32 %v2183_v48, %v1849_v14  ;;  %v2185_v11 = vpop.f32.mrb[65].mxu0  ;;  %v3635_v2 = vpop.f32.mrb[49].mxu1  ;;  %v5663_v14 = vsub.s32 2, %v5658_v49  ;;  %v2244_v48 = vadd.f32 %v5254_v20, %v2224_v18  ;;  %p4194_p13 = por %p4193_p12, %p4192_p11 }
 0xaa4   :  { %v2231_v38 = vadd.f32 %v2185_v11, %v1851_v61  ;;  %v2187_v0 = vpop.f32.mrb[66].mxu0  ;;  %v2227_v40 = vpop.f32.mrb[50].mxu1 }
 0xaa5   :  { %v3188_v12 = vmul.f32 -1.442695, %v2230_v13  ;;  %v2188_v4 = vpop.f32.mrb[67].mxu0  ;;  %v3636_v57 = vpop.f32.mrb[51].mxu1  ;;  %v5258_v11 = vrot.slane %v1669_v39, %v5663_v14  ;;  %p4195_p0 = pnand %p4194_p13, %p4188_p10 }
 0xaa6   :  { %v3189_v47 = vmul.f32 -1.442695, %v2231_v38 }
 0xaa7   :  { %3992 = vpow2.f32 %v3188_v12  ;;  %v1922_v38 = vadd.f32 %v5145_v21, %v5258_v11 }
 0xaa8   :  { %3994 = vpow2.f32 %v3189_v47 }
 0xab1   :  { %v3993_v53 = vpop.eup %3992 }
 0xab2   :  { %v2238_v60 = vadd.f32 1.0, %v3993_v53  ;;  %v3995_v17 = vpop.eup %3994 }
 0xab3   :  { %v2239_v0 = vadd.f32 1.0, %v3995_v17 }
 0xab4   :  { %3996 = vrcp.f32 %v2238_v60 }
 0xab5   :  { %3998 = vrcp.f32 %v2239_v0 }
 0xabe   :  { %v3997_v57 = vpop.eup %3996 }
 0xabf   :  { %v2245_v12 = vmul.f32 %v3997_v57, %v2244_v48  ;;  %v3999_v13 = vpop.eup %3998 }
 0xac0   :  { %v2248_v53 = vsub.f32 1.0, %v3999_v13  ;;  %v2250_v40 = vmul.f32 0.0, %v3999_v13 }
 0xac1   :  { %v2246_v60 = vadd.f32 %v2245_v12, %v1922_v38 }
 0xac3   :  { %4000 = vtanh.f32 %v2246_v60 }
 0xacd   :  { %v4001_v61 = vpop.eup %4000 }
 0xace   :  { %v2249_v4 = vmul.f32 %v4001_v61, %v2248_v53 }
 0xad0   :  { %v2251_v2 = vadd.f32 %v2250_v40, %v2249_v4 }
 0xad2   :  { %v3254_v49 = vpack.c.bf16 %v2251_v2, %v2251_v2  ;;  %v5265_v39 = vsel %vm766_vm10, %v2251_v2, 0.0  ;;  %v1925_v2 = vadd.f32 %v5153_v25, %v5258_v11 }
 0xad3   :  { %2253 = vst [vmem:[#allocation11] sm:$0xff] %v5265_v39 }
 0xad4   :  { %3255 = vmatmul.mubr.msk.bf16.vlgmr.msra.gmra.mrb[68].mxu0 %vm4703_vm11, %v3254_v49  ;;  %3654 = vmatmul.mubr.msk.bf16.vlgmr.msra.gmra.mrb[52].mxu1 %vm4703_vm11, %v3254_v49 }
 0xad5   :  { %2371 = vmatpush1.bf16.msra.mxu0 %v5054_v46  ;;  %3658 = vmatpush3.bf16.msra.mxu1 %v5090_v36 }
 0xad6   :  { %2372 = vmatprep.subr.bf16.mxu0 %v5058_v43  ;;  %3659 = vmatprep.subr.bf16.mxu1 %v5636_v59 }
 0xad7   :  { %2402 = vmatprep.mubr.bf16.mxu0 %v5637_v63  ;;  %3673 = vmatprep.mubr.msk.bf16.mxu1 %vm4246_vm3, %v5636_v59 }
 0xad9   :  { %2373 = vmatpush1.bf16.msra.mxu0 %v5060_v1  ;;  %3660 = vmatpush3.bf16.msra.mxu1 %v5102_v56 }
 0xada   :  { %2374 = vmatprep.subr.bf16.mxu0 %v5064_v23  ;;  %3661 = vmatprep.subr.bf16.mxu1 %v5636_v59 }
 0xadd   :  { %2375 = vmatpush1.bf16.msra.mxu0 %v5066_v26  ;;  %3662 = vmatpush3.bf16.msra.mxu1 %v5108_v52 }
 0xade   :  { %2376 = vmatprep.subr.bf16.mxu0 %v5070_v27  ;;  %3663 = vmatprep.subr.bf16.mxu1 %v5636_v59 }
 0xae1   :  { %2377 = vmatpush1.bf16.msra.mxu0 %v5072_v28  ;;  %3664 = vmatpush3.bf16.msra.mxu1 %v5112_v3 }
 0xae2   :  { %2378 = vmatprep.subr.bf16.mxu0 %v5076_v29  ;;  %3665 = vmatprep.subr.bf16.mxu1 %v5636_v59 }
 0xae5   :  { %2379 = vmatpush1.bf16.msra.mxu0 %v5078_v30  ;;  %3666 = vmatpush3.bf16.msra.mxu1 %v5116_v10 }
 0xae6   :  { %2380 = vmatprep.subr.bf16.mxu0 %v5082_v31  ;;  %3667 = vmatprep.subr.bf16.mxu1 %v5636_v59 }
 0xae9   :  { %2381 = vmatpush1.bf16.msra.mxu0 %v5084_v34  ;;  %3668 = vmatpush3.bf16.msra.mxu1 %v5120_v24 }
 0xaea   :  { %2382 = vmatprep.subr.bf16.mxu0 %v5088_v35  ;;  %3669 = vmatprep.subr.bf16.mxu1 %v5636_v59 }
 0xaed   :  { %2383 = vmatpush1.bf16.msra.mxu0 %v5092_v6  ;;  %3670 = vmatpush3.bf16.msra.mxu1 %v5124_v44 }
 0xaee   :  { %2384 = vmatprep.subr.bf16.mxu0 %v5097_v15  ;;  %3671 = vmatprep.subr.bf16.mxu1 %v5636_v59 }
 0xaf1   :  { %2385 = vmatpush1.bf16.msra.mxu0 %v5100_v9  ;;  %3672 = vmatpush3.bf16.msra.mxu1 %v5128_v62 }
 0xaf2   :  { %2481 = vmatprep.subr.bf16.mxu0 %v5052_v8  ;;  %3677 = vmatprep.subr.bf16.mxu1 %v5636_v59 }
 0xba7   :  { %v2293_v21 = vpop.f32.mrb[68].mxu0  ;;  %v2334_v18 = vpop.f32.mrb[52].mxu1 }
 0xba8   :  { %v2340_v47 = vadd.f32 %v2293_v21, %v1853_v54  ;;  %v2295_v17 = vpop.f32.mrb[69].mxu0  ;;  %v3655_v14 = vpop.f32.mrb[53].mxu1  ;;  %v2354_v33 = vadd.f32 %v5254_v20, %v2334_v18 }
 0xba9   :  { %v2341_v0 = vadd.f32 %v2295_v17, %v1855_v55  ;;  %v2297_v48 = vpop.f32.mrb[70].mxu0  ;;  %v2337_v57 = vpop.f32.mrb[54].mxu1 }
 0xbaa   :  { %v3190_v38 = vmul.f32 -1.442695, %v2340_v47  ;;  %v2298_v12 = vpop.f32.mrb[71].mxu0  ;;  %v3656_v60 = vpop.f32.mrb[55].mxu1 }
 0xbab   :  { %v3191_v13 = vmul.f32 -1.442695, %v2341_v0 }
 0xbac   :  { %4002 = vpow2.f32 %v3190_v38 }
 0xbad   :  { %4004 = vpow2.f32 %v3191_v13 }
 0xbb6   :  { %v4003_v53 = vpop.eup %4002 }
 0xbb7   :  { %v2348_v61 = vadd.f32 1.0, %v4003_v53  ;;  %v4005_v22 = vpop.eup %4004 }
 0xbb8   :  { %v2349_v40 = vadd.f32 1.0, %v4005_v22 }
 0xbb9   :  { %4006 = vrcp.f32 %v2348_v61 }
 0xbba   :  { %4008 = vrcp.f32 %v2349_v40 }
 0xbc3   :  { %v4007_v4 = vpop.eup %4006 }
 0xbc4   :  { %v2355_v49 = vmul.f32 %v4007_v4, %v2354_v33  ;;  %v4009_v55 = vpop.eup %4008 }
 0xbc5   :  { %v2358_v21 = vsub.f32 1.0, %v4009_v55  ;;  %v2360_v14 = vmul.f32 %v4009_v55, %v5265_v39 }
 0xbc6   :  { %v2356_v54 = vadd.f32 %v2355_v49, %v1925_v2 }
 0xbc8   :  { %4010 = vtanh.f32 %v2356_v54 }
 0xbd2   :  { %v4011_v47 = vpop.eup %4010 }
 0xbd3   :  { %v2359_v17 = vmul.f32 %v4011_v47, %v2358_v21  ;;  %v1930_v47 = vadd.f32 %v5141_v19, %v5258_v11 }
 0xbd5   :  { %v2361_v0 = vadd.f32 %v2360_v14, %v2359_v17 }
 0xbd7   :  { %v2362_v48 = vsel %vm887_vm12, %v2361_v0, 0.0  ;;  %v5320_v18 = vsel %vm887_vm12, %v2361_v0, %v5265_v39  ;;  %v1861_v39 = vadd.f32 %v5157_v41, %v5245_v45 }
 0xbd8   :  { %2364 = vst [vmem:[#allocation11 + $0x8] sm:$0xff] %v2362_v48  ;;  %v2369_v25 = vpack.c.bf16 %v5320_v18, %v5320_v18 }
 0xbda   :  { %2403 = vmatmul.mubr.bf16.vlgmr.msra.gmra.mrb[72].mxu0 %v2369_v25  ;;  %3674 = vmatmul.mubr.bf16.vlgmr.msra.gmra.mrb[56].mxu1 %v2369_v25 }
 0xbdb   :  { %2482 = vmatpush1.bf16.msra.mxu0 %v5054_v46  ;;  %3678 = vmatpush3.bf16.msra.mxu1 %v5090_v36 }
 0xbdc   :  { %2483 = vmatprep.subr.bf16.mxu0 %v5058_v43  ;;  %3679 = vmatprep.subr.bf16.mxu1 %v5636_v59 }
 0xbdd   :  { %2513 = vmatprep.mubr.bf16.mxu0 %v5637_v63  ;;  %3693 = vmatprep.mubr.msk.bf16.mxu1 %vm4246_vm3, %v5636_v59 }
 0xbdf   :  { %2484 = vmatpush1.bf16.msra.mxu0 %v5060_v1  ;;  %3680 = vmatpush3.bf16.msra.mxu1 %v5102_v56 }
 0xbe0   :  { %2485 = vmatprep.subr.bf16.mxu0 %v5064_v23  ;;  %3681 = vmatprep.subr.bf16.mxu1 %v5636_v59 }
 0xbe3   :  { %2486 = vmatpush1.bf16.msra.mxu0 %v5066_v26  ;;  %3682 = vmatpush3.bf16.msra.mxu1 %v5108_v52 }
 0xbe4   :  { %2487 = vmatprep.subr.bf16.mxu0 %v5070_v27  ;;  %3683 = vmatprep.subr.bf16.mxu1 %v5636_v59 }
 0xbe7   :  { %2488 = vmatpush1.bf16.msra.mxu0 %v5072_v28  ;;  %3684 = vmatpush3.bf16.msra.mxu1 %v5112_v3 }
 0xbe8   :  { %2489 = vmatprep.subr.bf16.mxu0 %v5076_v29  ;;  %3685 = vmatprep.subr.bf16.mxu1 %v5636_v59 }
 0xbeb   :  { %2490 = vmatpush1.bf16.msra.mxu0 %v5078_v30  ;;  %3686 = vmatpush3.bf16.msra.mxu1 %v5116_v10 }
 0xbec   :  { %2491 = vmatprep.subr.bf16.mxu0 %v5082_v31  ;;  %3687 = vmatprep.subr.bf16.mxu1 %v5636_v59 }
 0xbef   :  { %2492 = vmatpush1.bf16.msra.mxu0 %v5084_v34  ;;  %3688 = vmatpush3.bf16.msra.mxu1 %v5120_v24 }
 0xbf0   :  { %2493 = vmatprep.subr.bf16.mxu0 %v5088_v35  ;;  %3689 = vmatprep.subr.bf16.mxu1 %v5636_v59 }
 0xbf3   :  { %2494 = vmatpush1.bf16.msra.mxu0 %v5092_v6  ;;  %3690 = vmatpush3.bf16.msra.mxu1 %v5124_v44 }
 0xbf4   :  { %2495 = vmatprep.subr.bf16.mxu0 %v5097_v15  ;;  %3691 = vmatprep.subr.bf16.mxu1 %v5636_v59 }
 0xbf7   :  { %2496 = vmatpush1.bf16.msra.mxu0 %v5100_v9  ;;  %3692 = vmatpush3.bf16.msra.mxu1 %v5128_v62 }
 0xbf8   :  { %2592 = vmatprep.subr.bf16.mxu0 %v5052_v8  ;;  %3697 = vmatprep.subr.bf16.mxu1 %v5636_v59 }
 0xcad   :  { %v2404_v57 = vpop.f32.mrb[72].mxu0  ;;  %v2445_v38 = vpop.f32.mrb[56].mxu1 }
 0xcae   :  { %v2451_v12 = vadd.f32 %v2404_v57, %v1859_v50  ;;  %v2406_v60 = vpop.f32.mrb[73].mxu0  ;;  %v3675_v13 = vpop.f32.mrb[57].mxu1  ;;  %v2465_v41 = vadd.f32 %v5254_v20, %v2445_v38 }
 0xcaf   :  { %v2452_v53 = vadd.f32 %v2406_v60, %v1861_v39  ;;  %v2408_v61 = vpop.f32.mrb[74].mxu0  ;;  %v2448_v22 = vpop.f32.mrb[58].mxu1 }
 0xcb0   :  { %v3192_v40 = vmul.f32 -1.442695, %v2451_v12  ;;  %v2409_v33 = vpop.f32.mrb[75].mxu0  ;;  %v3676_v4 = vpop.f32.mrb[59].mxu1 }
 0xcb1   :  { %v3193_v2 = vmul.f32 -1.442695, %v2452_v53 }
 0xcb2   :  { %4012 = vpow2.f32 %v3192_v40 }
 0xcb3   :  { %4014 = vpow2.f32 %v3193_v2 }
 0xcbc   :  { %v4013_v49 = vpop.eup %4012 }
 0xcbd   :  { %v2459_v54 = vadd.f32 1.0, %v4013_v49  ;;  %v4015_v7 = vpop.eup %4014 }
 0xcbe   :  { %v2460_v55 = vadd.f32 1.0, %v4015_v7 }
 0xcbf   :  { %4016 = vrcp.f32 %v2459_v54 }
 0xcc0   :  { %4018 = vrcp.f32 %v2460_v55 }
 0xcc9   :  { %v4017_v21 = vpop.eup %4016 }
 0xcca   :  { %v2466_v17 = vmul.f32 %v4017_v21, %v2465_v41  ;;  %v4019_v0 = vpop.eup %4018 }
 0xccb   :  { %v2469_v48 = vsub.f32 1.0, %v4019_v0  ;;  %v2471_v50 = vmul.f32 %v4019_v0, %v5320_v18 }
 0xccc   :  { %v2467_v14 = vadd.f32 %v2466_v17, %v1930_v47  ;;  %v1933_v17 = vadd.f32 %v5149_v16, %v5258_v11 }
 0xcce   :  { %4020 = vtanh.f32 %v2467_v14 }
 0xcd8   :  { %v4021_v25 = vpop.eup %4020 }
 0xcd9   :  { %v2470_v39 = vmul.f32 %v4021_v25, %v2469_v48 }
 0xcdb   :  { %v2472_v57 = vadd.f32 %v2471_v50, %v2470_v39 }
 0xcdd   :  { %v2473_v12 = vsel %vm1009_vm13, %v2472_v57, 0.0  ;;  %v5372_v38 = vsel %vm1009_vm13, %v2472_v57, %v5320_v18  ;;  %v1865_v18 = vadd.f32 %v5163_v51, %v5245_v45 }
 0xcde   :  { %2475 = vst [vmem:[#allocation11 + $0x10] sm:$0xff] %v2473_v12  ;;  %v2480_v19 = vpack.c.bf16 %v5372_v38, %v5372_v38 }
 0xce0   :  { %2514 = vmatmul.mubr.bf16.vlgmr.msra.gmra.mrb[76].mxu0 %v2480_v19  ;;  %3694 = vmatmul.mubr.bf16.vlgmr.msra.gmra.mrb[60].mxu1 %v2480_v19 }
 0xce1   :  { %2593 = vmatpush1.bf16.msra.mxu0 %v5054_v46  ;;  %3698 = vmatpush3.bf16.msra.mxu1 %v5090_v36 }
 0xce2   :  { %2594 = vmatprep.subr.bf16.mxu0 %v5058_v43  ;;  %3699 = vmatprep.subr.bf16.mxu1 %v5636_v59 }
 0xce3   :  { %2624 = vmatprep.mubr.bf16.mxu0 %v5637_v63  ;;  %3713 = vmatprep.mubr.msk.bf16.mxu1 %vm4246_vm3, %v5636_v59 }
 0xce5   :  { %2595 = vmatpush1.bf16.msra.mxu0 %v5060_v1  ;;  %3700 = vmatpush3.bf16.msra.mxu1 %v5102_v56 }
 0xce6   :  { %2596 = vmatprep.subr.bf16.mxu0 %v5064_v23  ;;  %3701 = vmatprep.subr.bf16.mxu1 %v5636_v59 }
 0xce9   :  { %2597 = vmatpush1.bf16.msra.mxu0 %v5066_v26  ;;  %3702 = vmatpush3.bf16.msra.mxu1 %v5108_v52 }
 0xcea   :  { %2598 = vmatprep.subr.bf16.mxu0 %v5070_v27  ;;  %3703 = vmatprep.subr.bf16.mxu1 %v5636_v59 }
 0xced   :  { %2599 = vmatpush1.bf16.msra.mxu0 %v5072_v28  ;;  %3704 = vmatpush3.bf16.msra.mxu1 %v5112_v3 }
 0xcee   :  { %2600 = vmatprep.subr.bf16.mxu0 %v5076_v29  ;;  %3705 = vmatprep.subr.bf16.mxu1 %v5636_v59 }
 0xcf1   :  { %2601 = vmatpush1.bf16.msra.mxu0 %v5078_v30  ;;  %3706 = vmatpush3.bf16.msra.mxu1 %v5116_v10 }
 0xcf2   :  { %2602 = vmatprep.subr.bf16.mxu0 %v5082_v31  ;;  %3707 = vmatprep.subr.bf16.mxu1 %v5636_v59 }
 0xcf5   :  { %2603 = vmatpush1.bf16.msra.mxu0 %v5084_v34  ;;  %3708 = vmatpush3.bf16.msra.mxu1 %v5120_v24 }
 0xcf6   :  { %2604 = vmatprep.subr.bf16.mxu0 %v5088_v35  ;;  %3709 = vmatprep.subr.bf16.mxu1 %v5636_v59 }
 0xcf9   :  { %2605 = vmatpush1.bf16.msra.mxu0 %v5092_v6  ;;  %3710 = vmatpush3.bf16.msra.mxu1 %v5124_v44 }
 0xcfa   :  { %2606 = vmatprep.subr.bf16.mxu0 %v5097_v15  ;;  %3711 = vmatprep.subr.bf16.mxu1 %v5636_v59 }
 0xcfd   :  { %2607 = vmatpush1.bf16.msra.mxu0 %v5100_v9  ;;  %3712 = vmatpush3.bf16.msra.mxu1 %v5128_v62 }
 0xcfe   :  { %2703 = vmatprep.subr.bf16.mxu0 %v5052_v8  ;;  %3717 = vmatprep.subr.bf16.mxu1 %v5636_v59 }
 0xdb3   :  { %v2515_v60 = vpop.f32.mrb[76].mxu0  ;;  %v2556_v13 = vpop.f32.mrb[60].mxu1 }
 0xdb4   :  { %v2562_v53 = vadd.f32 %v2515_v60, %v1863_v58  ;;  %v2517_v61 = vpop.f32.mrb[77].mxu0  ;;  %v3695_v22 = vpop.f32.mrb[61].mxu1  ;;  %v2576_v51 = vadd.f32 %v5254_v20, %v2556_v13 }
 0xdb5   :  { %v2563_v40 = vadd.f32 %v2517_v61, %v1865_v18  ;;  %v2519_v33 = vpop.f32.mrb[78].mxu0  ;;  %v2559_v4 = vpop.f32.mrb[62].mxu1 }
 0xdb6   :  { %v3194_v2 = vmul.f32 -1.442695, %v2562_v53  ;;  %v2520_v49 = vpop.f32.mrb[79].mxu0  ;;  %v3696_v54 = vpop.f32.mrb[63].mxu1 }
 0xdb7   :  { %v3195_v7 = vmul.f32 -1.442695, %v2563_v40 }
 0xdb8   :  { %4022 = vpow2.f32 %v3194_v2 }
 0xdb9   :  { %4024 = vpow2.f32 %v3195_v7 }
 0xdc2   :  { %v4023_v55 = vpop.eup %4022 }
 0xdc3   :  { %v2570_v41 = vadd.f32 1.0, %v4023_v55  ;;  %v4025_v32 = vpop.eup %4024 }
 0xdc4   :  { %v2571_v21 = vadd.f32 1.0, %v4025_v32 }
 0xdc5   :  { %4026 = vrcp.f32 %v2570_v41 }
 0xdc6   :  { %4028 = vrcp.f32 %v2571_v21 }
 0xdcf   :  { %v4027_v47 = vpop.eup %4026 }
 0xdd0   :  { %v2577_v14 = vmul.f32 %v4027_v47, %v2576_v51  ;;  %v4029_v48 = vpop.eup %4028  ;;  %v5665_v51 = vld [vmem:[#allocation29_spill] sm:$0xff] }
 0xdd1   :  { %v2580_v25 = vsub.f32 1.0, %v4029_v48  ;;  %v2582_v39 = vmul.f32 %v4029_v48, %v5372_v38  ;;  %v1938_v47 = vadd.f32 %v5665_v51, %v5258_v11  ;;  %v4105_v51 = vld [vmem:[#allocation10 + $0x38] ss:$12 sps:$4 sm:$0xff]  }
 0xdd2   :  { %v2578_v0 = vadd.f32 %v2577_v14, %v1933_v17 }
 0xdd4   :  { %4030 = vtanh.f32 %v2578_v0 }
 0xdde   :  { %v4031_v50 = vpop.eup %4030 }
 0xddf   :  { %v2581_v57 = vmul.f32 %v4031_v50, %v2580_v25 }
 0xde1   :  { %v2583_v12 = vadd.f32 %v2582_v39, %v2581_v57 }
 0xde3   :  { %v2584_v19 = vsel %vm1131_vm14, %v2583_v12, 0.0  ;;  %v5424_v58 = vsel %vm1131_vm14, %v2583_v12, %v5372_v38  ;;  %v5664_v38 = vld [vmem:[#allocation22_spill] sm:$0xff]  ;;  %v4116_v12 = vld [vmem:[#allocation10 + $0x90] ss:$12 sps:$4 sm:$0xff]  }
 0xde4   :  { %2586 = vst [vmem:[#allocation11 + $0x18] sm:$0xff] %v2584_v19  ;;  %v2591_v16 = vpack.c.bf16 %v5424_v58, %v5424_v58  ;;  %v1871_v18 = vadd.f32 %v5664_v38, %v5245_v45 }
 0xde6   :  { %2625 = vmatmul.mubr.bf16.vlgmr.msra.gmra.mrb[80].mxu0 %v2591_v16  ;;  %3714 = vmatmul.mubr.bf16.vlgmr.msra.gmra.mrb[64].mxu1 %v2591_v16 }
 0xde7   :  { %2704 = vmatpush1.bf16.msra.mxu0 %v5054_v46  ;;  %3718 = vmatpush3.bf16.msra.mxu1 %v5090_v36 }
 0xde8   :  { %2705 = vmatprep.subr.bf16.mxu0 %v5058_v43  ;;  %3719 = vmatprep.subr.bf16.mxu1 %v5636_v59 }
 0xde9   :  { %2735 = vmatprep.mubr.bf16.mxu0 %v5637_v63  ;;  %3733 = vmatprep.mubr.msk.bf16.mxu1 %vm4246_vm3, %v5636_v59 }
 0xdeb   :  { %2706 = vmatpush1.bf16.msra.mxu0 %v5060_v1  ;;  %3720 = vmatpush3.bf16.msra.mxu1 %v5102_v56 }
 0xdec   :  { %2707 = vmatprep.subr.bf16.mxu0 %v5064_v23  ;;  %3721 = vmatprep.subr.bf16.mxu1 %v5636_v59 }
 0xdef   :  { %2708 = vmatpush1.bf16.msra.mxu0 %v5066_v26  ;;  %3722 = vmatpush3.bf16.msra.mxu1 %v5108_v52 }
 0xdf0   :  { %2709 = vmatprep.subr.bf16.mxu0 %v5070_v27  ;;  %3723 = vmatprep.subr.bf16.mxu1 %v5636_v59 }
 0xdf3   :  { %2710 = vmatpush1.bf16.msra.mxu0 %v5072_v28  ;;  %3724 = vmatpush3.bf16.msra.mxu1 %v5112_v3 }
 0xdf4   :  { %2711 = vmatprep.subr.bf16.mxu0 %v5076_v29  ;;  %3725 = vmatprep.subr.bf16.mxu1 %v5636_v59 }
 0xdf7   :  { %2712 = vmatpush1.bf16.msra.mxu0 %v5078_v30  ;;  %3726 = vmatpush3.bf16.msra.mxu1 %v5116_v10 }
 0xdf8   :  { %2713 = vmatprep.subr.bf16.mxu0 %v5082_v31  ;;  %3727 = vmatprep.subr.bf16.mxu1 %v5636_v59 }
 0xdfb   :  { %2714 = vmatpush1.bf16.msra.mxu0 %v5084_v34  ;;  %3728 = vmatpush3.bf16.msra.mxu1 %v5120_v24 }
 0xdfc   :  { %2715 = vmatprep.subr.bf16.mxu0 %v5088_v35  ;;  %3729 = vmatprep.subr.bf16.mxu1 %v5636_v59 }
 0xdff   :  { %2716 = vmatpush1.bf16.msra.mxu0 %v5092_v6  ;;  %3730 = vmatpush3.bf16.msra.mxu1 %v5124_v44 }
 0xe00   :  { %2717 = vmatprep.subr.bf16.mxu0 %v5097_v15  ;;  %3731 = vmatprep.subr.bf16.mxu1 %v5636_v59 }
 0xe03   :  { %2718 = vmatpush1.bf16.msra.mxu0 %v5100_v9  ;;  %3732 = vmatpush3.bf16.msra.mxu1 %v5128_v62 }
 0xe04   :  { %2814 = vmatprep.subr.bf16.mxu0 %v5052_v8  ;;  %3737 = vmatprep.subr.bf16.mxu1 %v5636_v59 }
 0xeb9   :  { %v2626_v60 = vpop.f32.mrb[80].mxu0  ;;  %v2667_v13 = vpop.f32.mrb[64].mxu1 }
 0xeba   :  { %v2673_v53 = vadd.f32 %v2626_v60, %v1869_v37  ;;  %v2628_v61 = vpop.f32.mrb[81].mxu0  ;;  %v3715_v22 = vpop.f32.mrb[65].mxu1  ;;  %v2687_v32 = vadd.f32 %v5254_v20, %v2667_v13 }
 0xebb   :  { %v2674_v40 = vadd.f32 %v2628_v61, %v1871_v18  ;;  %v2630_v33 = vpop.f32.mrb[82].mxu0  ;;  %v2670_v4 = vpop.f32.mrb[66].mxu1 }
 0xebc   :  { %v3196_v2 = vmul.f32 -1.442695, %v2673_v53  ;;  %v2631_v49 = vpop.f32.mrb[83].mxu0  ;;  %v3716_v54 = vpop.f32.mrb[67].mxu1 }
 0xebd   :  { %v3197_v8 = vmul.f32 -1.442695, %v2674_v40 }
 0xebe   :  { %4032 = vpow2.f32 %v3196_v2 }
 0xebf   :  { %4034 = vpow2.f32 %v3197_v8  ;;  %v4098_v8 = vld [vmem:[#allocation10] ss:$12 sps:$4 sm:$0xff]  }
 0xec8   :  { %v4033_v7 = vpop.eup %4032 }
 0xec9   :  { %v2681_v55 = vadd.f32 1.0, %v4033_v7  ;;  %v4035_v5 = vpop.eup %4034  ;;  %v4099_v7 = vld [vmem:[#allocation10 + $0x8] ss:$12 sps:$4 sm:$0xff]  }
 0xeca   :  { %v2682_v41 = vadd.f32 1.0, %v4035_v5  ;;  %v4101_v5 = vld [vmem:[#allocation10 + $0x18] ss:$12 sps:$4 sm:$0xff]  }
 0xecb   :  { %4036 = vrcp.f32 %v2681_v55  ;;  %v4100_v55 = vld [vmem:[#allocation10 + $0x1c] ss:$12 sps:$4 sm:$0xff]  }
 0xecc   :  { %4038 = vrcp.f32 %v2682_v41  ;;  %v4102_v41 = vld [vmem:[#allocation10 + $0x20] ss:$12 sps:$4 sm:$0xff]  }
 0xed5   :  { %v4037_v21 = vpop.eup %4036 }
 0xed6   :  { %v2688_v17 = vmul.f32 %v4037_v21, %v2687_v32  ;;  %v4039_v0 = vpop.eup %4038  ;;  %v4103_v32 = vld [vmem:[#allocation10 + $0x34] ss:$12 sps:$4 sm:$0xff]   ;;  %v4104_v21 = vld [vmem:[#allocation10 + $0x30] ss:$12 sps:$4 sm:$0xff]  }
 0xed7   :  { %v2691_v48 = vsub.f32 1.0, %v4039_v0  ;;  %v2693_v50 = vmul.f32 %v4039_v0, %v5424_v58  ;;  %v4110_v0 = vld [vmem:[#allocation10 + $0x60] ss:$12 sps:$4 sm:$0xff]  }
 0xed8   :  { %v2689_v14 = vadd.f32 %v2688_v17, %v1938_v47  ;;  %v4106_v47 = vld [vmem:[#allocation10 + $0x4c] ss:$12 sps:$4 sm:$0xff]   ;;  %v4108_v17 = vld [vmem:[#allocation10 + $0x50] ss:$12 sps:$4 sm:$0xff]  }
 0xeda   :  { %4040 = vtanh.f32 %v2689_v14  ;;  %v4109_v14 = vld [vmem:[#allocation10 + $0x64] ss:$12 sps:$4 sm:$0xff]  }
 0xee4   :  { %v4041_v25 = vpop.eup %4040 }
 0xee5   :  { %v2692_v39 = vmul.f32 %v4041_v25, %v2691_v48  ;;  %v4111_v48 = vld [vmem:[#allocation10 + $0x68] ss:$12 sps:$4 sm:$0xff]  }
 0xee6   :  { %v4112_v25 = vld [vmem:[#allocation10 + $0x7c] ss:$12 sps:$4 sm:$0xff]  }
 0xee7   :  { %v2694_v57 = vadd.f32 %v2693_v50, %v2692_v39  ;;  %v4113_v50 = vld [vmem:[#allocation10 + $0x78] ss:$12 sps:$4 sm:$0xff]   ;;  %v4114_v39 = vld [vmem:[#allocation10 + $0x80] ss:$12 sps:$4 sm:$0xff]  }
 0xee9   :  { %v2695_v19 = vsel %vm1253_vm15, %v2694_v57, 0.0  ;;  %v5476_v16 = vsel %vm1253_vm15, %v2694_v57, %v5424_v58  ;;  %v5669_v58 = vld [vmem:[#allocation32_spill] sm:$0xff]  ;;  %v4115_v57 = vld [vmem:[#allocation10 + $0x94] ss:$12 sps:$4 sm:$0xff]  }
 0xeea   :  { %2697 = vst [vmem:[#allocation11 + $0x20] sm:$0xff] %v2695_v19  ;;  %v2702_v37 = vpack.c.bf16 %v5476_v16, %v5476_v16  ;;  %v1941_v38 = vadd.f32 %v5669_v58, %v5258_v11  ;;  %v4117_v19 = vld [vmem:[#allocation10 + $0x98] ss:$12 sps:$4 sm:$0xff]  }
 0xeec   :  { %2736 = vmatmul.mubr.bf16.vlgmr.msra.gmra.mrb[84].mxu0 %v2702_v37  ;;  %3734 = vmatmul.mubr.bf16.vlgmr.msra.gmra.mrb[68].mxu1 %v2702_v37  ;;  %v4119_v37 = vld [vmem:[#allocation10 + $0xa8] ss:$12 sps:$4 sm:$0xff]  }
 0xeed   :  { %2815 = vmatpush1.bf16.msra.mxu0 %v5054_v46  ;;  %3738 = vmatpush3.bf16.msra.mxu1 %v5090_v36  ;;  %v4097_v46 = vld [vmem:[#allocation10 + $0x4] ss:$12 sps:$4 sm:$0xff]  }
 0xeee   :  { %2816 = vmatprep.subr.bf16.mxu0 %v5058_v43  ;;  %3739 = vmatprep.subr.bf16.mxu1 %v5636_v59  ;;  %v5667_v43 = vld [vmem:[#allocation20_spill] sm:$0xff] }
 0xeef   :  { %2846 = vmatprep.mubr.bf16.mxu0 %v5637_v63  ;;  %3753 = vmatprep.mubr.msk.bf16.mxu1 %vm4246_vm3, %v5636_v59 }
 0xef1   :  { %2817 = vmatpush1.bf16.msra.mxu0 %v5060_v1  ;;  %3740 = vmatpush3.bf16.msra.mxu1 %v5102_v56  ;;  %v1873_v1 = vadd.f32 %v5667_v43, %v5237_v42  ;;  %v5671_v43 = vld [vmem:[#allocation26_spill] sm:$0xff] }
 0xef2   :  { %2818 = vmatprep.subr.bf16.mxu0 %v5064_v23  ;;  %3741 = vmatprep.subr.bf16.mxu1 %v5636_v59  ;;  %v5668_v23 = vld [vmem:[#allocation25_spill] sm:$0xff] }
 0xef5   :  { %2819 = vmatpush1.bf16.msra.mxu0 %v5066_v26  ;;  %3742 = vmatpush3.bf16.msra.mxu1 %v5108_v52  ;;  %v1875_v26 = vadd.f32 %v5668_v23, %v5245_v45  ;;  %v5672_v23 = vld [vmem:[#allocation28_spill] sm:$0xff] }
 0xef6   :  { %2820 = vmatprep.subr.bf16.mxu0 %v5070_v27  ;;  %3743 = vmatprep.subr.bf16.mxu1 %v5636_v59 }
 0xef9   :  { %2821 = vmatpush1.bf16.msra.mxu0 %v5072_v28  ;;  %3744 = vmatpush3.bf16.msra.mxu1 %v5112_v3 }
 0xefa   :  { %2822 = vmatprep.subr.bf16.mxu0 %v5076_v29  ;;  %3745 = vmatprep.subr.bf16.mxu1 %v5636_v59 }
 0xefd   :  { %2823 = vmatpush1.bf16.msra.mxu0 %v5078_v30  ;;  %3746 = vmatpush3.bf16.msra.mxu1 %v5116_v10 }
 0xefe   :  { %2824 = vmatprep.subr.bf16.mxu0 %v5082_v31  ;;  %3747 = vmatprep.subr.bf16.mxu1 %v5636_v59 }
 0xf01   :  { %2825 = vmatpush1.bf16.msra.mxu0 %v5084_v34  ;;  %3748 = vmatpush3.bf16.msra.mxu1 %v5120_v24 }
 0xf02   :  { %2826 = vmatprep.subr.bf16.mxu0 %v5088_v35  ;;  %3749 = vmatprep.subr.bf16.mxu1 %v5636_v59 }
 0xf05   :  { %2827 = vmatpush1.bf16.msra.mxu0 %v5092_v6  ;;  %3750 = vmatpush3.bf16.msra.mxu1 %v5124_v44 }
 0xf06   :  { %2828 = vmatprep.subr.bf16.mxu0 %v5097_v15  ;;  %3751 = vmatprep.subr.bf16.mxu1 %v5636_v59 }
 0xf09   :  { %2829 = vmatpush1.bf16.msra.mxu0 %v5100_v9  ;;  %3752 = vmatpush3.bf16.msra.mxu1 %v5128_v62 }
 0xf0a   :  { %2925 = vmatprep.subr.bf16.mxu0 %v4097_v46  ;;  %3757 = vmatprep.subr.bf16.mxu1 %v5636_v59  ;;  %v4120_v46 = vld [vmem:[#allocation10 + $0xb0] ss:$12 sps:$4 sm:$0xff]  }
 0xfbf   :  { %v2737_v27 = vpop.f32.mrb[84].mxu0  ;;  %v2778_v28 = vpop.f32.mrb[68].mxu1 }
 0xfc0   :  { %v2784_v29 = vadd.f32 %v2737_v27, %v1873_v1  ;;  %v2739_v30 = vpop.f32.mrb[85].mxu0  ;;  %v3735_v31 = vpop.f32.mrb[69].mxu1  ;;  %v2798_v44 = vadd.f32 %v5254_v20, %v2778_v28  ;;  %v1879_v1 = vadd.f32 %v5671_v43, %v5237_v42 }
 0xfc1   :  { %v2785_v34 = vadd.f32 %v2739_v30, %v1875_v26  ;;  %v2741_v35 = vpop.f32.mrb[86].mxu0  ;;  %v2781_v36 = vpop.f32.mrb[70].mxu1  ;;  %v1881_v26 = vadd.f32 %v5672_v23, %v5245_v45 }
 0xfc2   :  { %v3198_v6 = vmul.f32 -1.442695, %v2784_v29  ;;  %v2742_v15 = vpop.f32.mrb[87].mxu0  ;;  %v3736_v9 = vpop.f32.mrb[71].mxu1 }
 0xfc3   :  { %v3199_v56 = vmul.f32 -1.442695, %v2785_v34 }
 0xfc4   :  { %4042 = vpow2.f32 %v3198_v6 }
 0xfc5   :  { %4044 = vpow2.f32 %v3199_v56 }
 0xfce   :  { %v4043_v52 = vpop.eup %4042 }
 0xfcf   :  { %v2792_v3 = vadd.f32 1.0, %v4043_v52  ;;  %v4045_v10 = vpop.eup %4044 }
 0xfd0   :  { %v2793_v24 = vadd.f32 1.0, %v4045_v10 }
 0xfd1   :  { %4046 = vrcp.f32 %v2792_v3 }
 0xfd2   :  { %4048 = vrcp.f32 %v2793_v24 }
 0xfdb   :  { %v4047_v62 = vpop.eup %4046 }
 0xfdc   :  { %v2799_v18 = vmul.f32 %v4047_v62, %v2798_v44  ;;  %v4049_v13 = vpop.eup %4048  ;;  %v5673_v62 = vld [vmem:[#allocation27_spill] sm:$0xff] }
 0xfdd   :  { %v2802_v53 = vsub.f32 1.0, %v4049_v13  ;;  %v2804_v22 = vmul.f32 %v4049_v13, %v5476_v16  ;;  %v1946_v58 = vadd.f32 %v5673_v62, %v5258_v11 }
 0xfde   :  { %v2800_v60 = vadd.f32 %v2799_v18, %v1941_v38 }
 0xfe0   :  { %4050 = vtanh.f32 %v2800_v60 }
 0xfea   :  { %v4051_v61 = vpop.eup %4050 }
 0xfeb   :  { %v2803_v40 = vmul.f32 %v4051_v61, %v2802_v53 }
 0xfed   :  { %v2805_v33 = vadd.f32 %v2804_v22, %v2803_v40 }
 0xfef   :  { %v2806_v2 = vsel %vm1375_vm0, %v2805_v33, 0.0  ;;  %v5527_v49 = vsel %vm1375_vm0, %v2805_v33, %v5476_v16  ;;  %v4118_v16 = vld [vmem:[#allocation10 + $0xac] ss:$12 sps:$4 sm:$0xff]  }
 0xff0   :  { %2808 = vst [vmem:[#allocation11 + $0x28] sm:$0xff] %v2806_v2  ;;  %v2813_v54 = vpack.c.bf16 %v5527_v49, %v5527_v49 }
 0xff2   :  { %2847 = vmatmul.mubr.bf16.vlgmr.msra.gmra.mrb[88].mxu0 %v2813_v54  ;;  %3754 = vmatmul.mubr.bf16.vlgmr.msra.gmra.mrb[72].mxu1 %v2813_v54 }
 0xff3   :  { %2926 = vmatpush1.bf16.msra.mxu0 %v4098_v8  ;;  %3758 = vmatpush3.bf16.msra.mxu1 %v4099_v7  ;;  %v5675_v8 = vld [vmem:[#allocation30_spill] sm:$0xff] }
 0xff4   :  { %2927 = vmatprep.subr.bf16.mxu0 %v4100_v55  ;;  %3759 = vmatprep.subr.bf16.mxu1 %v5636_v59  ;;  %v1883_v7 = vadd.f32 %v5675_v8, %v5237_v42  ;;  %v5676_v55 = vld [vmem:[#allocation18_spill] sm:$0xff] }
 0xff5   :  { %2957 = vmatprep.mubr.bf16.mxu0 %v5637_v63  ;;  %3773 = vmatprep.mubr.msk.bf16.mxu1 %vm4246_vm3, %v5636_v59  ;;  %v4107_v63 = vld [vmem:[#allocation10 + $0x48] ss:$12 sps:$4 sm:$0xff]  }
 0xff7   :  { %2928 = vmatpush1.bf16.msra.mxu0 %v4101_v5  ;;  %3760 = vmatpush3.bf16.msra.mxu1 %v4102_v41  ;;  %v1885_v5 = vadd.f32 %v5676_v55, %v5245_v45 }
 0xff8   :  { %2929 = vmatprep.subr.bf16.mxu0 %v4103_v32  ;;  %3761 = vmatprep.subr.bf16.mxu1 %v5636_v59 }
 0xffb   :  { %2930 = vmatpush1.bf16.msra.mxu0 %v4104_v21  ;;  %3762 = vmatpush3.bf16.msra.mxu1 %v4105_v51 }
 0xffc   :  { %2931 = vmatprep.subr.bf16.mxu0 %v4106_v47  ;;  %3763 = vmatprep.subr.bf16.mxu1 %v5636_v59 }
 0xfff   :  { %2932 = vmatpush1.bf16.msra.mxu0 %v4107_v63  ;;  %3764 = vmatpush3.bf16.msra.mxu1 %v4108_v17 }
0x1000   :  { %2933 = vmatprep.subr.bf16.mxu0 %v4109_v14  ;;  %3765 = vmatprep.subr.bf16.mxu1 %v5636_v59 }
0x1003   :  { %2934 = vmatpush1.bf16.msra.mxu0 %v4110_v0  ;;  %3766 = vmatpush3.bf16.msra.mxu1 %v4111_v48 }
0x1004   :  { %2935 = vmatprep.subr.bf16.mxu0 %v4112_v25  ;;  %3767 = vmatprep.subr.bf16.mxu1 %v5636_v59 }
0x1007   :  { %2936 = vmatpush1.bf16.msra.mxu0 %v4113_v50  ;;  %3768 = vmatpush3.bf16.msra.mxu1 %v4114_v39 }
0x1008   :  { %2937 = vmatprep.subr.bf16.mxu0 %v4115_v57  ;;  %3769 = vmatprep.subr.bf16.mxu1 %v5636_v59 }
0x100b   :  { %2938 = vmatpush1.bf16.msra.mxu0 %v4116_v12  ;;  %3770 = vmatpush3.bf16.msra.mxu1 %v4117_v19  ;;  %v5677_v19 = vld [vmem:[#allocation31_spill] sm:$0xff] }
0x100c   :  { %2939 = vmatprep.subr.bf16.mxu0 %v4118_v16  ;;  %3771 = vmatprep.subr.bf16.mxu1 %v5636_v59  ;;  %v1949_v16 = vadd.f32 %v5677_v19, %v5258_v11 }
0x100f   :  { %2940 = vmatpush1.bf16.msra.mxu0 %v4119_v37  ;;  %3772 = vmatpush3.bf16.msra.mxu1 %v4120_v46 }
0x10c5   :  { %v2848_v27 = vpop.f32.mrb[88].mxu0  ;;  %v2889_v28 = vpop.f32.mrb[72].mxu1 }
0x10c6   :  { %v2895_v29 = vadd.f32 %v2848_v27, %v1879_v1  ;;  %v2850_v30 = vpop.f32.mrb[89].mxu0  ;;  %v3755_v31 = vpop.f32.mrb[73].mxu1  ;;  %v2909_v24 = vadd.f32 %v5254_v20, %v2889_v28 }
0x10c7   :  { %v2896_v34 = vadd.f32 %v2850_v30, %v1881_v26  ;;  %v2852_v35 = vpop.f32.mrb[90].mxu0  ;;  %v2892_v36 = vpop.f32.mrb[74].mxu1 }
0x10c8   :  { %v3200_v6 = vmul.f32 -1.442695, %v2895_v29  ;;  %v2853_v59 = vpop.f32.mrb[91].mxu0  ;;  %v3756_v15 = vpop.f32.mrb[75].mxu1 }
0x10c9   :  { %v3201_v9 = vmul.f32 -1.442695, %v2896_v34 }
0x10ca   :  { %4052 = vpow2.f32 %v3200_v6 }
0x10cb   :  { %4054 = vpow2.f32 %v3201_v9 }
0x10d4   :  { %v4053_v56 = vpop.eup %4052 }
0x10d5   :  { %v2903_v52 = vadd.f32 1.0, %v4053_v56  ;;  %v4055_v3 = vpop.eup %4054 }
0x10d6   :  { %v2904_v10 = vadd.f32 1.0, %v4055_v3 }
0x10d7   :  { %4056 = vrcp.f32 %v2903_v52 }
0x10d8   :  { %4058 = vrcp.f32 %v2904_v10 }
0x10e1   :  { %v4057_v44 = vpop.eup %4056 }
0x10e2   :  { %v2910_v38 = vmul.f32 %v4057_v44, %v2909_v24  ;;  %v4059_v60 = vpop.eup %4058 }
0x10e3   :  { %v2913_v13 = vsub.f32 1.0, %v4059_v60  ;;  %v2915_v61 = vmul.f32 %v4059_v60, %v5527_v49 }
0x10e4   :  { %v2911_v18 = vadd.f32 %v2910_v38, %v1946_v58 }
0x10e6   :  { %4060 = vtanh.f32 %v2911_v18 }
0x10f0   :  { %v4061_v53 = vpop.eup %4060 }
0x10f1   :  { %v2914_v22 = vmul.f32 %v4061_v53, %v2913_v13 }
0x10f3   :  { %v2916_v40 = vadd.f32 %v2915_v61, %v2914_v22 }
0x10f5   :  { %v2917_v4 = vsel %vm1497_vm1, %v2916_v40, 0.0  ;;  %v2920_v2 = vsel %vm1497_vm1, %v2916_v40, %v5527_v49 }
0x10f6   :  { %2919 = vst [vmem:[#allocation11 + $0x30] sm:$0xff] %v2917_v4  ;;  %v2924_v54 = vpack.c.bf16 %v2920_v2, %v2920_v2 }
0x10f8   :  { %2958 = vmatmul.mubr.bf16.vlgmr.msra.gmra.mrb[92].mxu0 %v2924_v54  ;;  %3774 = vmatmul.mubr.bf16.vlgmr.msra.gmra.mrb[76].mxu1 %v2924_v54 }
0x11cb   :  { %v2959_v41 = vpop.f32.mrb[92].mxu0  ;;  %v3000_v32 = vpop.f32.mrb[76].mxu1 }
0x11cc   :  { %v3006_v21 = vadd.f32 %v2959_v41, %v1883_v7  ;;  %v2961_v51 = vpop.f32.mrb[93].mxu0  ;;  %v3775_v47 = vpop.f32.mrb[77].mxu1  ;;  %v3020_v45 = vadd.f32 %v5254_v20, %v3000_v32 }
0x11cd   :  { %v3007_v63 = vadd.f32 %v2961_v51, %v1885_v5  ;;  %v2963_v17 = vpop.f32.mrb[94].mxu0  ;;  %v3003_v14 = vpop.f32.mrb[78].mxu1 }
0x11ce   :  { %v3202_v0 = vmul.f32 -1.442695, %v3006_v21  ;;  %v2964_v49 = vpop.f32.mrb[95].mxu0  ;;  %v3776_v48 = vpop.f32.mrb[79].mxu1 }
0x11cf   :  { %v3203_v25 = vmul.f32 -1.442695, %v3007_v63 }
0x11d0   :  { %4062 = vpow2.f32 %v3202_v0 }
0x11d1   :  { %4064 = vpow2.f32 %v3203_v25 }
0x11da   :  { %v4063_v50 = vpop.eup %4062 }
0x11db   :  { %v3014_v39 = vadd.f32 1.0, %v4063_v50  ;;  %v4065_v42 = vpop.eup %4064 }
0x11dc   :  { %v3015_v57 = vadd.f32 1.0, %v4065_v42 }
0x11dd   :  { %4066 = vrcp.f32 %v3014_v39 }
0x11de   :  { %4068 = vrcp.f32 %v3015_v57 }
0x11e7   :  { %v4067_v12 = vpop.eup %4066 }
0x11e8   :  { %v3021_v37 = vmul.f32 %v4067_v12, %v3020_v45  ;;  %v4069_v43 = vpop.eup %4068 }
0x11e9   :  { %v3024_v1 = vsub.f32 1.0, %v4069_v43  ;;  %v3026_v27 = vmul.f32 %v4069_v43, %v2920_v2 }
0x11ea   :  { %v3022_v46 = vadd.f32 %v3021_v37, %v1949_v16 }
0x11ec   :  { %4070 = vtanh.f32 %v3022_v46 }
0x11f6   :  { %v4071_v23 = vpop.eup %4070 }
0x11f7   :  { %v3025_v26 = vmul.f32 %v4071_v23, %v3024_v1 }
0x11f9   :  { %v3027_v28 = vadd.f32 %v3026_v27, %v3025_v26 }
0x11fb   :  { %v3028_v29 = vsel %vm1619_vm6, %v3027_v28, 0.0  ;;  %v3031_v11 = vsel %vm1619_vm6, %v3027_v28, %v2920_v2 }
0x11fc   :  { %3030 = vst [vmem:[#allocation11 + $0x38] sm:$0xff] %v3028_v29  ;;  %3034 = vst [vmem:[#allocation12] sm:$0xff] %v3031_v11 }
0x11fd   :  { %4198 = shalt.err (!%p4195_p0)
}
0x11fe   :  { %s4199_s24 = scalar_lea.hbm %s5608_s12, 1024 }
0x11ff   :  { %p4200_p1 = scmp.ne.s32.totalorder %s5608_s12, %s4199_s24  ;;  %p4203_p2 = scmp.lt.u32.totalorder %s4199_s24, %s5608_s12 }
0x1201   :  { %p4205_p3 = pnand %p4203_p2, %p4200_p1 }
0x1203   :  { %4208 = shalt.err (!%p4205_p3)
}
0x1204   :  { %s4250_s5 = smov 128   ;;  %s4251_s28 = smov 8  }
0x1205   :  { %3046 = dma.vmem_to_hbm [thread:$0]  %s3041_s0, 1024, %s5608_s12, [#allocation7], %s4250_s5, %s4250_s5, %s4251_s28  }
0x1206   :  { %s4209_s4 = scalar_lea.vmem %s5565_s18, 128  ;;  %p4214_p5 = scmp.lt.s32.totalorder %s5565_s18, %s5565_s18 }
0x1207   :  { %p4210_p4 = scmp.ne.s32.totalorder %s5565_s18, %s4209_s4  ;;  %p4215_p6 = scmp.lt.s32.totalorder %s4209_s4, %s4209_s4 }
0x1209   :  { %p4216_p7 = por %p4215_p6, %p4214_p5 }
0x120b   :  { %p4217_p8 = pnand %p4216_p7, %p4210_p4 }
0x120d   :  { %4220 = shalt.err (!%p4217_p8)
}
0x120e   :  { %s4221_s2 = scalar_lea.hbm %s5609_s13, 128 }
0x120f   :  { %p4222_p9 = scmp.ne.s32.totalorder %s5609_s13, %s4221_s2  ;;  %p4225_p10 = scmp.lt.u32.totalorder %s4221_s2, %s5609_s13 }
0x1211   :  { %p4227_p11 = pnand %p4225_p10, %p4222_p9 }
0x1213   :  { %4230 = shalt.err (!%p4227_p11)
}
0x1214   :  { %3056 = dma.vmem_to_hbm [thread:$0]  %s5565_s18, 128, %s5609_s13, [#allocation13]  }
0x1215   :  { %4235 = dma.done.wait [#allocation7], 1024  }
0x1216   :  { %4236 = vsyncadd [#allocation7], 4294966272 }
0x1217   :  { %4237 = dma.done.wait [#allocation13], 128  }
0x1218   :  { %4238 = vsyncadd [#allocation13], 4294967168 }
0x1219   :  { %3063 = vsyncpa [#allocation6], 1 }
0x121a   :  { %3064 = vsyncpa [#allocation9], 1 }
0x121b   :  { %3065 = vsyncpa [#allocation7], 1 }
0x121c   :  { %3066 = vsyncpa [#allocation13], 1 }

</bundles_post_ra>
